<compile_context>
chip_gen: v7x
topology: tpu7x:2x2x1
jax: 0.10.0
libtpu: 0.0.40
codegen_flags: <defaults>
</compile_context>

<pallas_src>
import functools

import jax
import jax.numpy as jnp
from jax import lax
from jax.experimental import pallas as pl
from jax.experimental.pallas import tpu as pltpu

EPS = 1e-5
LANES = 128
MXU_DTYPE = jnp.bfloat16      # MXU operands + HBM intermediates; stats/BN in f32
GROUP_TAPS = True             # K=256 tap pairing; set False on v5e (128-deep MXU)
MAX_TILE_ROWS = 2048          # cap on th*wo MXU rows per tile (bounds VMEM)
VMEM_LIMIT = 48 * 1024 * 1024  # explicit scoped-VMEM limit, safe on v7x (64 MiB)


# ---------------------------------------------------------------- helpers ---
def _round_up(x, m):
    return (x + m - 1) // m * m


def _pick_tile_rows(ho, wo):
    """Largest row-tile dividing Ho with th*wo <= MAX_TILE_ROWS MXU rows."""
    best = 1
    for d in range(1, ho + 1):
        if ho % d == 0 and d * wo <= MAX_TILE_ROWS:
            best = d
    return best


def _pad_w(w, cip, cop):
    """(kh, kw, cin, cout) -> zero-padded (kh, kw, cip, cop)."""
    kh, kw, ci, co = w.shape
    return jnp.pad(w, ((0, 0), (0, 0), (0, cip - ci), (0, cop - co)))


def _pack_taps(w, cin_p, cout_p):
    """(3,3,cin,cout) -> (pairs (4, 2*cin_p, cout_p), last (cin_p, cout_p)) bf16.

    Taps 2p / 2p+1 are stacked along K so one K=2*128 matmul feeds the 256-deep
    v6e/v7x MXU; the lone 9th tap keeps its own K=128 matmul.
    """
    w9 = _pad_w(w, cin_p, cout_p).reshape(9, cin_p, cout_p)
    pairs = w9[:8].reshape(4, 2 * cin_p, cout_p)
    return pairs.astype(MXU_DTYPE), w9[8].astype(MXU_DTYPE)


def _pack_gb(g, b, cop):
    """gamma / beta (1, cout) -> stacked, zero-padded (2, cop) f32."""
    g = g.reshape(-1)
    b = b.reshape(-1)
    pad = cop - g.shape[0]
    return jnp.stack([jnp.pad(g, (0, pad)), jnp.pad(b, (0, pad))]).astype(jnp.float32)


def _conv3x3_acc(tap, wp_ref, wl_ref, m, cin_p):
    """Nine shifted-tap matmuls, optionally paired into K=2*cin_p MXU dots."""
    cop = wl_ref.shape[-1]
    acc = jnp.zeros((m, cop), jnp.float32)
    for p in range(4):
        kh0, kw0 = divmod(2 * p, 3)
        kh1, kw1 = divmod(2 * p + 1, 3)
        if GROUP_TAPS:
            lhs = jnp.concatenate([tap(kh0, kw0), tap(kh1, kw1)], axis=-1)
            acc = acc + jnp.dot(lhs, wp_ref[p], preferred_element_type=jnp.float32)
        else:
            acc = acc + jnp.dot(tap(kh0, kw0), wp_ref[p, 0:cin_p],
                                preferred_element_type=jnp.float32)
            acc = acc + jnp.dot(tap(kh1, kw1), wp_ref[p, cin_p:2 * cin_p],
                                preferred_element_type=jnp.float32)
    acc = acc + jnp.dot(tap(2, 2), wl_ref[...], preferred_element_type=jnp.float32)
    return acc


# ---------------------------------------------------------------- kernels ---
def _conv1_kernel(m_total, xs_ref, xsh_ref, w1p_ref, w1l_ref, gb1_ref,
                  y1_ref, aff1_ref, xbuf_ref):
    """Pass 1: raw conv1 (3x3, stride 2) tile + running BN1 sum / sum-sq.

    xs_ref  : (4, 1, th, wh, cip) space-to-depth parity planes, row tile (bf16).
    xsh_ref : (4, 1, 1, wh, cip)  bottom 1-row halo of the same planes (bf16).
    Output y1 is bf16; BN1 stats are accumulated from the f32 accumulator and
    folded to an affine [scale; shift] on the last grid step.
    """
    n = pl.program_id(0)
    h = pl.program_id(1)
    first = jnp.logical_and(n == 0, h == 0)
    last = jnp.logical_and(n == pl.num_programs(0) - 1,
                           h == pl.num_programs(1) - 1)

    _, th, wo, cop = y1_ref.shape
    cip = xs_ref.shape[-1]
    m = th * wo

    # kh=2 taps read plane rows shifted down by one: stage planes 0/1 rows
    # [0, th] (main tile + halo row) into a tile-sized bf16 scratch.
    xbuf_ref[:, 0:th] = xs_ref[0:2, 0]
    xbuf_ref[:, th:th + 1] = xsh_ref[0:2, 0]

    def tap(kh, kw):
        p = 2 * (kh % 2) + (kw % 2)
        if kh < 2:
            sl = xs_ref[p, 0, pl.ds(0, th), pl.ds(kw // 2, wo), :]
        else:
            sl = xbuf_ref[kw % 2, pl.ds(1, th), pl.ds(kw // 2, wo), :]
        return sl.reshape(m, cip)

    acc = _conv3x3_acc(tap, w1p_ref, w1l_ref, m, cip)
    # conv1 bias dropped: cancelled exactly by train-mode BN mean subtraction.
    y1_ref[...] = acc.reshape(y1_ref.shape).astype(y1_ref.dtype)

    stat = jnp.concatenate([jnp.sum(acc, axis=0, keepdims=True),
                            jnp.sum(acc * acc, axis=0, keepdims=True)], axis=0)

    @pl.when(first)
    def _():
        aff1_ref[...] = stat

    @pl.when(jnp.logical_not(first))
    def _():
        aff1_ref[...] = aff1_ref[...] + stat

    @pl.when(last)
    def _():
        inv_m = 1.0 / m_total
        mean = aff1_ref[0:1, :] * inv_m
        var = aff1_ref[1:2, :] * inv_m - mean * mean
        a = gb1_ref[0:1, :] * lax.rsqrt(var + EPS)
        aff1_ref[1:2, :] = gb1_ref[1:2, :] - mean * a
        aff1_ref[0:1, :] = a


def _conv2_ds_kernel(m_total, y1_ref, y1t_ref, y1b_ref, aff1_ref,
                     w2p_ref, w2l_ref, wd_ref, xd_ref, gb2_ref, gbd_ref,
                     y2_ref, yd_ref, aff2_ref, affd_ref, y1p_ref):
    """Pass 2: raw conv2 (on BN1-normalized y1 tile) + raw 1x1/s2 downsample,
    plus BN2 / BNd statistics.

    y1_ref/y1t_ref/y1b_ref: bf16 row tile of y1_raw plus top/bottom 1-row halos
    (clamped index maps; masked to zero at the image boundary).  y1p_ref is a
    *tile-sized* bf16 VMEM scratch holding the BN1-normalized tile inside a
    zero ring, rebuilt every grid step (no full-feature-map residency).
    """
    n = pl.program_id(0)
    h = pl.program_id(1)
    nh = pl.num_programs(1)
    first = jnp.logical_and(n == 0, h == 0)
    last = jnp.logical_and(n == pl.num_programs(0) - 1, h == nh - 1)

    _, th, wo, cop = y2_ref.shape
    cip = xd_ref.shape[-1]
    m = th * wo

    @pl.when(first)
    def _():
        # Zero once: the left/right zero-ring columns are never rewritten.
        y1p_ref[...] = jnp.zeros_like(y1p_ref)

    a1 = aff1_ref[0:1, :]
    c1 = aff1_ref[1:2, :]
    top_ok = jnp.where(h > 0, 1.0, 0.0)          # image-top padding row -> 0
    bot_ok = jnp.where(h < nh - 1, 1.0, 0.0)     # image-bottom padding row -> 0

    y1p_ref[1:th + 1, 1:wo + 1, :] = (
        a1 * y1_ref[0].astype(jnp.float32) + c1).astype(y1p_ref.dtype)
    y1p_ref[0:1, 1:wo + 1, :] = (
        top_ok * (a1 * y1t_ref[0].astype(jnp.float32) + c1)).astype(y1p_ref.dtype)
    y1p_ref[th + 1:th + 2, 1:wo + 1, :] = (
        bot_ok * (a1 * y1b_ref[0].astype(jnp.float32) + c1)).astype(y1p_ref.dtype)

    def tap(kh, kw):
        return y1p_ref[pl.ds(kh, th), pl.ds(kw, wo), :].reshape(m, cop)

    acc2 = _conv3x3_acc(tap, w2p_ref, w2l_ref, m, cop)
    # NOTE: conv2 bias dropped (cancelled by train-mode BN2).
    accd = jnp.dot(xd_ref[0].reshape(m, cip), wd_ref[...],
                   preferred_element_type=jnp.float32)

    y2_ref[...] = acc2.reshape(y2_ref.shape).astype(y2_ref.dtype)
    yd_ref[...] = accd.reshape(yd_ref.shape).astype(yd_ref.dtype)

    stat2 = jnp.concatenate([jnp.sum(acc2, axis=0, keepdims=True),
                             jnp.sum(acc2 * acc2, axis=0, keepdims=True)], axis=0)
    statd = jnp.concatenate([jnp.sum(accd, axis=0, keepdims=True),
                             jnp.sum(accd * accd, axis=0, keepdims=True)], axis=0)

    @pl.when(first)
    def _():
        aff2_ref[...] = stat2
        affd_ref[...] = statd

    @pl.when(jnp.logical_not(first))
    def _():
        aff2_ref[...] = aff2_ref[...] + stat2
        affd_ref[...] = affd_ref[...] + statd

    @pl.when(last)
    def _():
        inv_m = 1.0 / m_total
        for aff, gb in ((aff2_ref, gb2_ref), (affd_ref, gbd_ref)):
            mean = aff[0:1, :] * inv_m
            var = aff[1:2, :] * inv_m - mean * mean
            a = gb[0:1, :] * lax.rsqrt(var + EPS)
            aff[1:2, :] = gb[1:2, :] - mean * a
            aff[0:1, :] = a


def _bn_add_relu_kernel(aff2_ref, affd_ref, y2_ref, yd_ref, o_ref):
    """Pass 3: relu(BN2(conv2) + BNd(downsample)); pure VPU, lane-dense."""
    a2 = aff2_ref[0:1, :]
    ad = affd_ref[0:1, :]
    c = aff2_ref[1:2, :] + affd_ref[1:2, :]       # combined shift, applied once
    o_ref[...] = jnp.maximum(
        a2 * y2_ref[...].astype(jnp.float32)
        + ad * yd_ref[...].astype(jnp.float32) + c, 0.0)


# --------------------------------------------------------------- forward ----
def res_block_forward(x_nchw, p):
    x = jnp.transpose(x_nchw, (0, 2, 3, 1)).astype(jnp.float32)   # NCHW -> NHWC
    n, h, w, cin = x.shape
    cout = p["w1"].shape[-1]
    assert h % 2 == 0 and w % 2 == 0, "stride-2 block expects even H, W"

    cip = _round_up(cin, LANES)          # channel pad -> 128-lane dense blocks
    cop = _round_up(cout, LANES)
    ho, wo = h // 2, w // 2
    th = _pick_tile_rows(ho, wo)
    nh = ho // th
    grid = (n, nh)
    m_total = float(n * ho * wo)         # BN sample count (per channel)
    hh, wh = ho + 1, wo + 1              # space-to-depth plane dims

    # ---- plain-JAX layout glue (O(1x) data, no im2col materialization) ----
    xc = jnp.pad(x, ((0, 0), (0, 0), (0, 0), (0, cip - cin)))
    xp = jnp.pad(xc, ((0, 0), (1, 1), (1, 1), (0, 0)))            # conv1 halo
    # space-to-depth parity planes -> stride-2 taps become unit-stride slices
    xs = jnp.stack([xp[:, ph::2, pw::2, :] for ph in (0, 1) for pw in (0, 1)],
                   axis=0).astype(MXU_DTYPE)                      # (4,N,hh,wh,Cip)
    xd = xc[:, ::2, ::2, :].astype(MXU_DTYPE)                     # (N,Ho,Wo,Cip)

    w1p, w1l = _pack_taps(p["w1"], cip, cop)
    w2p, w2l = _pack_taps(p["w2"], cop, cop)
    wd = _pad_w(p["wd"], cip, cop).reshape(cip, cop).astype(MXU_DTYPE)
    gb1 = _pack_gb(p["g1"], p["be1"], cop)
    gb2 = _pack_gb(p["g2"], p["be2"], cop)
    gbd = _pack_gb(p["gd"], p["bed"], cop)
    # conv biases b1 / b2 intentionally unused (cancelled by train-mode BN).

    def tile(c):
        return pl.BlockSpec((1, th, wo, c), lambda i, j: (i, j, 0, 0))

    def full(shape):
        # Grid-invariant blocks (weights / affines); DMA'd once, reused.
        return pl.BlockSpec(shape, lambda i, j: (0,) * len(shape))

    seq = pltpu.CompilerParams(dimension_semantics=("arbitrary", "arbitrary"),
                               vmem_limit_bytes=VMEM_LIMIT)
    par = pltpu.CompilerParams(dimension_semantics=("parallel", "parallel"),
                               vmem_limit_bytes=VMEM_LIMIT)

    # ---- Pass 1: conv1 tiles (with 1-row bottom halo) + BN1 statistics ----
    xs_main = pl.BlockSpec((4, 1, th, wh, cip), lambda i, j: (0, i, j, 0, 0))
    xs_halo = pl.BlockSpec((4, 1, 1, wh, cip),
                           lambda i, j: (0, i, (j + 1) * th, 0, 0))
    y1_raw, aff1 = pl.pallas_call(
        functools.partial(_conv1_kernel, m_total),
        grid=grid,
        in_specs=[xs_main, xs_halo, full((4, 2 * cip, cop)), full((cip, cop)),
                  full((2, cop))],
        out_specs=(tile(cop), full((2, cop))),
        out_shape=(jax.ShapeDtypeStruct((n, ho, wo, cop), MXU_DTYPE),
                   jax.ShapeDtypeStruct((2, cop), jnp.float32)),
        scratch_shapes=[pltpu.VMEM((2, th + 1, wh, cip), MXU_DTYPE)],
        compiler_params=seq,
    )(xs, xs, w1p, w1l, gb1)

    # ---- Pass 2: conv2 (BN1 applied per tile) + fused 1x1/s2 downsample ----
    y1_top = pl.BlockSpec((1, 1, wo, cop),
                          lambda i, j: (i, jnp.maximum(j * th - 1, 0), 0, 0))
    y1_bot = pl.BlockSpec((1, 1, wo, cop),
                          lambda i, j: (i, jnp.minimum((j + 1) * th, ho - 1), 0, 0))
    y2_raw, yd_raw, aff2, affd = pl.pallas_call(
        functools.partial(_conv2_ds_kernel, m_total),
        grid=grid,
        in_specs=[tile(cop), y1_top, y1_bot, full((2, cop)),
                  full((4, 2 * cop, cop)), full((cop, cop)), full((cip, cop)),
                  tile(cip), full((2, cop)), full((2, cop))],
        out_specs=(tile(cop), tile(cop), full((2, cop)), full((2, cop))),
        out_shape=(jax.ShapeDtypeStruct((n, ho, wo, cop), MXU_DTYPE),
                   jax.ShapeDtypeStruct((n, ho, wo, cop), MXU_DTYPE),
                   jax.ShapeDtypeStruct((2, cop), jnp.float32),
                   jax.ShapeDtypeStruct((2, cop), jnp.float32)),
        scratch_shapes=[pltpu.VMEM((th + 2, wo + 2, cop), MXU_DTYPE)],
        compiler_params=seq,
    )(y1_raw, y1_raw, y1_raw, aff1, w2p, w2l, wd, xd, gb2, gbd)

    # ---- Pass 3: apply both BN affines, residual add, ReLU (megacore) ----
    out = pl.pallas_call(
        _bn_add_relu_kernel,
        grid=grid,
        in_specs=[full((2, cop)), full((2, cop)), tile(cop), tile(cop)],
        out_specs=tile(cop),
        out_shape=jax.ShapeDtypeStruct((n, ho, wo, cop), jnp.float32),
        compiler_params=par,
    )(aff2, affd, y2_raw, yd_raw)

    out = out[..., :cout]                                         # drop channel pad
    return jnp.transpose(out, (0, 3, 1, 2))                       # NHWC -> NCHW


# -------------------------------------------------------------- parameters --
def init_params(key, cin, cout):
    ks = jax.random.split(key, 11)
    f32 = jnp.float32
    return {
        "w1": 0.1 * jax.random.normal(ks[0], (3, 3, cin, cout), f32),
        "b1": 0.1 * jax.random.normal(ks[1], (1, cout), f32),
        "g1": 1.0 + 0.1 * jax.random.normal(ks[2], (1, cout), f32),
        "be1": 0.1 * jax.random.normal(ks[3], (1, cout), f32),
        "w2": 0.1 * jax.random.normal(ks[4], (3, 3, cout, cout), f32),
        "b2": 0.1 * jax.random.normal(ks[5], (1, cout), f32),
        "g2": 1.0 + 0.1 * jax.random.normal(ks[6], (1, cout), f32),
        "be2": 0.1 * jax.random.normal(ks[7], (1, cout), f32),
        "wd": 0.1 * jax.random.normal(ks[8], (1, 1, cin, cout), f32),   # no bias
        "gd": 1.0 + 0.1 * jax.random.normal(ks[9], (1, cout), f32),
        "bed": 0.1 * jax.random.normal(ks[10], (1, cout), f32),
    }


# ------------------------------------------------------ pure-JAX reference --
def ref_forward(x_nchw, p):
    x = jnp.transpose(x_nchw, (0, 2, 3, 1)).astype(jnp.float32)

    def conv(x, w, stride, pad):
        return lax.conv_general_dilated(
            x, w, (stride, stride), ((pad, pad), (pad, pad)),
            dimension_numbers=("NHWC", "HWIO", "NHWC"),
            precision=lax.Precision.HIGHEST)

    def bn(y, g, be):
        mu = jnp.mean(y, axis=(0, 1, 2), keepdims=True)
        var = jnp.mean((y - mu) ** 2, axis=(0, 1, 2), keepdims=True)
        return (g.reshape(1, 1, 1, -1) * (y - mu) * lax.rsqrt(var + EPS)
                + be.reshape(1, 1, 1, -1))

    y = bn(conv(x, p["w1"], 2, 1) + p["b1"].reshape(1, 1, 1, -1), p["g1"], p["be1"])
    y = bn(conv(y, p["w2"], 1, 1) + p["b2"].reshape(1, 1, 1, -1), p["g2"], p["be2"])
    idn = bn(conv(x, p["wd"], 2, 0), p["gd"], p["bed"])
    out = jnp.maximum(y + idn, 0.0)
    return jnp.transpose(out, (0, 3, 1, 2))


# --------------------------------------------------------------------- main -
if __name__ == "__main__":
    key = jax.random.PRNGKey(0)
    kx, kp = jax.random.split(key)

    N, Cin, Cout, H, W = 2, 4, 8, 16, 16            # small synthetic shapes
    x = jax.random.normal(kx, (N, Cin, H, W), jnp.float32)
    params = init_params(kp, Cin, Cout)

    fwd = jax.jit(res_block_forward)
    out = jax.block_until_ready(fwd(x, params))

    assert out.shape == (N, Cout, H // 2, W // 2), out.shape

    ref = ref_forward(x, params)
    # tolerance accounts for bf16 MXU operands AND bf16 intermediate feature
    # maps (reference is f32 HIGHEST end to end)
    tol = 1e-1 if MXU_DTYPE == jnp.bfloat16 else 2e-3
    max_err = float(jnp.max(jnp.abs(out - ref)))
    assert max_err < tol, f"mismatch vs reference: {max_err}"

    print("KERNEL_OK")
</pallas_src>

<mosaic_0001>
module attributes {stable_mosaic.version = 11 : i64} {
  func.func @_conv1_kernel(%arg0: i32, %arg1: i32, %arg2: memref<4x1x8x9x128xbf16, #tpu.memory_space<vmem>>, %arg3: memref<4x1x1x9x128xbf16, #tpu.memory_space<vmem>>, %arg4: memref<4x256x128xbf16, #tpu.memory_space<vmem>>, %arg5: memref<128x128xbf16, #tpu.memory_space<vmem>>, %arg6: memref<2x128xf32, #tpu.memory_space<vmem>>, %arg7: memref<1x8x8x128xbf16, #tpu.memory_space<vmem>>, %arg8: memref<2x128xf32, #tpu.memory_space<vmem>>, %arg9: memref<2x9x9x128xbf16, #tpu.memory_space<vmem>>) attributes {dimension_semantics = [#tpu.dimension_semantics<arbitrary>, #tpu.dimension_semantics<arbitrary>], iteration_bounds = array<i64: 2, 1>, scalar_prefetch = 0 : i64, scratch_operands = 1 : i64, tpu.core_type = #tpu.core_type<tc>, window_params = [{transform_indices = @transform_0, window_bounds = array<i64: 4, 1, 8, 9, 128>}, {transform_indices = @transform_1, window_bounds = array<i64: 4, 1, 1, 9, 128>}, {pipeline_mode = #tpu.pipeline_mode<synchronous>, transform_indices = @transform_2, window_bounds = array<i64: 4, 256, 128>}, {pipeline_mode = #tpu.pipeline_mode<synchronous>, transform_indices = @transform_3, window_bounds = array<i64: 128, 128>}, {pipeline_mode = #tpu.pipeline_mode<synchronous>, transform_indices = @transform_4, window_bounds = array<i64: 2, 128>}, {transform_indices = @transform_5, window_bounds = array<i64: 1, 8, 8, 128>}, {pipeline_mode = #tpu.pipeline_mode<synchronous>, transform_indices = @transform_6, window_bounds = array<i64: 2, 128>}]} {
    %c0_i32 = arith.constant 0 : i32
    %0 = arith.cmpi eq, %arg0, %c0_i32 : i32
    %c0_i32_0 = arith.constant 0 : i32
    %1 = arith.cmpi eq, %arg1, %c0_i32_0 : i32
    %2 = arith.andi %0, %1 : i1
    %c1_i32 = arith.constant 1 : i32
    %3 = arith.cmpi eq, %arg0, %c1_i32 : i32
    %c0_i32_1 = arith.constant 0 : i32
    %4 = arith.cmpi eq, %arg1, %c0_i32_1 : i32
    %5 = arith.andi %3, %4 : i1
    %c0 = arith.constant 0 : index
    %c0_2 = arith.constant 0 : index
    %c0_3 = arith.constant 0 : index
    %c0_4 = arith.constant 0 : index
    %c0_5 = arith.constant 0 : index
    %6 = vector.load %arg2[%c0, %c0_2, %c0_3, %c0_4, %c0_5] : memref<4x1x8x9x128xbf16, #tpu.memory_space<vmem>>, vector<2x1x8x9x128xbf16>
    %7 = vector.shape_cast %6 : vector<2x1x8x9x128xbf16> to vector<2x8x9x128xbf16>
    %c0_6 = arith.constant 0 : index
    %c0_7 = arith.constant 0 : index
    %c0_8 = arith.constant 0 : index
    %c0_9 = arith.constant 0 : index
    %8 = vector.load %arg9[%c0_6, %c0_7, %c0_8, %c0_9] : memref<2x9x9x128xbf16, #tpu.memory_space<vmem>>, vector<2x8x9x128xbf16>
    tpu.vector_store %arg9[%c0_6, %c0_7, %c0_8, %c0_9], %7 {strides = array<i32>} : memref<2x9x9x128xbf16, #tpu.memory_space<vmem>>, vector<2x8x9x128xbf16>,
    %c0_10 = arith.constant 0 : index
    %c0_11 = arith.constant 0 : index
    %c0_12 = arith.constant 0 : index
    %c0_13 = arith.constant 0 : index
    %c0_14 = arith.constant 0 : index
    %9 = vector.load %arg3[%c0_10, %c0_11, %c0_12, %c0_13, %c0_14] : memref<4x1x1x9x128xbf16, #tpu.memory_space<vmem>>, vector<2x1x1x9x128xbf16>
    %10 = vector.shape_cast %9 : vector<2x1x1x9x128xbf16> to vector<2x1x9x128xbf16>
    %c0_15 = arith.constant 0 : index
    %c8 = arith.constant 8 : index
    %c0_16 = arith.constant 0 : index
    %c0_17 = arith.constant 0 : index
    %11 = vector.load %arg9[%c0_15, %c8, %c0_16, %c0_17] : memref<2x9x9x128xbf16, #tpu.memory_space<vmem>>, vector<2x1x9x128xbf16>
    tpu.vector_store %arg9[%c0_15, %c8, %c0_16, %c0_17], %10 {strides = array<i32>} : memref<2x9x9x128xbf16, #tpu.memory_space<vmem>>, vector<2x1x9x128xbf16>,
    %cst = arith.constant 0.000000e+00 : f32
    %12 = vector.broadcast %cst : f32 to vector<64x128xf32>
    %c0_18 = arith.constant 0 : index
    %c0_19 = arith.constant 0 : index
    %c0_20 = arith.constant 0 : index
    %c0_21 = arith.constant 0 : index
    %c0_22 = arith.constant 0 : index
    %13 = vector.load %arg2[%c0_18, %c0_19, %c0_20, %c0_21, %c0_22] : memref<4x1x8x9x128xbf16, #tpu.memory_space<vmem>>, vector<1x1x8x8x128xbf16>
    %14 = vector.shape_cast %13 : vector<1x1x8x8x128xbf16> to vector<8x8x128xbf16>
    %15 = vector.shape_cast %14 : vector<8x8x128xbf16> to vector<64x128xbf16>
    %c1 = arith.constant 1 : index
    %c0_23 = arith.constant 0 : index
    %c0_24 = arith.constant 0 : index
    %c0_25 = arith.constant 0 : index
    %c0_26 = arith.constant 0 : index
    %16 = vector.load %arg2[%c1, %c0_23, %c0_24, %c0_25, %c0_26] : memref<4x1x8x9x128xbf16, #tpu.memory_space<vmem>>, vector<1x1x8x8x128xbf16>
    %17 = vector.shape_cast %16 : vector<1x1x8x8x128xbf16> to vector<8x8x128xbf16>
    %18 = vector.shape_cast %17 : vector<8x8x128xbf16> to vector<64x128xbf16>
    %19 = tpu.concatenate %15, %18 in 1 : vector<64x128xbf16>, vector<64x128xbf16> -> vector<64x256xbf16>
    %c0_27 = arith.constant 0 : index
    %c0_28 = arith.constant 0 : index
    %c0_29 = arith.constant 0 : index
    %20 = vector.load %arg4[%c0_27, %c0_28, %c0_29] : memref<4x256x128xbf16, #tpu.memory_space<vmem>>, vector<1x256x128xbf16>
    %21 = vector.shape_cast %20 : vector<1x256x128xbf16> to vector<256x128xbf16>
    %cst_30 = arith.constant dense<0.000000e+00> : vector<64x128xf32>
    %22 = tpu.matmul %19, %21, %cst_30 {dimension_numbers = #tpu.dot_dimension_numbers<[1], [0], [0], [1], [0, 0, 1, 1], [], []>} : vector<64x256xbf16>, vector<256x128xbf16>, vector<64x128xf32> -> vector<64x128xf32>
    %23 = arith.addf %12, %22 : vector<64x128xf32>
    %c0_31 = arith.constant 0 : index
    %c0_32 = arith.constant 0 : index
    %c0_33 = arith.constant 0 : index
    %c1_34 = arith.constant 1 : index
    %c0_35 = arith.constant 0 : index
    %24 = vector.load %arg2[%c0_31, %c0_32, %c0_33, %c1_34, %c0_35] : memref<4x1x8x9x128xbf16, #tpu.memory_space<vmem>>, vector<1x1x8x8x128xbf16>
    %25 = vector.shape_cast %24 : vector<1x1x8x8x128xbf16> to vector<8x8x128xbf16>
    %26 = vector.shape_cast %25 : vector<8x8x128xbf16> to vector<64x128xbf16>
    %c2 = arith.constant 2 : index
    %c0_36 = arith.constant 0 : index
    %c0_37 = arith.constant 0 : index
    %c0_38 = arith.constant 0 : index
    %c0_39 = arith.constant 0 : index
    %27 = vector.load %arg2[%c2, %c0_36, %c0_37, %c0_38, %c0_39] : memref<4x1x8x9x128xbf16, #tpu.memory_space<vmem>>, vector<1x1x8x8x128xbf16>
    %28 = vector.shape_cast %27 : vector<1x1x8x8x128xbf16> to vector<8x8x128xbf16>
    %29 = vector.shape_cast %28 : vector<8x8x128xbf16> to vector<64x128xbf16>
    %30 = tpu.concatenate %26, %29 in 1 : vector<64x128xbf16>, vector<64x128xbf16> -> vector<64x256xbf16>
    %c1_40 = arith.constant 1 : index
    %c0_41 = arith.constant 0 : index
    %c0_42 = arith.constant 0 : index
    %31 = vector.load %arg4[%c1_40, %c0_41, %c0_42] : memref<4x256x128xbf16, #tpu.memory_space<vmem>>, vector<1x256x128xbf16>
    %32 = vector.shape_cast %31 : vector<1x256x128xbf16> to vector<256x128xbf16>
    %cst_43 = arith.constant dense<0.000000e+00> : vector<64x128xf32>
    %33 = tpu.matmul %30, %32, %cst_43 {dimension_numbers = #tpu.dot_dimension_numbers<[1], [0], [0], [1], [0, 0, 1, 1], [], []>} : vector<64x256xbf16>, vector<256x128xbf16>, vector<64x128xf32> -> vector<64x128xf32>
    %34 = arith.addf %23, %33 : vector<64x128xf32>
    %c3 = arith.constant 3 : index
    %c0_44 = arith.constant 0 : index
    %c0_45 = arith.constant 0 : index
    %c0_46 = arith.constant 0 : index
    %c0_47 = arith.constant 0 : index
    %35 = vector.load %arg2[%c3, %c0_44, %c0_45, %c0_46, %c0_47] : memref<4x1x8x9x128xbf16, #tpu.memory_space<vmem>>, vector<1x1x8x8x128xbf16>
    %36 = vector.shape_cast %35 : vector<1x1x8x8x128xbf16> to vector<8x8x128xbf16>
    %37 = vector.shape_cast %36 : vector<8x8x128xbf16> to vector<64x128xbf16>
    %c2_48 = arith.constant 2 : index
    %c0_49 = arith.constant 0 : index
    %c0_50 = arith.constant 0 : index
    %c1_51 = arith.constant 1 : index
    %c0_52 = arith.constant 0 : index
    %38 = vector.load %arg2[%c2_48, %c0_49, %c0_50, %c1_51, %c0_52] : memref<4x1x8x9x128xbf16, #tpu.memory_space<vmem>>, vector<1x1x8x8x128xbf16>
    %39 = vector.shape_cast %38 : vector<1x1x8x8x128xbf16> to vector<8x8x128xbf16>
    %40 = vector.shape_cast %39 : vector<8x8x128xbf16> to vector<64x128xbf16>
    %41 = tpu.concatenate %37, %40 in 1 : vector<64x128xbf16>, vector<64x128xbf16> -> vector<64x256xbf16>
    %c2_53 = arith.constant 2 : index
    %c0_54 = arith.constant 0 : index
    %c0_55 = arith.constant 0 : index
    %42 = vector.load %arg4[%c2_53, %c0_54, %c0_55] : memref<4x256x128xbf16, #tpu.memory_space<vmem>>, vector<1x256x128xbf16>
    %43 = vector.shape_cast %42 : vector<1x256x128xbf16> to vector<256x128xbf16>
    %cst_56 = arith.constant dense<0.000000e+00> : vector<64x128xf32>
    %44 = tpu.matmul %41, %43, %cst_56 {dimension_numbers = #tpu.dot_dimension_numbers<[1], [0], [0], [1], [0, 0, 1, 1], [], []>} : vector<64x256xbf16>, vector<256x128xbf16>, vector<64x128xf32> -> vector<64x128xf32>
    %45 = arith.addf %34, %44 : vector<64x128xf32>
    %c0_57 = arith.constant 0 : index
    %c1_58 = arith.constant 1 : index
    %c0_59 = arith.constant 0 : index
    %c0_60 = arith.constant 0 : index
    %46 = vector.load %arg9[%c0_57, %c1_58, %c0_59, %c0_60] : memref<2x9x9x128xbf16, #tpu.memory_space<vmem>>, vector<1x8x8x128xbf16>
    %47 = vector.shape_cast %46 : vector<1x8x8x128xbf16> to vector<8x8x128xbf16>
    %48 = vector.shape_cast %47 : vector<8x8x128xbf16> to vector<64x128xbf16>
    %c1_61 = arith.constant 1 : index
    %c1_62 = arith.constant 1 : index
    %c0_63 = arith.constant 0 : index
    %c0_64 = arith.constant 0 : index
    %49 = vector.load %arg9[%c1_61, %c1_62, %c0_63, %c0_64] : memref<2x9x9x128xbf16, #tpu.memory_space<vmem>>, vector<1x8x8x128xbf16>
    %50 = vector.shape_cast %49 : vector<1x8x8x128xbf16> to vector<8x8x128xbf16>
    %51 = vector.shape_cast %50 : vector<8x8x128xbf16> to vector<64x128xbf16>
    %52 = tpu.concatenate %48, %51 in 1 : vector<64x128xbf16>, vector<64x128xbf16> -> vector<64x256xbf16>
    %c3_65 = arith.constant 3 : index
    %c0_66 = arith.constant 0 : index
    %c0_67 = arith.constant 0 : index
    %53 = vector.load %arg4[%c3_65, %c0_66, %c0_67] : memref<4x256x128xbf16, #tpu.memory_space<vmem>>, vector<1x256x128xbf16>
    %54 = vector.shape_cast %53 : vector<1x256x128xbf16> to vector<256x128xbf16>
    %cst_68 = arith.constant dense<0.000000e+00> : vector<64x128xf32>
    %55 = tpu.matmul %52, %54, %cst_68 {dimension_numbers = #tpu.dot_dimension_numbers<[1], [0], [0], [1], [0, 0, 1, 1], [], []>} : vector<64x256xbf16>, vector<256x128xbf16>, vector<64x128xf32> -> vector<64x128xf32>
    %56 = arith.addf %45, %55 : vector<64x128xf32>
    %c0_69 = arith.constant 0 : index
    %c1_70 = arith.constant 1 : index
    %c1_71 = arith.constant 1 : index
    %c0_72 = arith.constant 0 : index
    %57 = vector.load %arg9[%c0_69, %c1_70, %c1_71, %c0_72] : memref<2x9x9x128xbf16, #tpu.memory_space<vmem>>, vector<1x8x8x128xbf16>
    %58 = vector.shape_cast %57 : vector<1x8x8x128xbf16> to vector<8x8x128xbf16>
    %59 = vector.shape_cast %58 : vector<8x8x128xbf16> to vector<64x128xbf16>
    %c0_73 = arith.constant 0 : index
    %c0_74 = arith.constant 0 : index
    %60 = vector.load %arg5[%c0_73, %c0_74] : memref<128x128xbf16, #tpu.memory_space<vmem>>, vector<128x128xbf16>
    %cst_75 = arith.constant dense<0.000000e+00> : vector<64x128xf32>
    %61 = tpu.matmul %59, %60, %cst_75 {dimension_numbers = #tpu.dot_dimension_numbers<[1], [0], [0], [1], [0, 0, 1, 1], [], []>} : vector<64x128xbf16>, vector<128x128xbf16>, vector<64x128xf32> -> vector<64x128xf32>
    %62 = arith.addf %56, %61 : vector<64x128xf32>
    %63 = vector.shape_cast %62 : vector<64x128xf32> to vector<1x8x8x128xf32>
    %64 = arith.truncf %63 : vector<1x8x8x128xf32> to vector<1x8x8x128xbf16>
    %c0_76 = arith.constant 0 : index
    %c0_77 = arith.constant 0 : index
    %c0_78 = arith.constant 0 : index
    %c0_79 = arith.constant 0 : index
    %65 = vector.load %arg7[%c0_76, %c0_77, %c0_78, %c0_79] : memref<1x8x8x128xbf16, #tpu.memory_space<vmem>>, vector<1x8x8x128xbf16>
    tpu.vector_store %arg7[%c0_76, %c0_77, %c0_78, %c0_79], %64 {strides = array<i32>} : memref<1x8x8x128xbf16, #tpu.memory_space<vmem>>, vector<1x8x8x128xbf16>,
    %cst_80 = arith.constant dense<0.000000e+00> : vector<128xf32>
    %66 = vector.multi_reduction <add>, %62, %cst_80 [0] : vector<64x128xf32> to vector<128xf32>
    %67 = vector.shape_cast %66 : vector<128xf32> to vector<1x128xf32>
    %68 = arith.mulf %62, %62 : vector<64x128xf32>
    %cst_81 = arith.constant dense<0.000000e+00> : vector<128xf32>
    %69 = vector.multi_reduction <add>, %68, %cst_81 [0] : vector<64x128xf32> to vector<128xf32>
    %70 = vector.shape_cast %69 : vector<128xf32> to vector<1x128xf32>
    %71 = tpu.concatenate %67, %70 in 0 : vector<1x128xf32>, vector<1x128xf32> -> vector<2x128xf32>
    %72 = arith.extui %2 : i1 to i32
    %c0_i32_82 = arith.constant 0 : i32
    %73 = arith.cmpi ne, %72, %c0_i32_82 : i32
    scf.if %73 {
      %c0_85 = arith.constant 0 : index
      %c0_86 = arith.constant 0 : index
      %79 = vector.load %arg8[%c0_85, %c0_86] : memref<2x128xf32, #tpu.memory_space<vmem>>, vector<2x128xf32>
      tpu.vector_store %arg8[%c0_85, %c0_86], %71 {strides = array<i32>} : memref<2x128xf32, #tpu.memory_space<vmem>>, vector<2x128xf32>,
    } else {
    }
    %true = arith.constant true
    %74 = arith.xori %2, %true : i1
    %75 = arith.extui %74 : i1 to i32
    %c0_i32_83 = arith.constant 0 : i32
    %76 = arith.cmpi ne, %75, %c0_i32_83 : i32
    scf.if %76 {
      %c0_85 = arith.constant 0 : index
      %c0_86 = arith.constant 0 : index
      %79 = vector.load %arg8[%c0_85, %c0_86] : memref<2x128xf32, #tpu.memory_space<vmem>>, vector<2x128xf32>
      %80 = arith.addf %79, %71 : vector<2x128xf32>
      %c0_87 = arith.constant 0 : index
      %c0_88 = arith.constant 0 : index
      %81 = vector.load %arg8[%c0_87, %c0_88] : memref<2x128xf32, #tpu.memory_space<vmem>>, vector<2x128xf32>
      tpu.vector_store %arg8[%c0_87, %c0_88], %80 {strides = array<i32>} : memref<2x128xf32, #tpu.memory_space<vmem>>, vector<2x128xf32>,
    } else {
    }
    %77 = arith.extui %5 : i1 to i32
    %c0_i32_84 = arith.constant 0 : i32
    %78 = arith.cmpi ne, %77, %c0_i32_84 : i32
    scf.if %78 {
      %c0_85 = arith.constant 0 : index
      %c0_86 = arith.constant 0 : index
      %79 = vector.load %arg8[%c0_85, %c0_86] : memref<2x128xf32, #tpu.memory_space<vmem>>, vector<1x128xf32>
      %cst_87 = arith.constant 7.812500e-03 : f32
      %80 = vector.broadcast %cst_87 : f32 to vector<1x128xf32>
      %81 = arith.mulf %79, %80 : vector<1x128xf32>
      %c1_88 = arith.constant 1 : index
      %c0_89 = arith.constant 0 : index
      %82 = vector.load %arg8[%c1_88, %c0_89] : memref<2x128xf32, #tpu.memory_space<vmem>>, vector<1x128xf32>
      %cst_90 = arith.constant 7.812500e-03 : f32
      %83 = vector.broadcast %cst_90 : f32 to vector<1x128xf32>
      %84 = arith.mulf %82, %83 : vector<1x128xf32>
      %85 = arith.mulf %81, %81 : vector<1x128xf32>
      %86 = arith.subf %84, %85 : vector<1x128xf32>
      %c0_91 = arith.constant 0 : index
      %c0_92 = arith.constant 0 : index
      %87 = vector.load %arg6[%c0_91, %c0_92] : memref<2x128xf32, #tpu.memory_space<vmem>>, vector<1x128xf32>
      %cst_93 = arith.constant 9.99999974E-6 : f32
      %88 = vector.broadcast %cst_93 : f32 to vector<1x128xf32>
      %89 = arith.addf %86, %88 : vector<1x128xf32>
      %90 = math.rsqrt %89 : vector<1x128xf32>
      %91 = arith.mulf %87, %90 : vector<1x128xf32>
      %c1_94 = arith.constant 1 : index
      %c0_95 = arith.constant 0 : index
      %92 = vector.load %arg6[%c1_94, %c0_95] : memref<2x128xf32, #tpu.memory_space<vmem>>, vector<1x128xf32>
      %93 = arith.mulf %81, %91 : vector<1x128xf32>
      %94 = arith.subf %92, %93 : vector<1x128xf32>
      %c1_96 = arith.constant 1 : index
      %c0_97 = arith.constant 0 : index
      %95 = vector.load %arg8[%c1_96, %c0_97] : memref<2x128xf32, #tpu.memory_space<vmem>>, vector<1x128xf32>
      tpu.vector_store %arg8[%c1_96, %c0_97], %94 {strides = array<i32>} : memref<2x128xf32, #tpu.memory_space<vmem>>, vector<1x128xf32>,
      %c0_98 = arith.constant 0 : index
      %c0_99 = arith.constant 0 : index
      %96 = vector.load %arg8[%c0_98, %c0_99] : memref<2x128xf32, #tpu.memory_space<vmem>>, vector<1x128xf32>
      tpu.vector_store %arg8[%c0_98, %c0_99], %91 {strides = array<i32>} : memref<2x128xf32, #tpu.memory_space<vmem>>, vector<1x128xf32>,
    } else {
    }
    return
  }
  func.func @transform_0(%arg0: i32, %arg1: i32) -> (i32, i32, i32, i32, i32) {
    %c0_i32 = arith.constant 0 : i32
    %c0_i32_0 = arith.constant 0 : i32
    %c0_i32_1 = arith.constant 0 : i32
    %c0_i32_2 = arith.constant 0 : i32
    return %c0_i32, %arg0, %arg1, %c0_i32_0, %c0_i32_1 : i32, i32, i32, i32, i32
  }
  func.func @transform_1(%arg0: i32, %arg1: i32) -> (i32, i32, i32, i32, i32) {
    %c1_i32 = arith.constant 1 : i32
    %0 = arith.addi %arg1, %c1_i32 : i32
    %c8_i32 = arith.constant 8 : i32
    %1 = arith.muli %0, %c8_i32 : i32
    %c0_i32 = arith.constant 0 : i32
    %c0_i32_0 = arith.constant 0 : i32
    %c0_i32_1 = arith.constant 0 : i32
    %c0_i32_2 = arith.constant 0 : i32
    return %c0_i32, %arg0, %1, %c0_i32_0, %c0_i32_1 : i32, i32, i32, i32, i32
  }
  func.func @transform_2(%arg0: i32, %arg1: i32) -> (i32, i32, i32) {
    %c0_i32 = arith.constant 0 : i32
    %c0_i32_0 = arith.constant 0 : i32
    %c0_i32_1 = arith.constant 0 : i32
    %c0_i32_2 = arith.constant 0 : i32
    return %c0_i32, %c0_i32_0, %c0_i32_1 : i32, i32, i32
  }
  func.func @transform_3(%arg0: i32, %arg1: i32) -> (i32, i32) {
    %c0_i32 = arith.constant 0 : i32
    %c0_i32_0 = arith.constant 0 : i32
    %c0_i32_1 = arith.constant 0 : i32
    return %c0_i32, %c0_i32_0 : i32, i32
  }
  func.func @transform_4(%arg0: i32, %arg1: i32) -> (i32, i32) {
    %c0_i32 = arith.constant 0 : i32
    %c0_i32_0 = arith.constant 0 : i32
    %c0_i32_1 = arith.constant 0 : i32
    return %c0_i32, %c0_i32_0 : i32, i32
  }
  func.func @transform_5(%arg0: i32, %arg1: i32) -> (i32, i32, i32, i32) {
    %c0_i32 = arith.constant 0 : i32
    %c0_i32_0 = arith.constant 0 : i32
    %c0_i32_1 = arith.constant 0 : i32
    return %arg0, %arg1, %c0_i32, %c0_i32_0 : i32, i32, i32, i32
  }
  func.func @transform_6(%arg0: i32, %arg1: i32) -> (i32, i32) {
    %c0_i32 = arith.constant 0 : i32
    %c0_i32_0 = arith.constant 0 : i32
    %c0_i32_1 = arith.constant 0 : i32
    return %c0_i32, %c0_i32_0 : i32, i32
  }
}

module attributes {stable_mosaic.version = 11 : i64} {
  func.func @_conv2_ds_kernel(%arg0: i32, %arg1: i32, %arg2: memref<1x8x8x128xbf16, #tpu.memory_space<vmem>>, %arg3: memref<1x1x8x128xbf16, #tpu.memory_space<vmem>>, %arg4: memref<1x1x8x128xbf16, #tpu.memory_space<vmem>>, %arg5: memref<2x128xf32, #tpu.memory_space<vmem>>, %arg6: memref<4x256x128xbf16, #tpu.memory_space<vmem>>, %arg7: memref<128x128xbf16, #tpu.memory_space<vmem>>, %arg8: memref<128x128xbf16, #tpu.memory_space<vmem>>, %arg9: memref<1x8x8x128xbf16, #tpu.memory_space<vmem>>, %arg10: memref<2x128xf32, #tpu.memory_space<vmem>>, %arg11: memref<2x128xf32, #tpu.memory_space<vmem>>, %arg12: memref<1x8x8x128xbf16, #tpu.memory_space<vmem>>, %arg13: memref<1x8x8x128xbf16, #tpu.memory_space<vmem>>, %arg14: memref<2x128xf32, #tpu.memory_space<vmem>>, %arg15: memref<2x128xf32, #tpu.memory_space<vmem>>, %arg16: memref<10x10x128xbf16, #tpu.memory_space<vmem>>) attributes {dimension_semantics = [#tpu.dimension_semantics<arbitrary>, #tpu.dimension_semantics<arbitrary>], iteration_bounds = array<i64: 2, 1>, scalar_prefetch = 0 : i64, scratch_operands = 1 : i64, tpu.core_type = #tpu.core_type<tc>, window_params = [{transform_indices = @transform_0, window_bounds = array<i64: 1, 8, 8, 128>}, {transform_indices = @transform_1, window_bounds = array<i64: 1, 1, 8, 128>}, {transform_indices = @transform_2, window_bounds = array<i64: 1, 1, 8, 128>}, {pipeline_mode = #tpu.pipeline_mode<synchronous>, transform_indices = @transform_3, window_bounds = array<i64: 2, 128>}, {pipeline_mode = #tpu.pipeline_mode<synchronous>, transform_indices = @transform_4, window_bounds = array<i64: 4, 256, 128>}, {pipeline_mode = #tpu.pipeline_mode<synchronous>, transform_indices = @transform_5, window_bounds = array<i64: 128, 128>}, {pipeline_mode = #tpu.pipeline_mode<synchronous>, transform_indices = @transform_6, window_bounds = array<i64: 128, 128>}, {transform_indices = @transform_7, window_bounds = array<i64: 1, 8, 8, 128>}, {pipeline_mode = #tpu.pipeline_mode<synchronous>, transform_indices = @transform_8, window_bounds = array<i64: 2, 128>}, {pipeline_mode = #tpu.pipeline_mode<synchronous>, transform_indices = @transform_9, window_bounds = array<i64: 2, 128>}, {transform_indices = @transform_10, window_bounds = array<i64: 1, 8, 8, 128>}, {transform_indices = @transform_11, window_bounds = array<i64: 1, 8, 8, 128>}, {pipeline_mode = #tpu.pipeline_mode<synchronous>, transform_indices = @transform_12, window_bounds = array<i64: 2, 128>}, {pipeline_mode = #tpu.pipeline_mode<synchronous>, transform_indices = @transform_13, window_bounds = array<i64: 2, 128>}]} {
    %c0_i32 = arith.constant 0 : i32
    %0 = arith.cmpi eq, %arg0, %c0_i32 : i32
    %c0_i32_0 = arith.constant 0 : i32
    %1 = arith.cmpi eq, %arg1, %c0_i32_0 : i32
    %2 = arith.andi %0, %1 : i1
    %c1_i32 = arith.constant 1 : i32
    %3 = arith.cmpi eq, %arg0, %c1_i32 : i32
    %c0_i32_1 = arith.constant 0 : i32
    %4 = arith.cmpi eq, %arg1, %c0_i32_1 : i32
    %5 = arith.andi %3, %4 : i1
    %6 = arith.extui %2 : i1 to i32
    %c0_i32_2 = arith.constant 0 : i32
    %7 = arith.cmpi ne, %6, %c0_i32_2 : i32
    scf.if %7 {
      %cst_97 = arith.constant 0.000000e+00 : bf16
      %123 = vector.broadcast %cst_97 : bf16 to vector<10x10x128xbf16>
      %c0_98 = arith.constant 0 : index
      %c0_99 = arith.constant 0 : index
      %c0_100 = arith.constant 0 : index
      %124 = vector.load %arg16[%c0_98, %c0_99, %c0_100] : memref<10x10x128xbf16, #tpu.memory_space<vmem>>, vector<10x10x128xbf16>
      tpu.vector_store %arg16[%c0_98, %c0_99, %c0_100], %123 {strides = array<i32>} : memref<10x10x128xbf16, #tpu.memory_space<vmem>>, vector<10x10x128xbf16>,
    } else {
    }
    %c0 = arith.constant 0 : index
    %c0_3 = arith.constant 0 : index
    %8 = vector.load %arg5[%c0, %c0_3] : memref<2x128xf32, #tpu.memory_space<vmem>>, vector<1x128xf32>
    %c1 = arith.constant 1 : index
    %c0_4 = arith.constant 0 : index
    %9 = vector.load %arg5[%c1, %c0_4] : memref<2x128xf32, #tpu.memory_space<vmem>>, vector<1x128xf32>
    %c0_i32_5 = arith.constant 0 : i32
    %10 = arith.cmpi sgt, %arg1, %c0_i32_5 : i32
    %cst = arith.constant 1.000000e+00 : f32
    %cst_6 = arith.constant 0.000000e+00 : f32
    %11 = arith.select %10, %cst, %cst_6 : f32
    %c0_i32_7 = arith.constant 0 : i32
    %12 = arith.cmpi slt, %arg1, %c0_i32_7 : i32
    %cst_8 = arith.constant 1.000000e+00 : f32
    %cst_9 = arith.constant 0.000000e+00 : f32
    %13 = arith.select %12, %cst_8, %cst_9 : f32
    %c0_10 = arith.constant 0 : index
    %c0_11 = arith.constant 0 : index
    %c0_12 = arith.constant 0 : index
    %c0_13 = arith.constant 0 : index
    %14 = vector.load %arg2[%c0_10, %c0_11, %c0_12, %c0_13] : memref<1x8x8x128xbf16, #tpu.memory_space<vmem>>, vector<1x8x8x128xbf16>
    %15 = vector.shape_cast %14 : vector<1x8x8x128xbf16> to vector<8x8x128xbf16>
    %16 = arith.extf %15 : vector<8x8x128xbf16> to vector<8x8x128xf32>
    %17 = vector.shape_cast %8 : vector<1x128xf32> to vector<1x1x128xf32>
    %18 = vector.broadcast %17 : vector<1x1x128xf32> to vector<8x8x128xf32>
    %19 = arith.mulf %18, %16 : vector<8x8x128xf32>
    %20 = vector.shape_cast %9 : vector<1x128xf32> to vector<1x1x128xf32>
    %21 = vector.broadcast %20 : vector<1x1x128xf32> to vector<8x8x128xf32>
    %22 = arith.addf %19, %21 : vector<8x8x128xf32>
    %23 = arith.truncf %22 : vector<8x8x128xf32> to vector<8x8x128xbf16>
    %c1_14 = arith.constant 1 : index
    %c1_15 = arith.constant 1 : index
    %c0_16 = arith.constant 0 : index
    %24 = vector.load %arg16[%c1_14, %c1_15, %c0_16] : memref<10x10x128xbf16, #tpu.memory_space<vmem>>, vector<8x8x128xbf16>
    tpu.vector_store %arg16[%c1_14, %c1_15, %c0_16], %23 {strides = array<i32>} : memref<10x10x128xbf16, #tpu.memory_space<vmem>>, vector<8x8x128xbf16>,
    %c0_17 = arith.constant 0 : index
    %c0_18 = arith.constant 0 : index
    %c0_19 = arith.constant 0 : index
    %c0_20 = arith.constant 0 : index
    %25 = vector.load %arg3[%c0_17, %c0_18, %c0_19, %c0_20] : memref<1x1x8x128xbf16, #tpu.memory_space<vmem>>, vector<1x1x8x128xbf16>
    %26 = vector.shape_cast %25 : vector<1x1x8x128xbf16> to vector<1x8x128xbf16>
    %27 = arith.extf %26 : vector<1x8x128xbf16> to vector<1x8x128xf32>
    %28 = vector.shape_cast %8 : vector<1x128xf32> to vector<1x1x128xf32>
    %29 = vector.broadcast %28 : vector<1x1x128xf32> to vector<1x8x128xf32>
    %30 = arith.mulf %29, %27 : vector<1x8x128xf32>
    %31 = vector.shape_cast %9 : vector<1x128xf32> to vector<1x1x128xf32>
    %32 = vector.broadcast %31 : vector<1x1x128xf32> to vector<1x8x128xf32>
    %33 = arith.addf %30, %32 : vector<1x8x128xf32>
    %34 = vector.broadcast %11 : f32 to vector<1x8x128xf32>
    %35 = arith.mulf %34, %33 : vector<1x8x128xf32>
    %36 = arith.truncf %35 : vector<1x8x128xf32> to vector<1x8x128xbf16>
    %c0_21 = arith.constant 0 : index
    %c1_22 = arith.constant 1 : index
    %c0_23 = arith.constant 0 : index
    %37 = vector.load %arg16[%c0_21, %c1_22, %c0_23] : memref<10x10x128xbf16, #tpu.memory_space<vmem>>, vector<1x8x128xbf16>
    tpu.vector_store %arg16[%c0_21, %c1_22, %c0_23], %36 {strides = array<i32>} : memref<10x10x128xbf16, #tpu.memory_space<vmem>>, vector<1x8x128xbf16>,
    %c0_24 = arith.constant 0 : index
    %c0_25 = arith.constant 0 : index
    %c0_26 = arith.constant 0 : index
    %c0_27 = arith.constant 0 : index
    %38 = vector.load %arg4[%c0_24, %c0_25, %c0_26, %c0_27] : memref<1x1x8x128xbf16, #tpu.memory_space<vmem>>, vector<1x1x8x128xbf16>
    %39 = vector.shape_cast %38 : vector<1x1x8x128xbf16> to vector<1x8x128xbf16>
    %40 = arith.extf %39 : vector<1x8x128xbf16> to vector<1x8x128xf32>
    %41 = vector.shape_cast %8 : vector<1x128xf32> to vector<1x1x128xf32>
    %42 = vector.broadcast %41 : vector<1x1x128xf32> to vector<1x8x128xf32>
    %43 = arith.mulf %42, %40 : vector<1x8x128xf32>
    %44 = vector.shape_cast %9 : vector<1x128xf32> to vector<1x1x128xf32>
    %45 = vector.broadcast %44 : vector<1x1x128xf32> to vector<1x8x128xf32>
    %46 = arith.addf %43, %45 : vector<1x8x128xf32>
    %47 = vector.broadcast %13 : f32 to vector<1x8x128xf32>
    %48 = arith.mulf %47, %46 : vector<1x8x128xf32>
    %49 = arith.truncf %48 : vector<1x8x128xf32> to vector<1x8x128xbf16>
    %c9 = arith.constant 9 : index
    %c1_28 = arith.constant 1 : index
    %c0_29 = arith.constant 0 : index
    %50 = vector.load %arg16[%c9, %c1_28, %c0_29] : memref<10x10x128xbf16, #tpu.memory_space<vmem>>, vector<1x8x128xbf16>
    tpu.vector_store %arg16[%c9, %c1_28, %c0_29], %49 {strides = array<i32>} : memref<10x10x128xbf16, #tpu.memory_space<vmem>>, vector<1x8x128xbf16>,
    %cst_30 = arith.constant 0.000000e+00 : f32
    %51 = vector.broadcast %cst_30 : f32 to vector<64x128xf32>
    %c0_31 = arith.constant 0 : index
    %c0_32 = arith.constant 0 : index
    %c0_33 = arith.constant 0 : index
    %52 = vector.load %arg16[%c0_31, %c0_32, %c0_33] : memref<10x10x128xbf16, #tpu.memory_space<vmem>>, vector<8x8x128xbf16>
    %53 = vector.shape_cast %52 : vector<8x8x128xbf16> to vector<64x128xbf16>
    %c0_34 = arith.constant 0 : index
    %c1_35 = arith.constant 1 : index
    %c0_36 = arith.constant 0 : index
    %54 = vector.load %arg16[%c0_34, %c1_35, %c0_36] : memref<10x10x128xbf16, #tpu.memory_space<vmem>>, vector<8x8x128xbf16>
    %55 = vector.shape_cast %54 : vector<8x8x128xbf16> to vector<64x128xbf16>
    %56 = tpu.concatenate %53, %55 in 1 : vector<64x128xbf16>, vector<64x128xbf16> -> vector<64x256xbf16>
    %c0_37 = arith.constant 0 : index
    %c0_38 = arith.constant 0 : index
    %c0_39 = arith.constant 0 : index
    %57 = vector.load %arg6[%c0_37, %c0_38, %c0_39] : memref<4x256x128xbf16, #tpu.memory_space<vmem>>, vector<1x256x128xbf16>
    %58 = vector.shape_cast %57 : vector<1x256x128xbf16> to vector<256x128xbf16>
    %cst_40 = arith.constant dense<0.000000e+00> : vector<64x128xf32>
    %59 = tpu.matmul %56, %58, %cst_40 {dimension_numbers = #tpu.dot_dimension_numbers<[1], [0], [0], [1], [0, 0, 1, 1], [], []>} : vector<64x256xbf16>, vector<256x128xbf16>, vector<64x128xf32> -> vector<64x128xf32>
    %60 = arith.addf %51, %59 : vector<64x128xf32>
    %c0_41 = arith.constant 0 : index
    %c2 = arith.constant 2 : index
    %c0_42 = arith.constant 0 : index
    %61 = vector.load %arg16[%c0_41, %c2, %c0_42] : memref<10x10x128xbf16, #tpu.memory_space<vmem>>, vector<8x8x128xbf16>
    %62 = vector.shape_cast %61 : vector<8x8x128xbf16> to vector<64x128xbf16>
    %c1_43 = arith.constant 1 : index
    %c0_44 = arith.constant 0 : index
    %c0_45 = arith.constant 0 : index
    %63 = vector.load %arg16[%c1_43, %c0_44, %c0_45] : memref<10x10x128xbf16, #tpu.memory_space<vmem>>, vector<8x8x128xbf16>
    %64 = vector.shape_cast %63 : vector<8x8x128xbf16> to vector<64x128xbf16>
    %65 = tpu.concatenate %62, %64 in 1 : vector<64x128xbf16>, vector<64x128xbf16> -> vector<64x256xbf16>
    %c1_46 = arith.constant 1 : index
    %c0_47 = arith.constant 0 : index
    %c0_48 = arith.constant 0 : index
    %66 = vector.load %arg6[%c1_46, %c0_47, %c0_48] : memref<4x256x128xbf16, #tpu.memory_space<vmem>>, vector<1x256x128xbf16>
    %67 = vector.shape_cast %66 : vector<1x256x128xbf16> to vector<256x128xbf16>
    %cst_49 = arith.constant dense<0.000000e+00> : vector<64x128xf32>
    %68 = tpu.matmul %65, %67, %cst_49 {dimension_numbers = #tpu.dot_dimension_numbers<[1], [0], [0], [1], [0, 0, 1, 1], [], []>} : vector<64x256xbf16>, vector<256x128xbf16>, vector<64x128xf32> -> vector<64x128xf32>
    %69 = arith.addf %60, %68 : vector<64x128xf32>
    %c1_50 = arith.constant 1 : index
    %c1_51 = arith.constant 1 : index
    %c0_52 = arith.constant 0 : index
    %70 = vector.load %arg16[%c1_50, %c1_51, %c0_52] : memref<10x10x128xbf16, #tpu.memory_space<vmem>>, vector<8x8x128xbf16>
    %71 = vector.shape_cast %70 : vector<8x8x128xbf16> to vector<64x128xbf16>
    %c1_53 = arith.constant 1 : index
    %c2_54 = arith.constant 2 : index
    %c0_55 = arith.constant 0 : index
    %72 = vector.load %arg16[%c1_53, %c2_54, %c0_55] : memref<10x10x128xbf16, #tpu.memory_space<vmem>>, vector<8x8x128xbf16>
    %73 = vector.shape_cast %72 : vector<8x8x128xbf16> to vector<64x128xbf16>
    %74 = tpu.concatenate %71, %73 in 1 : vector<64x128xbf16>, vector<64x128xbf16> -> vector<64x256xbf16>
    %c2_56 = arith.constant 2 : index
    %c0_57 = arith.constant 0 : index
    %c0_58 = arith.constant 0 : index
    %75 = vector.load %arg6[%c2_56, %c0_57, %c0_58] : memref<4x256x128xbf16, #tpu.memory_space<vmem>>, vector<1x256x128xbf16>
    %76 = vector.shape_cast %75 : vector<1x256x128xbf16> to vector<256x128xbf16>
    %cst_59 = arith.constant dense<0.000000e+00> : vector<64x128xf32>
    %77 = tpu.matmul %74, %76, %cst_59 {dimension_numbers = #tpu.dot_dimension_numbers<[1], [0], [0], [1], [0, 0, 1, 1], [], []>} : vector<64x256xbf16>, vector<256x128xbf16>, vector<64x128xf32> -> vector<64x128xf32>
    %78 = arith.addf %69, %77 : vector<64x128xf32>
    %c2_60 = arith.constant 2 : index
    %c0_61 = arith.constant 0 : index
    %c0_62 = arith.constant 0 : index
    %79 = vector.load %arg16[%c2_60, %c0_61, %c0_62] : memref<10x10x128xbf16, #tpu.memory_space<vmem>>, vector<8x8x128xbf16>
    %80 = vector.shape_cast %79 : vector<8x8x128xbf16> to vector<64x128xbf16>
    %c2_63 = arith.constant 2 : index
    %c1_64 = arith.constant 1 : index
    %c0_65 = arith.constant 0 : index
    %81 = vector.load %arg16[%c2_63, %c1_64, %c0_65] : memref<10x10x128xbf16, #tpu.memory_space<vmem>>, vector<8x8x128xbf16>
    %82 = vector.shape_cast %81 : vector<8x8x128xbf16> to vector<64x128xbf16>
    %83 = tpu.concatenate %80, %82 in 1 : vector<64x128xbf16>, vector<64x128xbf16> -> vector<64x256xbf16>
    %c3 = arith.constant 3 : index
    %c0_66 = arith.constant 0 : index
    %c0_67 = arith.constant 0 : index
    %84 = vector.load %arg6[%c3, %c0_66, %c0_67] : memref<4x256x128xbf16, #tpu.memory_space<vmem>>, vector<1x256x128xbf16>
    %85 = vector.shape_cast %84 : vector<1x256x128xbf16> to vector<256x128xbf16>
    %cst_68 = arith.constant dense<0.000000e+00> : vector<64x128xf32>
    %86 = tpu.matmul %83, %85, %cst_68 {dimension_numbers = #tpu.dot_dimension_numbers<[1], [0], [0], [1], [0, 0, 1, 1], [], []>} : vector<64x256xbf16>, vector<256x128xbf16>, vector<64x128xf32> -> vector<64x128xf32>
    %87 = arith.addf %78, %86 : vector<64x128xf32>
    %c2_69 = arith.constant 2 : index
    %c2_70 = arith.constant 2 : index
    %c0_71 = arith.constant 0 : index
    %88 = vector.load %arg16[%c2_69, %c2_70, %c0_71] : memref<10x10x128xbf16, #tpu.memory_space<vmem>>, vector<8x8x128xbf16>
    %89 = vector.shape_cast %88 : vector<8x8x128xbf16> to vector<64x128xbf16>
    %c0_72 = arith.constant 0 : index
    %c0_73 = arith.constant 0 : index
    %90 = vector.load %arg7[%c0_72, %c0_73] : memref<128x128xbf16, #tpu.memory_space<vmem>>, vector<128x128xbf16>
    %cst_74 = arith.constant dense<0.000000e+00> : vector<64x128xf32>
    %91 = tpu.matmul %89, %90, %cst_74 {dimension_numbers = #tpu.dot_dimension_numbers<[1], [0], [0], [1], [0, 0, 1, 1], [], []>} : vector<64x128xbf16>, vector<128x128xbf16>, vector<64x128xf32> -> vector<64x128xf32>
    %92 = arith.addf %87, %91 : vector<64x128xf32>
    %c0_75 = arith.constant 0 : index
    %c0_76 = arith.constant 0 : index
    %c0_77 = arith.constant 0 : index
    %c0_78 = arith.constant 0 : index
    %93 = vector.load %arg9[%c0_75, %c0_76, %c0_77, %c0_78] : memref<1x8x8x128xbf16, #tpu.memory_space<vmem>>, vector<1x8x8x128xbf16>
    %94 = vector.shape_cast %93 : vector<1x8x8x128xbf16> to vector<8x8x128xbf16>
    %95 = vector.shape_cast %94 : vector<8x8x128xbf16> to vector<64x128xbf16>
    %c0_79 = arith.constant 0 : index
    %c0_80 = arith.constant 0 : index
    %96 = vector.load %arg8[%c0_79, %c0_80] : memref<128x128xbf16, #tpu.memory_space<vmem>>, vector<128x128xbf16>
    %cst_81 = arith.constant dense<0.000000e+00> : vector<64x128xf32>
    %97 = tpu.matmul %95, %96, %cst_81 {dimension_numbers = #tpu.dot_dimension_numbers<[1], [0], [0], [1], [0, 0, 1, 1], [], []>} : vector<64x128xbf16>, vector<128x128xbf16>, vector<64x128xf32> -> vector<64x128xf32>
    %98 = vector.shape_cast %92 : vector<64x128xf32> to vector<1x8x8x128xf32>
    %99 = arith.truncf %98 : vector<1x8x8x128xf32> to vector<1x8x8x128xbf16>
    %c0_82 = arith.constant 0 : index
    %c0_83 = arith.constant 0 : index
    %c0_84 = arith.constant 0 : index
    %c0_85 = arith.constant 0 : index
    %100 = vector.load %arg12[%c0_82, %c0_83, %c0_84, %c0_85] : memref<1x8x8x128xbf16, #tpu.memory_space<vmem>>, vector<1x8x8x128xbf16>
    tpu.vector_store %arg12[%c0_82, %c0_83, %c0_84, %c0_85], %99 {strides = array<i32>} : memref<1x8x8x128xbf16, #tpu.memory_space<vmem>>, vector<1x8x8x128xbf16>,
    %101 = vector.shape_cast %97 : vector<64x128xf32> to vector<1x8x8x128xf32>
    %102 = arith.truncf %101 : vector<1x8x8x128xf32> to vector<1x8x8x128xbf16>
    %c0_86 = arith.constant 0 : index
    %c0_87 = arith.constant 0 : index
    %c0_88 = arith.constant 0 : index
    %c0_89 = arith.constant 0 : index
    %103 = vector.load %arg13[%c0_86, %c0_87, %c0_88, %c0_89] : memref<1x8x8x128xbf16, #tpu.memory_space<vmem>>, vector<1x8x8x128xbf16>
    tpu.vector_store %arg13[%c0_86, %c0_87, %c0_88, %c0_89], %102 {strides = array<i32>} : memref<1x8x8x128xbf16, #tpu.memory_space<vmem>>, vector<1x8x8x128xbf16>,
    %cst_90 = arith.constant dense<0.000000e+00> : vector<128xf32>
    %104 = vector.multi_reduction <add>, %92, %cst_90 [0] : vector<64x128xf32> to vector<128xf32>
    %105 = vector.shape_cast %104 : vector<128xf32> to vector<1x128xf32>
    %106 = arith.mulf %92, %92 : vector<64x128xf32>
    %cst_91 = arith.constant dense<0.000000e+00> : vector<128xf32>
    %107 = vector.multi_reduction <add>, %106, %cst_91 [0] : vector<64x128xf32> to vector<128xf32>
    %108 = vector.shape_cast %107 : vector<128xf32> to vector<1x128xf32>
    %109 = tpu.concatenate %105, %108 in 0 : vector<1x128xf32>, vector<1x128xf32> -> vector<2x128xf32>
    %cst_92 = arith.constant dense<0.000000e+00> : vector<128xf32>
    %110 = vector.multi_reduction <add>, %97, %cst_92 [0] : vector<64x128xf32> to vector<128xf32>
    %111 = vector.shape_cast %110 : vector<128xf32> to vector<1x128xf32>
    %112 = arith.mulf %97, %97 : vector<64x128xf32>
    %cst_93 = arith.constant dense<0.000000e+00> : vector<128xf32>
    %113 = vector.multi_reduction <add>, %112, %cst_93 [0] : vector<64x128xf32> to vector<128xf32>
    %114 = vector.shape_cast %113 : vector<128xf32> to vector<1x128xf32>
    %115 = tpu.concatenate %111, %114 in 0 : vector<1x128xf32>, vector<1x128xf32> -> vector<2x128xf32>
    %116 = arith.extui %2 : i1 to i32
    %c0_i32_94 = arith.constant 0 : i32
    %117 = arith.cmpi ne, %116, %c0_i32_94 : i32
    scf.if %117 {
      %c0_97 = arith.constant 0 : index
      %c0_98 = arith.constant 0 : index
      %123 = vector.load %arg14[%c0_97, %c0_98] : memref<2x128xf32, #tpu.memory_space<vmem>>, vector<2x128xf32>
      tpu.vector_store %arg14[%c0_97, %c0_98], %109 {strides = array<i32>} : memref<2x128xf32, #tpu.memory_space<vmem>>, vector<2x128xf32>,
      %c0_99 = arith.constant 0 : index
      %c0_100 = arith.constant 0 : index
      %124 = vector.load %arg15[%c0_99, %c0_100] : memref<2x128xf32, #tpu.memory_space<vmem>>, vector<2x128xf32>
      tpu.vector_store %arg15[%c0_99, %c0_100], %115 {strides = array<i32>} : memref<2x128xf32, #tpu.memory_space<vmem>>, vector<2x128xf32>,
    } else {
    }
    %true = arith.constant true
    %118 = arith.xori %2, %true : i1
    %119 = arith.extui %118 : i1 to i32
    %c0_i32_95 = arith.constant 0 : i32
    %120 = arith.cmpi ne, %119, %c0_i32_95 : i32
    scf.if %120 {
      %c0_97 = arith.constant 0 : index
      %c0_98 = arith.constant 0 : index
      %123 = vector.load %arg14[%c0_97, %c0_98] : memref<2x128xf32, #tpu.memory_space<vmem>>, vector<2x128xf32>
      %124 = arith.addf %123, %109 : vector<2x128xf32>
      %c0_99 = arith.constant 0 : index
      %c0_100 = arith.constant 0 : index
      %125 = vector.load %arg14[%c0_99, %c0_100] : memref<2x128xf32, #tpu.memory_space<vmem>>, vector<2x128xf32>
      tpu.vector_store %arg14[%c0_99, %c0_100], %124 {strides = array<i32>} : memref<2x128xf32, #tpu.memory_space<vmem>>, vector<2x128xf32>,
      %c0_101 = arith.constant 0 : index
      %c0_102 = arith.constant 0 : index
      %126 = vector.load %arg15[%c0_101, %c0_102] : memref<2x128xf32, #tpu.memory_space<vmem>>, vector<2x128xf32>
      %127 = arith.addf %126, %115 : vector<2x128xf32>
      %c0_103 = arith.constant 0 : index
      %c0_104 = arith.constant 0 : index
      %128 = vector.load %arg15[%c0_103, %c0_104] : memref<2x128xf32, #tpu.memory_space<vmem>>, vector<2x128xf32>
      tpu.vector_store %arg15[%c0_103, %c0_104], %127 {strides = array<i32>} : memref<2x128xf32, #tpu.memory_space<vmem>>, vector<2x128xf32>,
    } else {
    }
    %121 = arith.extui %5 : i1 to i32
    %c0_i32_96 = arith.constant 0 : i32
    %122 = arith.cmpi ne, %121, %c0_i32_96 : i32
    scf.if %122 {
      %c0_97 = arith.constant 0 : index
      %c0_98 = arith.constant 0 : index
      %123 = vector.load %arg14[%c0_97, %c0_98] : memref<2x128xf32, #tpu.memory_space<vmem>>, vector<1x128xf32>
      %cst_99 = arith.constant 7.812500e-03 : f32
      %124 = vector.broadcast %cst_99 : f32 to vector<1x128xf32>
      %125 = arith.mulf %123, %124 : vector<1x128xf32>
      %c1_100 = arith.constant 1 : index
      %c0_101 = arith.constant 0 : index
      %126 = vector.load %arg14[%c1_100, %c0_101] : memref<2x128xf32, #tpu.memory_space<vmem>>, vector<1x128xf32>
      %cst_102 = arith.constant 7.812500e-03 : f32
      %127 = vector.broadcast %cst_102 : f32 to vector<1x128xf32>
      %128 = arith.mulf %126, %127 : vector<1x128xf32>
      %129 = arith.mulf %125, %125 : vector<1x128xf32>
      %130 = arith.subf %128, %129 : vector<1x128xf32>
      %c0_103 = arith.constant 0 : index
      %c0_104 = arith.constant 0 : index
      %131 = vector.load %arg10[%c0_103, %c0_104] : memref<2x128xf32, #tpu.memory_space<vmem>>, vector<1x128xf32>
      %cst_105 = arith.constant 9.99999974E-6 : f32
      %132 = vector.broadcast %cst_105 : f32 to vector<1x128xf32>
      %133 = arith.addf %130, %132 : vector<1x128xf32>
      %134 = math.rsqrt %133 : vector<1x128xf32>
      %135 = arith.mulf %131, %134 : vector<1x128xf32>
      %c1_106 = arith.constant 1 : index
      %c0_107 = arith.constant 0 : index
      %136 = vector.load %arg10[%c1_106, %c0_107] : memref<2x128xf32, #tpu.memory_space<vmem>>, vector<1x128xf32>
      %137 = arith.mulf %125, %135 : vector<1x128xf32>
      %138 = arith.subf %136, %137 : vector<1x128xf32>
      %c1_108 = arith.constant 1 : index
      %c0_109 = arith.constant 0 : index
      %139 = vector.load %arg14[%c1_108, %c0_109] : memref<2x128xf32, #tpu.memory_space<vmem>>, vector<1x128xf32>
      tpu.vector_store %arg14[%c1_108, %c0_109], %138 {strides = array<i32>} : memref<2x128xf32, #tpu.memory_space<vmem>>, vector<1x128xf32>,
      %c0_110 = arith.constant 0 : index
      %c0_111 = arith.constant 0 : index
      %140 = vector.load %arg14[%c0_110, %c0_111] : memref<2x128xf32, #tpu.memory_space<vmem>>, vector<1x128xf32>
      tpu.vector_store %arg14[%c0_110, %c0_111], %135 {strides = array<i32>} : memref<2x128xf32, #tpu.memory_space<vmem>>, vector<1x128xf32>,
      %c0_112 = arith.constant 0 : index
      %c0_113 = arith.constant 0 : index
      %141 = vector.load %arg15[%c0_112, %c0_113] : memref<2x128xf32, #tpu.memory_space<vmem>>, vector<1x128xf32>
      %cst_114 = arith.constant 7.812500e-03 : f32
      %142 = vector.broadcast %cst_114 : f32 to vector<1x128xf32>
      %143 = arith.mulf %141, %142 : vector<1x128xf32>
      %c1_115 = arith.constant 1 : index
      %c0_116 = arith.constant 0 : index
      %144 = vector.load %arg15[%c1_115, %c0_116] : memref<2x128xf32, #tpu.memory_space<vmem>>, vector<1x128xf32>
      %cst_117 = arith.constant 7.812500e-03 : f32
      %145 = vector.broadcast %cst_117 : f32 to vector<1x128xf32>
      %146 = arith.mulf %144, %145 : vector<1x128xf32>
      %147 = arith.mulf %143, %143 : vector<1x128xf32>
      %148 = arith.subf %146, %147 : vector<1x128xf32>
      %c0_118 = arith.constant 0 : index
      %c0_119 = arith.constant 0 : index
      %149 = vector.load %arg11[%c0_118, %c0_119] : memref<2x128xf32, #tpu.memory_space<vmem>>, vector<1x128xf32>
      %cst_120 = arith.constant 9.99999974E-6 : f32
      %150 = vector.broadcast %cst_120 : f32 to vector<1x128xf32>
      %151 = arith.addf %148, %150 : vector<1x128xf32>
      %152 = math.rsqrt %151 : vector<1x128xf32>
      %153 = arith.mulf %149, %152 : vector<1x128xf32>
      %c1_121 = arith.constant 1 : index
      %c0_122 = arith.constant 0 : index
      %154 = vector.load %arg11[%c1_121, %c0_122] : memref<2x128xf32, #tpu.memory_space<vmem>>, vector<1x128xf32>
      %155 = arith.mulf %143, %153 : vector<1x128xf32>
      %156 = arith.subf %154, %155 : vector<1x128xf32>
      %c1_123 = arith.constant 1 : index
      %c0_124 = arith.constant 0 : index
      %157 = vector.load %arg15[%c1_123, %c0_124] : memref<2x128xf32, #tpu.memory_space<vmem>>, vector<1x128xf32>
      tpu.vector_store %arg15[%c1_123, %c0_124], %156 {strides = array<i32>} : memref<2x128xf32, #tpu.memory_space<vmem>>, vector<1x128xf32>,
      %c0_125 = arith.constant 0 : index
      %c0_126 = arith.constant 0 : index
      %158 = vector.load %arg15[%c0_125, %c0_126] : memref<2x128xf32, #tpu.memory_space<vmem>>, vector<1x128xf32>
      tpu.vector_store %arg15[%c0_125, %c0_126], %153 {strides = array<i32>} : memref<2x128xf32, #tpu.memory_space<vmem>>, vector<1x128xf32>,
    } else {
    }
    return
  }
  func.func @transform_0(%arg0: i32, %arg1: i32) -> (i32, i32, i32, i32) {
    %c0_i32 = arith.constant 0 : i32
    %c0_i32_0 = arith.constant 0 : i32
    %c0_i32_1 = arith.constant 0 : i32
    return %arg0, %arg1, %c0_i32, %c0_i32_0 : i32, i32, i32, i32
  }
  func.func @transform_1(%arg0: i32, %arg1: i32) -> (i32, i32, i32, i32) {
    %c8_i32 = arith.constant 8 : i32
    %0 = arith.muli %arg1, %c8_i32 : i32
    %c1_i32 = arith.constant 1 : i32
    %1 = arith.subi %0, %c1_i32 : i32
    %c0_i32 = arith.constant 0 : i32
    %2 = arith.maxsi %1, %c0_i32 : i32
    %c0_i32_0 = arith.constant 0 : i32
    %c0_i32_1 = arith.constant 0 : i32
    %c0_i32_2 = arith.constant 0 : i32
    return %arg0, %2, %c0_i32_0, %c0_i32_1 : i32, i32, i32, i32
  }
  func.func @transform_2(%arg0: i32, %arg1: i32) -> (i32, i32, i32, i32) {
    %c1_i32 = arith.constant 1 : i32
    %0 = arith.addi %arg1, %c1_i32 : i32
    %c8_i32 = arith.constant 8 : i32
    %1 = arith.muli %0, %c8_i32 : i32
    %c7_i32 = arith.constant 7 : i32
    %2 = arith.minsi %1, %c7_i32 : i32
    %c0_i32 = arith.constant 0 : i32
    %c0_i32_0 = arith.constant 0 : i32
    %c0_i32_1 = arith.constant 0 : i32
    return %arg0, %2, %c0_i32, %c0_i32_0 : i32, i32, i32, i32
  }
  func.func @transform_3(%arg0: i32, %arg1: i32) -> (i32, i32) {
    %c0_i32 = arith.constant 0 : i32
    %c0_i32_0 = arith.constant 0 : i32
    %c0_i32_1 = arith.constant 0 : i32
    return %c0_i32, %c0_i32_0 : i32, i32
  }
  func.func @transform_4(%arg0: i32, %arg1: i32) -> (i32, i32, i32) {
    %c0_i32 = arith.constant 0 : i32
    %c0_i32_0 = arith.constant 0 : i32
    %c0_i32_1 = arith.constant 0 : i32
    %c0_i32_2 = arith.constant 0 : i32
    return %c0_i32, %c0_i32_0, %c0_i32_1 : i32, i32, i32
  }
  func.func @transform_5(%arg0: i32, %arg1: i32) -> (i32, i32) {
    %c0_i32 = arith.constant 0 : i32
    %c0_i32_0 = arith.constant 0 : i32
    %c0_i32_1 = arith.constant 0 : i32
    return %c0_i32, %c0_i32_0 : i32, i32
  }
  func.func @transform_6(%arg0: i32, %arg1: i32) -> (i32, i32) {
    %c0_i32 = arith.constant 0 : i32
    %c0_i32_0 = arith.constant 0 : i32
    %c0_i32_1 = arith.constant 0 : i32
    return %c0_i32, %c0_i32_0 : i32, i32
  }
  func.func @transform_7(%arg0: i32, %arg1: i32) -> (i32, i32, i32, i32) {
    %c0_i32 = arith.constant 0 : i32
    %c0_i32_0 = arith.constant 0 : i32
    %c0_i32_1 = arith.constant 0 : i32
    return %arg0, %arg1, %c0_i32, %c0_i32_0 : i32, i32, i32, i32
  }
  func.func @transform_8(%arg0: i32, %arg1: i32) -> (i32, i32) {
    %c0_i32 = arith.constant 0 : i32
    %c0_i32_0 = arith.constant 0 : i32
    %c0_i32_1 = arith.constant 0 : i32
    return %c0_i32, %c0_i32_0 : i32, i32
  }
  func.func @transform_9(%arg0: i32, %arg1: i32) -> (i32, i32) {
    %c0_i32 = arith.constant 0 : i32
    %c0_i32_0 = arith.constant 0 : i32
    %c0_i32_1 = arith.constant 0 : i32
    return %c0_i32, %c0_i32_0 : i32, i32
  }
  func.func @transform_10(%arg0: i32, %arg1: i32) -> (i32, i32, i32, i32) {
    %c0_i32 = arith.constant 0 : i32
    %c0_i32_0 = arith.constant 0 : i32
    %c0_i32_1 = arith.constant 0 : i32
    return %arg0, %arg1, %c0_i32, %c0_i32_0 : i32, i32, i32, i32
  }
  func.func @transform_11(%arg0: i32, %arg1: i32) -> (i32, i32, i32, i32) {
    %c0_i32 = arith.constant 0 : i32
    %c0_i32_0 = arith.constant 0 : i32
    %c0_i32_1 = arith.constant 0 : i32
    return %arg0, %arg1, %c0_i32, %c0_i32_0 : i32, i32, i32, i32
  }
  func.func @transform_12(%arg0: i32, %arg1: i32) -> (i32, i32) {
    %c0_i32 = arith.constant 0 : i32
    %c0_i32_0 = arith.constant 0 : i32
    %c0_i32_1 = arith.constant 0 : i32
    return %c0_i32, %c0_i32_0 : i32, i32
  }
  func.func @transform_13(%arg0: i32, %arg1: i32) -> (i32, i32) {
    %c0_i32 = arith.constant 0 : i32
    %c0_i32_0 = arith.constant 0 : i32
    %c0_i32_1 = arith.constant 0 : i32
    return %c0_i32, %c0_i32_0 : i32, i32
  }
}

module attributes {stable_mosaic.version = 11 : i64} {
  func.func @_bn_add_relu_kernel(%arg0: i32, %arg1: i32, %arg2: memref<2x128xf32, #tpu.memory_space<vmem>>, %arg3: memref<2x128xf32, #tpu.memory_space<vmem>>, %arg4: memref<1x8x8x128xbf16, #tpu.memory_space<vmem>>, %arg5: memref<1x8x8x128xbf16, #tpu.memory_space<vmem>>, %arg6: memref<1x8x8x128xf32, #tpu.memory_space<vmem>>) attributes {dimension_semantics = [#tpu.dimension_semantics<parallel>, #tpu.dimension_semantics<parallel>], iteration_bounds = array<i64: 2, 1>, scalar_prefetch = 0 : i64, scratch_operands = 0 : i64, tpu.core_type = #tpu.core_type<tc>, window_params = [{pipeline_mode = #tpu.pipeline_mode<synchronous>, transform_indices = @transform_0, window_bounds = array<i64: 2, 128>}, {pipeline_mode = #tpu.pipeline_mode<synchronous>, transform_indices = @transform_1, window_bounds = array<i64: 2, 128>}, {transform_indices = @transform_2, window_bounds = array<i64: 1, 8, 8, 128>}, {transform_indices = @transform_3, window_bounds = array<i64: 1, 8, 8, 128>}, {transform_indices = @transform_4, window_bounds = array<i64: 1, 8, 8, 128>}]} {
    %c0 = arith.constant 0 : index
    %c0_0 = arith.constant 0 : index
    %0 = vector.load %arg2[%c0, %c0_0] : memref<2x128xf32, #tpu.memory_space<vmem>>, vector<1x128xf32>
    %c0_1 = arith.constant 0 : index
    %c0_2 = arith.constant 0 : index
    %1 = vector.load %arg3[%c0_1, %c0_2] : memref<2x128xf32, #tpu.memory_space<vmem>>, vector<1x128xf32>
    %c1 = arith.constant 1 : index
    %c0_3 = arith.constant 0 : index
    %2 = vector.load %arg2[%c1, %c0_3] : memref<2x128xf32, #tpu.memory_space<vmem>>, vector<1x128xf32>
    %c1_4 = arith.constant 1 : index
    %c0_5 = arith.constant 0 : index
    %3 = vector.load %arg3[%c1_4, %c0_5] : memref<2x128xf32, #tpu.memory_space<vmem>>, vector<1x128xf32>
    %4 = arith.addf %2, %3 : vector<1x128xf32>
    %c0_6 = arith.constant 0 : index
    %c0_7 = arith.constant 0 : index
    %c0_8 = arith.constant 0 : index
    %c0_9 = arith.constant 0 : index
    %5 = vector.load %arg4[%c0_6, %c0_7, %c0_8, %c0_9] : memref<1x8x8x128xbf16, #tpu.memory_space<vmem>>, vector<1x8x8x128xbf16>
    %6 = arith.extf %5 : vector<1x8x8x128xbf16> to vector<1x8x8x128xf32>
    %7 = vector.shape_cast %0 : vector<1x128xf32> to vector<1x1x1x128xf32>
    %8 = vector.broadcast %7 : vector<1x1x1x128xf32> to vector<1x8x8x128xf32>
    %9 = arith.mulf %8, %6 : vector<1x8x8x128xf32>
    %c0_10 = arith.constant 0 : index
    %c0_11 = arith.constant 0 : index
    %c0_12 = arith.constant 0 : index
    %c0_13 = arith.constant 0 : index
    %10 = vector.load %arg5[%c0_10, %c0_11, %c0_12, %c0_13] : memref<1x8x8x128xbf16, #tpu.memory_space<vmem>>, vector<1x8x8x128xbf16>
    %11 = arith.extf %10 : vector<1x8x8x128xbf16> to vector<1x8x8x128xf32>
    %12 = vector.shape_cast %1 : vector<1x128xf32> to vector<1x1x1x128xf32>
    %13 = vector.broadcast %12 : vector<1x1x1x128xf32> to vector<1x8x8x128xf32>
    %14 = arith.mulf %13, %11 : vector<1x8x8x128xf32>
    %15 = arith.addf %9, %14 : vector<1x8x8x128xf32>
    %16 = vector.shape_cast %4 : vector<1x128xf32> to vector<1x1x1x128xf32>
    %17 = vector.broadcast %16 : vector<1x1x1x128xf32> to vector<1x8x8x128xf32>
    %18 = arith.addf %15, %17 : vector<1x8x8x128xf32>
    %cst = arith.constant 0.000000e+00 : f32
    %19 = vector.broadcast %cst : f32 to vector<1x8x8x128xf32>
    %20 = arith.maximumf %18, %19 : vector<1x8x8x128xf32>
    %c0_14 = arith.constant 0 : index
    %c0_15 = arith.constant 0 : index
    %c0_16 = arith.constant 0 : index
    %c0_17 = arith.constant 0 : index
    %21 = vector.load %arg6[%c0_14, %c0_15, %c0_16, %c0_17] : memref<1x8x8x128xf32, #tpu.memory_space<vmem>>, vector<1x8x8x128xf32>
    tpu.vector_store %arg6[%c0_14, %c0_15, %c0_16, %c0_17], %20 {strides = array<i32>} : memref<1x8x8x128xf32, #tpu.memory_space<vmem>>, vector<1x8x8x128xf32>,
    return
  }
  func.func @transform_0(%arg0: i32, %arg1: i32) -> (i32, i32) {
    %c0_i32 = arith.constant 0 : i32
    %c0_i32_0 = arith.constant 0 : i32
    %c0_i32_1 = arith.constant 0 : i32
    return %c0_i32, %c0_i32_0 : i32, i32
  }
  func.func @transform_1(%arg0: i32, %arg1: i32) -> (i32, i32) {
    %c0_i32 = arith.constant 0 : i32
    %c0_i32_0 = arith.constant 0 : i32
    %c0_i32_1 = arith.constant 0 : i32
    return %c0_i32, %c0_i32_0 : i32, i32
  }
  func.func @transform_2(%arg0: i32, %arg1: i32) -> (i32, i32, i32, i32) {
    %c0_i32 = arith.constant 0 : i32
    %c0_i32_0 = arith.constant 0 : i32
    %c0_i32_1 = arith.constant 0 : i32
    return %arg0, %arg1, %c0_i32, %c0_i32_0 : i32, i32, i32, i32
  }
  func.func @transform_3(%arg0: i32, %arg1: i32) -> (i32, i32, i32, i32) {
    %c0_i32 = arith.constant 0 : i32
    %c0_i32_0 = arith.constant 0 : i32
    %c0_i32_1 = arith.constant 0 : i32
    return %arg0, %arg1, %c0_i32, %c0_i32_0 : i32, i32, i32, i32
  }
  func.func @transform_4(%arg0: i32, %arg1: i32) -> (i32, i32, i32, i32) {
    %c0_i32 = arith.constant 0 : i32
    %c0_i32_0 = arith.constant 0 : i32
    %c0_i32_1 = arith.constant 0 : i32
    return %arg0, %arg1, %c0_i32, %c0_i32_0 : i32, i32, i32, i32
  }
}

</mosaic_0001>

<bundles_post_ra>
// kernel: res_block_forward.5
= control target key start
LH: loop header
LB: loop body
LE: loop exit
PB: predicated region body
PF: predicated region fallthrough
CT: control target
= control target key end

     0   :  { %s604_s15 = smov 0   ;;  %s606_s16 = smov 0   ;;  %s708_s0 = inlined_call_operand.vmem [shape: f32[2,128], index: 0, kind: input, shape index: {}]   ;;  %s709_s1 = inlined_call_operand.vmem [shape: f32[2,128], index: 1, kind: input, shape index: {}]   ;;  %s710_s2 = inlined_call_operand.vmem [shape: bf16[2,8,8,128], index: 2, kind: input, shape index: {}]   ;;  %s711_s3 = inlined_call_operand.vmem [shape: bf16[2,8,8,128], index: 3, kind: input, shape index: {}]   ;;  %s712_s4 = inlined_call_operand.vmem [shape: f32[2,8,8,128], index: 4, kind: output, shape index: {}]  }
   0x1   :  { %s608_s17 = smov 0  }
   0x2 LB: > { %s26_s18 = sadd.s32 1, %s573_s16  ;;  %p479_p0 = scmp.ge.s32.totalorder %s577_s17, 1  ;;  %s577_s17 = sphi %s608_s17, %s14_s17   ;;  %s573_s16 = sphi %s606_s16, %s714_s16   ;;  %s569_s15 = sphi %s604_s15, %s713_s15  }
   0x3   : > { %p28_p1 = scmp.ge.s32.totalorder %s26_s18, 2  ;;  %p200_p2 = scmp.lt.s32.totalorder %s577_s17, 3 }
   0x5   : > { %s716_s18 = smov (%p28_p1, %s26_s18), 0  ;;  %p201_p3 = pnand %p479_p0, %p200_p2 }
   0x6   : > { %p244_p4 = scmp.lt.s32.totalorder (!%p201_p3), %s569_s15, 1  ;;  %v342_v0 = vlaneseq (!%p201_p3)  ;;  %v275_v1 = vld [vmem:[%s708_s0 + $0x1] sm:$0x1] (!%p201_p3)  ;;  %v644_v6 = vld [vmem:[%s708_s0] ss:$0 sm:$0xff] (!%p201_p3) }
   0x7   : > { %204 = sbr.rel (%p201_p3) target bundleno = 39 (0x27), region = 36  ;;  %v276_v2 = vld [vmem:[%s709_s1 + $0x1] sm:$0x1] (!%p201_p3)  ;;  %v649_v7 = vld [vmem:[%s709_s1] ss:$0 sm:$0xff] (!%p201_p3) }
   0x8   : > { %v277_v3 = vadd.f32 (!%p201_p3), %v276_v2, %v275_v1  ;;  %v343_v4 = vshrl.u32 (!%p201_p3), %v342_v0, 7 }
   0xa   : > { %v344_v5 = vsub.s32 (!%p201_p3), 0, %v343_v4 }
   0xc   : > { %v653_v10 = vrot.slane (!%p201_p3), %v277_v3, %v344_v5 }
   0xe   : > { %s718_s15 = smov (!%p244_p4, %s569_s15), 1 }
   0xf   : > { %s490_s23 = sshll.u32 %s718_s15, 5  ;;  %s492_s8 = sshll.u32 %s718_s15, 6 }
  0x10   : > { %s634_s26 = scalar_lea.vmem %s710_s2, %s490_s23  ;;  %s639_s29 = scalar_lea.vmem %s711_s3, %s490_s23 }
  0x11   : > { %v494_v8 = vld [vmem:[%s634_s26] sm:$0xff]   ;;  %v525_v11 = vld [vmem:[%s634_s26 + $0x8] sm:$0xff]   ;;  %v526_v21 = vld [vmem:[%s634_s26 + $0x10] sm:$0xff]   ;;  %s677_s11 = scalar_lea.vmem %s712_s4, %s492_s8 }
  0x12   : > { %v510_v9 = vld [vmem:[%s639_s29] sm:$0xff]   ;;  %v495_v12 = vunpack.c.l.bf16 %v494_v8  ;;  %v496_v14 = vunpack.c.h.bf16 %v494_v8  ;;  %v528_v16 = vld [vmem:[%s639_s29 + $0x8] sm:$0xff]   ;;  %v499_v17 = vunpack.c.l.bf16 %v525_v11  ;;  %v500_v19 = vunpack.c.h.bf16 %v525_v11  ;;  %v529_v22 = vld [vmem:[%s639_s29 + $0x10] sm:$0xff]  }
  0x13   : > { %v511_v13 = vunpack.c.l.bf16 %v510_v9  ;;  %v512_v15 = vunpack.c.h.bf16 %v510_v9  ;;  %v515_v18 = vunpack.c.l.bf16 %v528_v16  ;;  %v516_v20 = vunpack.c.h.bf16 %v528_v16  ;;  %v527_v39 = vld [vmem:[%s634_s26 + $0x18] sm:$0xff]  }
  0x14   : > { %v298_v23 = vmul.f32 %v495_v12, %v644_v6  ;;  %v299_v25 = vmul.f32 %v496_v14, %v644_v6  ;;  %v300_v27 = vmul.f32 %v499_v17, %v644_v6  ;;  %v301_v29 = vmul.f32 %v500_v19, %v644_v6  ;;  %v530_v44 = vld [vmem:[%s639_s29 + $0x18] sm:$0xff]  }
  0x15   : > { %v326_v24 = vmul.f32 %v511_v13, %v649_v7  ;;  %v327_v26 = vmul.f32 %v512_v15, %v649_v7  ;;  %v328_v28 = vmul.f32 %v515_v18, %v649_v7  ;;  %v329_v30 = vmul.f32 %v516_v20, %v649_v7 }
  0x16   : > { %v503_v33 = vunpack.c.l.bf16 %v526_v21  ;;  %v519_v34 = vunpack.c.l.bf16 %v529_v22  ;;  %v504_v37 = vunpack.c.h.bf16 %v526_v21  ;;  %v520_v38 = vunpack.c.h.bf16 %v529_v22 }
  0x17   : > { %v334_v31 = vadd.f32 %v326_v24, %v298_v23  ;;  %v335_v32 = vadd.f32 %v327_v26, %v299_v25  ;;  %v336_v35 = vadd.f32 %v328_v28, %v300_v27  ;;  %v337_v36 = vadd.f32 %v329_v30, %v301_v29 }
  0x18   : > { %v302_v42 = vmul.f32 %v503_v33, %v644_v6  ;;  %v330_v43 = vmul.f32 %v519_v34, %v649_v7  ;;  %v303_v47 = vmul.f32 %v504_v37, %v644_v6  ;;  %v331_v48 = vmul.f32 %v520_v38, %v649_v7 }
  0x19   : > { %v346_v40 = vadd.f32 %v653_v10, %v334_v31  ;;  %v347_v41 = vadd.f32 %v653_v10, %v335_v32  ;;  %v348_v45 = vadd.f32 %v653_v10, %v336_v35  ;;  %v349_v46 = vadd.f32 %v653_v10, %v337_v36 }
  0x1a   : > { %v338_v51 = vadd.f32 %v330_v43, %v302_v42  ;;  %v507_v52 = vunpack.c.l.bf16 %v527_v39  ;;  %v339_v55 = vadd.f32 %v331_v48, %v303_v47  ;;  %v523_v56 = vunpack.c.l.bf16 %v530_v44 }
  0x1b   : > { %v354_v49 = vmax.f32 %v346_v40, 0.0  ;;  %v355_v50 = vmax.f32 %v347_v41, 0.0  ;;  %v356_v53 = vmax.f32 %v348_v45, 0.0  ;;  %v357_v54 = vmax.f32 %v349_v46, 0.0 }
  0x1c   : > { %v350_v57 = vadd.f32 %v653_v10, %v338_v51  ;;  %v304_v58 = vmul.f32 %v507_v52, %v644_v6  ;;  %v508_v59 = vunpack.c.h.bf16 %v527_v39  ;;  %v524_v60 = vunpack.c.h.bf16 %v530_v44 }
  0x1d   : > { %362 = vst [vmem:[%s677_s11] sm:$0xff] %v354_v49  ;;  %363 = vst [vmem:[%s677_s11 + $0x8] sm:$0xff] %v355_v50  ;;  %v351_v61 = vadd.f32 %v653_v10, %v339_v55  ;;  %v332_v62 = vmul.f32 %v523_v56, %v649_v7 }
  0x1e   : > { %364 = vst [vmem:[%s677_s11 + $0x10] sm:$0xff] %v356_v53  ;;  %365 = vst [vmem:[%s677_s11 + $0x18] sm:$0xff] %v357_v54  ;;  %v358_v63 = vmax.f32 %v350_v57, 0.0  ;;  %v305_v0 = vmul.f32 %v508_v59, %v644_v6  ;;  %v333_v1 = vmul.f32 %v524_v60, %v649_v7 }
  0x1f   : > { %v359_v2 = vmax.f32 %v351_v61, 0.0  ;;  %v340_v3 = vadd.f32 %v332_v62, %v304_v58 }
  0x20   : > { %366 = vst [vmem:[%s677_s11 + $0x20] sm:$0xff] %v358_v63  ;;  %v341_v4 = vadd.f32 %v333_v1, %v305_v0 }
  0x21   : > { %367 = vst [vmem:[%s677_s11 + $0x28] sm:$0xff] %v359_v2  ;;  %v352_v5 = vadd.f32 %v653_v10, %v340_v3 }
  0x22   : > { %v353_v8 = vadd.f32 %v653_v10, %v341_v4 }
  0x23   : > { %v360_v9 = vmax.f32 %v352_v5, 0.0 }
  0x24   : > { %v361_v11 = vmax.f32 %v353_v8, 0.0 }
  0x25   : > { %368 = vst [vmem:[%s677_s11 + $0x30] sm:$0xff] %v360_v9 }
  0x26   : > { %369 = vst [vmem:[%s677_s11 + $0x38] sm:$0xff] %v361_v11 }
  0x27 PF: > { %s14_s17 = sadd.s32 1, %s577_s17   ;;  %s713_s15 = smov %s573_s16 }
  0x28   : > { %p11_p5 = scmp.ge.s32.totalorder %s14_s17, 4   ;;  %s714_s16 = smov %s716_s18 }
  0x2a   :  { %13 = sbr.rel (!%p11_p5) target bundleno = 2 (0x2), region = 69 }

// kernel: res_block_forward.3
= control target key start
LH: loop header
LB: loop body
LE: loop exit
PB: predicated region body
PF: predicated region fallthrough
CT: control target
= control target key end

     0   :  { %s3509_s21 = smov 0   ;;  %s3511_s22 = smov 0   ;;  %s4164_s0 = inlined_call_operand.vmem [shape: bf16[4,2,9,9,128], index: 0, kind: input, shape index: {}, may-alias: {0,1}]   ;;  %s4165_s1 = inlined_call_operand.vmem [shape: bf16[4,2,9,9,128], index: 1, kind: input, shape index: {}, may-alias: {0,1}]   ;;  %s4166_s2 = inlined_call_operand.vmem [shape: bf16[4,256,128], index: 2, kind: input, shape index: {}]   ;;  %s4167_s3 = inlined_call_operand.vmem [shape: bf16[128,128], index: 3, kind: input, shape index: {}]   ;;  %s4168_s4 = inlined_call_operand.vmem [shape: f32[2,128], index: 4, kind: input, shape index: {}]   ;;  %s4169_s5 = inlined_call_operand.vmem [shape: bf16[2,8,8,128], index: 5, kind: output, shape index: {0}]   ;;  %s4170_s6 = inlined_call_operand.vmem [shape: f32[2,128], index: 6, kind: output, shape index: {1}]  }
   0x1   :  { %s3513_s23 = smov 0   ;;  %s3515_s24 = smov 0  }
   0x2   :  { %s3517_s25 = smov 0  }
   0x3 LB: > { %s29_s26 = sadd.s32 1, %s3464_s24  ;;  %p45_p1 = scmp.ne.s32.totalorder %s3456_s22, %s3452_s21  ;;  %s3468_s25 = sphi %s3517_s25, %s17_s25   ;;  %s3464_s24 = sphi %s3515_s24, %s4179_s24   ;;  %s3460_s23 = sphi %s3513_s23, %s4178_s23   ;;  %s3456_s22 = sphi %s3511_s22, %s4177_s22   ;;  %s3452_s21 = sphi %s3509_s21, %s4176_s21  }
   0x4   : > { %p31_p0 = scmp.ge.s32.totalorder %s29_s26, 2  ;;  %p46_p2 = scmp.eq.s32.totalorder %s3468_s25, 0 }
   0x5   : > { %s38_s29 = sadd.s32 1, %s3456_s22  ;;  %p2731_p5 = scmp.ge.s32.totalorder %s3468_s25, 2 }
   0x6   : > { %s4181_s26 = smov (%p31_p0, %s29_s26), 0  ;;  %p3540_p3 = por %p46_p2, %p45_p1 }
   0x7   : > { %s33_s28 = ssub.s32 %s3464_s24, %s4181_s26  ;;  %224 = sbr.rel (%p2731_p5) target bundleno = 79 (0x4f), region = 28 }
   0x8   : > { %p36_p4 = scmp.eq.s32.totalorder %s33_s28, 0 }
   0xa   : > { %s3548_s30 = scalar_select %p36_p4, %s3456_s22, %s38_s29  }
   0xe   : > { %227 = sbr.rel (!%p3540_p3) target bundleno = 72 (0x48), region = 32  ;;  %s229_s7 = sand.u32 (%p3540_p3), 1, %s3456_s22  }
   0xf   : > { %s3243_s8 = smul.u32 (%p3540_p3), 72, %s3464_s24  ;;  %s2732_s9 = sshll.u32 (%p3540_p3), %s229_s7, 8 }
  0x10   : > { %s3560_s13 = scalar_lea.vmem (%p3540_p3), [#allocation3], %s2732_s9   ;;  %s3562_s14 = smov (%p3540_p3), 0  }
  0x11   : > { %s3558_s12 = scalar_lea.vmem (%p3540_p3), %s4164_s0, %s3243_s8  }
  0x15 LB: >> { %v263_v0 = vld [vmem:[%s3558_s12] sm:$0xf]  ;;  %v265_v1 = vld [vmem:[%s3558_s12 + $0x4] sm:$0xf]  ;;  %v267_v2 = vld [vmem:[%s3558_s12 + $0x8] sm:$0xf]  ;;  %s3472_s14 = sphi %s3562_s14, %s257_s14  }
  0x16   : >> { %264 = vst [vmem:[%s3560_s13] sm:$0xf] %v263_v0  ;;  %266 = vst [vmem:[%s3560_s13 + $0x4] sm:$0xf] %v265_v1  ;;  %v269_v3 = vld [vmem:[%s3558_s12 + $0xc] sm:$0xf]  ;;  %s257_s14 = sadd.s32 1, %s3472_s14  }
  0x17   : >> { %268 = vst [vmem:[%s3560_s13 + $0x8] sm:$0xf] %v267_v2  ;;  %v271_v4 = vld [vmem:[%s3558_s12 + $0x10] sm:$0xf]  ;;  %v273_v5 = vld [vmem:[%s3558_s12 + $0x14] sm:$0xf] }
  0x18   : >> { %270 = vst [vmem:[%s3560_s13 + $0xc] sm:$0xf] %v269_v3  ;;  %272 = vst [vmem:[%s3560_s13 + $0x10] sm:$0xf] %v271_v4  ;;  %v275_v6 = vld [vmem:[%s3558_s12 + $0x18] sm:$0xf] }
  0x19   : >> { %274 = vst [vmem:[%s3560_s13 + $0x14] sm:$0xf] %v273_v5  ;;  %v277_v7 = vld [vmem:[%s3558_s12 + $0x1c] sm:$0xf]  ;;  %v279_v8 = vld [vmem:[%s3558_s12 + $0x20] sm:$0xf] }
  0x1a   : >> { %276 = vst [vmem:[%s3560_s13 + $0x18] sm:$0xf] %v275_v6  ;;  %278 = vst [vmem:[%s3560_s13 + $0x1c] sm:$0xf] %v277_v7  ;;  %v281_v9 = vld [vmem:[%s3558_s12 + $0x24] sm:$0xf] }
  0x1b   : >> { %280 = vst [vmem:[%s3560_s13 + $0x20] sm:$0xf] %v279_v8  ;;  %v283_v10 = vld [vmem:[%s3558_s12 + $0x28] sm:$0xf]  ;;  %v285_v11 = vld [vmem:[%s3558_s12 + $0x2c] sm:$0xf] }
  0x1c   : >> { %282 = vst [vmem:[%s3560_s13 + $0x24] sm:$0xf] %v281_v9  ;;  %284 = vst [vmem:[%s3560_s13 + $0x28] sm:$0xf] %v283_v10  ;;  %v287_v12 = vld [vmem:[%s3558_s12 + $0x30] sm:$0xf] }
  0x1d   : >> { %286 = vst [vmem:[%s3560_s13 + $0x2c] sm:$0xf] %v285_v11  ;;  %v289_v13 = vld [vmem:[%s3558_s12 + $0x34] sm:$0xf]  ;;  %v291_v14 = vld [vmem:[%s3558_s12 + $0x38] sm:$0xf] }
  0x1e   : >> { %288 = vst [vmem:[%s3560_s13 + $0x30] sm:$0xf] %v287_v12  ;;  %290 = vst [vmem:[%s3560_s13 + $0x34] sm:$0xf] %v289_v13  ;;  %v293_v15 = vld [vmem:[%s3558_s12 + $0x3c] sm:$0xf] }
  0x1f   : >> { %292 = vst [vmem:[%s3560_s13 + $0x38] sm:$0xf] %v291_v14  ;;  %v295_v16 = vld [vmem:[%s3558_s12 + $0x90] sm:$0xf]  ;;  %v297_v17 = vld [vmem:[%s3558_s12 + $0x94] sm:$0xf] }
  0x20   : >> { %294 = vst [vmem:[%s3560_s13 + $0x3c] sm:$0xf] %v293_v15  ;;  %296 = vst [vmem:[%s3560_s13 + $0x40] sm:$0xf] %v295_v16  ;;  %v299_v18 = vld [vmem:[%s3558_s12 + $0x98] sm:$0xf] }
  0x21   : >> { %298 = vst [vmem:[%s3560_s13 + $0x44] sm:$0xf] %v297_v17  ;;  %v301_v19 = vld [vmem:[%s3558_s12 + $0x9c] sm:$0xf]  ;;  %v303_v20 = vld [vmem:[%s3558_s12 + $0xa0] sm:$0xf] }
  0x22   : >> { %300 = vst [vmem:[%s3560_s13 + $0x48] sm:$0xf] %v299_v18  ;;  %302 = vst [vmem:[%s3560_s13 + $0x4c] sm:$0xf] %v301_v19  ;;  %v305_v21 = vld [vmem:[%s3558_s12 + $0xa4] sm:$0xf] }
  0x23   : >> { %304 = vst [vmem:[%s3560_s13 + $0x50] sm:$0xf] %v303_v20  ;;  %v307_v22 = vld [vmem:[%s3558_s12 + $0xa8] sm:$0xf]  ;;  %v309_v23 = vld [vmem:[%s3558_s12 + $0xac] sm:$0xf] }
  0x24   : >> { %306 = vst [vmem:[%s3560_s13 + $0x54] sm:$0xf] %v305_v21  ;;  %308 = vst [vmem:[%s3560_s13 + $0x58] sm:$0xf] %v307_v22  ;;  %v311_v24 = vld [vmem:[%s3558_s12 + $0xb0] sm:$0xf] }
  0x25   : >> { %310 = vst [vmem:[%s3560_s13 + $0x5c] sm:$0xf] %v309_v23  ;;  %v313_v25 = vld [vmem:[%s3558_s12 + $0xb4] sm:$0xf]  ;;  %v315_v26 = vld [vmem:[%s3558_s12 + $0xb8] sm:$0xf] }
  0x26   : >> { %312 = vst [vmem:[%s3560_s13 + $0x60] sm:$0xf] %v311_v24  ;;  %314 = vst [vmem:[%s3560_s13 + $0x64] sm:$0xf] %v313_v25  ;;  %v317_v27 = vld [vmem:[%s3558_s12 + $0xbc] sm:$0xf] }
  0x27   : >> { %316 = vst [vmem:[%s3560_s13 + $0x68] sm:$0xf] %v315_v26  ;;  %v319_v28 = vld [vmem:[%s3558_s12 + $0xc0] sm:$0xf]  ;;  %v321_v29 = vld [vmem:[%s3558_s12 + $0xc4] sm:$0xf] }
  0x28   : >> { %318 = vst [vmem:[%s3560_s13 + $0x6c] sm:$0xf] %v317_v27  ;;  %320 = vst [vmem:[%s3560_s13 + $0x70] sm:$0xf] %v319_v28  ;;  %v323_v30 = vld [vmem:[%s3558_s12 + $0xc8] sm:$0xf] }
  0x29   : >> { %322 = vst [vmem:[%s3560_s13 + $0x74] sm:$0xf] %v321_v29  ;;  %v325_v31 = vld [vmem:[%s3558_s12 + $0xcc] sm:$0xf]  ;;  %v327_v32 = vld [vmem:[%s3558_s12 + $0x120] sm:$0xf] }
  0x2a   : >> { %324 = vst [vmem:[%s3560_s13 + $0x78] sm:$0xf] %v323_v30  ;;  %326 = vst [vmem:[%s3560_s13 + $0x7c] sm:$0xf] %v325_v31  ;;  %v329_v33 = vld [vmem:[%s3558_s12 + $0x124] sm:$0xf] }
  0x2b   : >> { %328 = vst [vmem:[%s3560_s13 + $0x80] sm:$0xf] %v327_v32  ;;  %v331_v34 = vld [vmem:[%s3558_s12 + $0x128] sm:$0xf]  ;;  %v333_v35 = vld [vmem:[%s3558_s12 + $0x12c] sm:$0xf] }
  0x2c   : >> { %330 = vst [vmem:[%s3560_s13 + $0x84] sm:$0xf] %v329_v33  ;;  %332 = vst [vmem:[%s3560_s13 + $0x88] sm:$0xf] %v331_v34  ;;  %v335_v36 = vld [vmem:[%s3558_s12 + $0x130] sm:$0xf] }
  0x2d   : >> { %334 = vst [vmem:[%s3560_s13 + $0x8c] sm:$0xf] %v333_v35  ;;  %v337_v37 = vld [vmem:[%s3558_s12 + $0x134] sm:$0xf]  ;;  %v339_v38 = vld [vmem:[%s3558_s12 + $0x138] sm:$0xf] }
  0x2e   : >> { %336 = vst [vmem:[%s3560_s13 + $0x90] sm:$0xf] %v335_v36  ;;  %338 = vst [vmem:[%s3560_s13 + $0x94] sm:$0xf] %v337_v37  ;;  %v341_v39 = vld [vmem:[%s3558_s12 + $0x13c] sm:$0xf] }
  0x2f   : >> { %340 = vst [vmem:[%s3560_s13 + $0x98] sm:$0xf] %v339_v38  ;;  %v343_v40 = vld [vmem:[%s3558_s12 + $0x140] sm:$0xf]  ;;  %v345_v41 = vld [vmem:[%s3558_s12 + $0x144] sm:$0xf] }
  0x30   : >> { %342 = vst [vmem:[%s3560_s13 + $0x9c] sm:$0xf] %v341_v39  ;;  %344 = vst [vmem:[%s3560_s13 + $0xa0] sm:$0xf] %v343_v40  ;;  %v347_v42 = vld [vmem:[%s3558_s12 + $0x148] sm:$0xf] }
  0x31   : >> { %346 = vst [vmem:[%s3560_s13 + $0xa4] sm:$0xf] %v345_v41  ;;  %v349_v43 = vld [vmem:[%s3558_s12 + $0x14c] sm:$0xf]  ;;  %v351_v44 = vld [vmem:[%s3558_s12 + $0x150] sm:$0xf] }
  0x32   : >> { %348 = vst [vmem:[%s3560_s13 + $0xa8] sm:$0xf] %v347_v42  ;;  %350 = vst [vmem:[%s3560_s13 + $0xac] sm:$0xf] %v349_v43  ;;  %v353_v45 = vld [vmem:[%s3558_s12 + $0x154] sm:$0xf] }
  0x33   : >> { %352 = vst [vmem:[%s3560_s13 + $0xb0] sm:$0xf] %v351_v44  ;;  %v355_v46 = vld [vmem:[%s3558_s12 + $0x158] sm:$0xf]  ;;  %v357_v47 = vld [vmem:[%s3558_s12 + $0x15c] sm:$0xf] }
  0x34   : >> { %354 = vst [vmem:[%s3560_s13 + $0xb4] sm:$0xf] %v353_v45  ;;  %356 = vst [vmem:[%s3560_s13 + $0xb8] sm:$0xf] %v355_v46  ;;  %v359_v48 = vld [vmem:[%s3558_s12 + $0x1b0] sm:$0xf] }
  0x35   : >> { %358 = vst [vmem:[%s3560_s13 + $0xbc] sm:$0xf] %v357_v47  ;;  %v361_v49 = vld [vmem:[%s3558_s12 + $0x1b4] sm:$0xf]  ;;  %v363_v50 = vld [vmem:[%s3558_s12 + $0x1b8] sm:$0xf] }
  0x36   : >> { %360 = vst [vmem:[%s3560_s13 + $0xc0] sm:$0xf] %v359_v48  ;;  %362 = vst [vmem:[%s3560_s13 + $0xc4] sm:$0xf] %v361_v49  ;;  %v365_v51 = vld [vmem:[%s3558_s12 + $0x1bc] sm:$0xf] }
  0x37   : >> { %364 = vst [vmem:[%s3560_s13 + $0xc8] sm:$0xf] %v363_v50  ;;  %v367_v52 = vld [vmem:[%s3558_s12 + $0x1c0] sm:$0xf]  ;;  %v369_v53 = vld [vmem:[%s3558_s12 + $0x1c4] sm:$0xf] }
  0x38   : >> { %366 = vst [vmem:[%s3560_s13 + $0xcc] sm:$0xf] %v365_v51  ;;  %368 = vst [vmem:[%s3560_s13 + $0xd0] sm:$0xf] %v367_v52  ;;  %v371_v54 = vld [vmem:[%s3558_s12 + $0x1c8] sm:$0xf] }
  0x39   : >> { %370 = vst [vmem:[%s3560_s13 + $0xd4] sm:$0xf] %v369_v53  ;;  %v373_v55 = vld [vmem:[%s3558_s12 + $0x1cc] sm:$0xf]  ;;  %v375_v56 = vld [vmem:[%s3558_s12 + $0x1d0] sm:$0xf] }
  0x3a   : >> { %372 = vst [vmem:[%s3560_s13 + $0xd8] sm:$0xf] %v371_v54  ;;  %374 = vst [vmem:[%s3560_s13 + $0xdc] sm:$0xf] %v373_v55  ;;  %v377_v57 = vld [vmem:[%s3558_s12 + $0x1d4] sm:$0xf] }
  0x3b   : >> { %376 = vst [vmem:[%s3560_s13 + $0xe0] sm:$0xf] %v375_v56  ;;  %v379_v58 = vld [vmem:[%s3558_s12 + $0x1d8] sm:$0xf]  ;;  %v381_v59 = vld [vmem:[%s3558_s12 + $0x1dc] sm:$0xf] }
  0x3c   : >> { %378 = vst [vmem:[%s3560_s13 + $0xe4] sm:$0xf] %v377_v57  ;;  %380 = vst [vmem:[%s3560_s13 + $0xe8] sm:$0xf] %v379_v58  ;;  %v383_v60 = vld [vmem:[%s3558_s12 + $0x1e0] sm:$0xf] }
  0x3d   : >> { %382 = vst [vmem:[%s3560_s13 + $0xec] sm:$0xf] %v381_v59  ;;  %v385_v61 = vld [vmem:[%s3558_s12 + $0x1e4] sm:$0xf]  ;;  %v387_v62 = vld [vmem:[%s3558_s12 + $0x1e8] sm:$0xf] }
  0x3e   : >> { %384 = vst [vmem:[%s3560_s13 + $0xf0] sm:$0xf] %v383_v60  ;;  %386 = vst [vmem:[%s3560_s13 + $0xf4] sm:$0xf] %v385_v61  ;;  %v389_v63 = vld [vmem:[%s3558_s12 + $0x1ec] sm:$0xf] }
  0x3f   : >> { %388 = vst [vmem:[%s3560_s13 + $0xf8] sm:$0xf] %v387_v62  ;;  %390 = vst [vmem:[%s3560_s13 + $0xfc] sm:$0xf] %v389_v63  ;;  %p256_p6 = scmp.ge.s32.totalorder %s257_s14, 1 }
  0x41   : > { %259 = sbr.rel (!%p256_p6) target bundleno = 21 (0x15), region = 229 }
  0x48 PF: > { %651 = sbr.rel (!%p3540_p3) target bundleno = 79 (0x4f), region = 94  ;;  %s653_s15 = sand.u32 (%p3540_p3), 1, %s3456_s22  }
  0x49   : > { %s2743_s16 = smul.u32 (%p3540_p3), 72, %s3464_s24  ;;  %s2742_s17 = sshll.u32 (%p3540_p3), %s653_s15, 5 }
  0x4a   : > { %s655_s28 = scalar_lea.vmem (%p3540_p3), [#allocation4], %s2742_s17 }
  0x4b   : > { %s2635_s20 = scalar_lea.vmem (%p3540_p3), %s4165_s1, %s2743_s16 }
  0x4c   : > { %v2744_v0 = vld [vmem:[%s2635_s20 + $0x40] sm:$0xff] (%p3540_p3)   ;;  %v2746_v1 = vld [vmem:[%s2635_s20 + $0xd0] sm:$0xff] (%p3540_p3)  }
  0x4d   : > { %v2748_v2 = vld [vmem:[%s2635_s20 + $0x160] sm:$0xff] (%p3540_p3)   ;;  %679 = vst [vmem:[%s655_s28] sm:$0xff] (%p3540_p3), %v2744_v0   ;;  %683 = vst [vmem:[%s655_s28 + $0x8] sm:$0xff] (%p3540_p3), %v2746_v1   ;;  %v2750_v3 = vld [vmem:[%s2635_s20 + $0x1f0] sm:$0xff] (%p3540_p3)  }
  0x4e   : > { %687 = vst [vmem:[%s655_s28 + $0x10] sm:$0xff] (%p3540_p3), %v2748_v2   ;;  %691 = vst [vmem:[%s655_s28 + $0x18] sm:$0xff] (%p3540_p3), %v2750_v3  }
  0x4f PF: > { %p2752_p7 = scmp.ge.s32.totalorder %s3468_s25, 1  ;;  %p731_p8 = scmp.lt.s32.totalorder %s3468_s25, 3 }
  0x51   : > { %p732_p9 = pnand %p2752_p7, %p731_p8 }
  0x52   : > { %p801_p10 = scmp.eq.s32.totalorder (!%p732_p9), %s3460_s23, 0  ;;  %p805_p11 = scmp.eq.s32.totalorder (!%p732_p9), %s3460_s23, 1  ;;  %v3316_v4 = vld [vmem:[%s4166_s2 + $0xc0] sm:$0xff] (!%p732_p9)   ;;  %v3320_v8 = vld [vmem:[%s4166_s2 + $0xc8] sm:$0xff] (!%p732_p9)   ;;  %v3324_v12 = vld [vmem:[%s4166_s2 + $0xd0] sm:$0xff] (!%p732_p9)   ;;  %vm841_vm3 = vcmask (!%p732_p9), 1040384  }
  0x53   : > { %735 = sbr.rel (%p732_p9) target bundleno = 485 (0x1e5), region = 135  ;;  %v3317_v5 = vld [vmem:[%s4166_s2 + $0x40] sm:$0xff] (!%p732_p9)   ;;  %3031 = vmatprep.subr.bf16.mxu0 (!%p732_p9), %v3316_v4  ;;  %v3321_v9 = vld [vmem:[%s4166_s2 + $0x48] sm:$0xff] (!%p732_p9)   ;;  %v3325_v13 = vld [vmem:[%s4166_s2 + $0x50] sm:$0xff] (!%p732_p9)   ;;  %s738_s28 = sand.u32 (!%p732_p9), 1, %s3452_s21  }
  0x54   : > { %v3318_v6 = vld [vmem:[%s4166_s2 + $0x80] sm:$0xff] (!%p732_p9)   ;;  %3071 = vmatprep.subr.bf16.mxu1 (!%p732_p9), %v3317_v5  ;;  %v3322_v10 = vld [vmem:[%s4166_s2 + $0x88] sm:$0xff] (!%p732_p9)   ;;  %v3326_v14 = vld [vmem:[%s4166_s2 + $0x90] sm:$0xff] (!%p732_p9)   ;;  %s2753_s11 = sshll.u32 (!%p732_p9), %s738_s28, 8  ;;  %vm1025_vm0 = vsmask.f32 (!%p732_p9), 3328 }
  0x55   : > { %v3319_v7 = vld [vmem:[%s4166_s2] sm:$0xff] (!%p732_p9)   ;;  %3032 = vmatpush3.bf16.msra.mxu0 (!%p732_p9), %v3318_v6  ;;  %v3323_v11 = vld [vmem:[%s4166_s2 + $0x8] sm:$0xff] (!%p732_p9)   ;;  %v3327_v15 = vld [vmem:[%s4166_s2 + $0x10] sm:$0xff] (!%p732_p9)   ;;  %s3808_s20 = scalar_lea.vmem (!%p732_p9), [#allocation3], %s2753_s11  ;;  %vm1026_vm1 = vsmask.f32 (!%p732_p9), 7440 }
  0x56   : > { %3072 = vmatpush3.bf16.msra.mxu1 (!%p732_p9), %v3319_v7  ;;  %3033 = vmatprep.subr.bf16.mxu0 (!%p732_p9), %v3320_v8  ;;  %v3328_v16 = vld [vmem:[%s4166_s2 + $0xd8] sm:$0xff] (!%p732_p9)   ;;  %v3332_v20 = vld [vmem:[%s4166_s2 + $0xe0] sm:$0xff] (!%p732_p9)   ;;  %v3336_v24 = vld [vmem:[%s4166_s2 + $0xe8] sm:$0xff] (!%p732_p9)   ;;  %s4020_s8 = sshll.u32 (!%p732_p9), %s738_s28, 5  ;;  %vm842_vm4 = vsmask.f32 (!%p732_p9), 256 }
  0x57   : > { %3073 = vmatprep.subr.bf16.mxu1 (!%p732_p9), %v3321_v9  ;;  %v3329_v17 = vld [vmem:[%s4166_s2 + $0x58] sm:$0xff] (!%p732_p9)   ;;  %v3333_v21 = vld [vmem:[%s4166_s2 + $0x60] sm:$0xff] (!%p732_p9)   ;;  %v3337_v25 = vld [vmem:[%s4166_s2 + $0x68] sm:$0xff] (!%p732_p9)   ;;  %s747_s9 = scalar_lea.vmem (!%p732_p9), [#allocation4], %s4020_s8  ;;  %p791_p12 = scmp.lt.s32.totalorder (!%p732_p9), %s3460_s23, 1 }
  0x58   : > { %v3330_v18 = vld [vmem:[%s4166_s2 + $0x98] sm:$0xff] (!%p732_p9)   ;;  %v3334_v22 = vld [vmem:[%s4166_s2 + $0xa0] sm:$0xff] (!%p732_p9)   ;;  %v3338_v26 = vld [vmem:[%s4166_s2 + $0xa8] sm:$0xff] (!%p732_p9)  }
  0x59   : > { %3034 = vmatpush3.bf16.msra.mxu0 (!%p732_p9), %v3322_v10  ;;  %v3331_v19 = vld [vmem:[%s4166_s2 + $0x18] sm:$0xff] (!%p732_p9)   ;;  %v3335_v23 = vld [vmem:[%s4166_s2 + $0x20] sm:$0xff] (!%p732_p9)   ;;  %v3339_v27 = vld [vmem:[%s4166_s2 + $0x28] sm:$0xff] (!%p732_p9)  }
  0x5a   : > { %3074 = vmatpush3.bf16.msra.mxu1 %v3323_v11  ;;  %3035 = vmatprep.subr.bf16.mxu0 %v3324_v12  ;;  %v3340_v28 = vld [vmem:[%s4166_s2 + $0xf0] sm:$0xff]   ;;  %v3344_v32 = vld [vmem:[%s4166_s2 + $0xf8] sm:$0xff]   ;;  %v3351_v49 = vld [vmem:[%s4166_s2 + $0x140] sm:$0xff]  }
  0x5b   : > { %3075 = vmatprep.subr.bf16.mxu1 %v3325_v13  ;;  %v3341_v29 = vld [vmem:[%s4166_s2 + $0x70] sm:$0xff]   ;;  %v3345_v33 = vld [vmem:[%s4166_s2 + $0x78] sm:$0xff]   ;;  %v3352_v50 = vld [vmem:[%s4166_s2 + $0x1c0] sm:$0xff]  }
  0x5c   : > { %v3342_v30 = vld [vmem:[%s4166_s2 + $0xb0] sm:$0xff]   ;;  %v3346_v34 = vld [vmem:[%s4166_s2 + $0xb8] sm:$0xff]   ;;  %vm3824_vm2 = vmor %vm1025_vm0, %vm1026_vm1 }
  0x5d   : > { %3036 = vmatpush3.bf16.msra.mxu0 %v3326_v14  ;;  %v3343_v31 = vld [vmem:[%s4166_s2 + $0x30] sm:$0xff]   ;;  %v3347_v35 = vld [vmem:[%s4166_s2 + $0x38] sm:$0xff]   ;;  %v3354_v60 = vld [vmem:[%s4166_s2 + $0x180] sm:$0xff]  }
  0x5e   : > { %3076 = vmatpush3.bf16.msra.mxu1 %v3327_v15  ;;  %3037 = vmatprep.subr.bf16.mxu0 %v3328_v16  ;;  %v3348_v36 = vld [vmem:[%s3808_s20 + $0x80] ss:$8 sps:$4 sm:$0xff]   ;;  %v1017_v40 = vld [vmem:[%s3808_s20 + $0x4] sm:$0x1]  ;;  %v1018_v41 = vld [vmem:[%s3808_s20 + $0xc] sm:$0x1] }
  0x5f   : > { %3077 = vmatprep.subr.bf16.mxu1 %v3329_v17  ;;  %v3349_v37 = vld [vmem:[%s3808_s20 + $0x40] ss:$8 sps:$4 sm:$0xff]   ;;  %1350 = vmatprep.mubr.bf16.mxu0 %v3348_v36  ;;  %v1038_v45 = vshll.u32 %v1017_v40, 16  ;;  %v1052_v48 = vshll.u32 %v1018_v41, 16  ;;  %v3353_v63 = vld [vmem:[%s4166_s2 + $0x100] sm:$0xff]   ;;  %v3356_v0 = vld [vmem:[%s4166_s2 + $0x1c8] sm:$0xff]  }
  0x60   : > { %v920_v38 = vld [vmem:[%s3808_s20] sm:$0xf]  ;;  %v921_v39 = vld [vmem:[%s3808_s20 + $0x8] sm:$0xf]  ;;  %1511 = vmatprep.mubr.bf16.mxu1 %v3349_v37  ;;  %v3355_v2 = vld [vmem:[%s4166_s2 + $0x148] sm:$0xff]  }
  0x61   : > { %3038 = vmatpush3.bf16.msra.mxu0 %v3330_v18  ;;  %v2767_v42 = vcombine.low %v920_v38, %v921_v39  ;;  %v1029_v43 = vshrl.u32 %v920_v38, 16  ;;  %v1032_v44 = vshll.u32 %v920_v38, 16  ;;  %v1043_v46 = vshrl.u32 %v921_v39, 16  ;;  %v3358_v4 = vld [vmem:[%s4166_s2 + $0x188] sm:$0xff]   ;;  %v922_v9 = vld [vmem:[%s3808_s20 + $0x10] sm:$0xf]  ;;  %vm4041_vm5 = vmand %vm841_vm3, %vm842_vm4 }
  0x62   : > { %3078 = vmatpush3.bf16.msra.mxu1 %v3331_v19  ;;  %3039 = vmatprep.subr.bf16.mxu0 %v3332_v20  ;;  %v1046_v47 = vshll.u32 %v921_v39, 16  ;;  %v1040_v57 = vrot.slane %v1038_v45, 5  ;;  %v1054_v59 = vrot.slane %v1052_v48, 5  ;;  %v3359_v6 = vld [vmem:[%s3808_s20 + $0x90] ss:$8 sps:$4 sm:$0xff]   ;;  %v1057_v13 = vshrl.u32 %v922_v9, 16 }
  0x63   : > { %3079 = vmatprep.subr.bf16.mxu1 %v3333_v21  ;;  %v1031_v51 = vrot.slane %v1029_v43, 4  ;;  %v1034_v52 = vrot.slane %v1032_v44, 5  ;;  %v1045_v53 = vrot.slane %v1043_v46, 4  ;;  %v3357_v7 = vld [vmem:[%s4166_s2 + $0x108] sm:$0xff]   ;;  %v1019_v11 = vld [vmem:[%s3808_s20 + $0x14] sm:$0x1] }
  0x64   : > { %v1048_v54 = vrot.slane %v1046_v47, 5  ;;  %v3360_v8 = vld [vmem:[%s3808_s20 + $0x50] ss:$8 sps:$4 sm:$0xff]   ;;  %v1020_v12 = vld [vmem:[%s3808_s20 + $0x1c] sm:$0x1]  ;;  %v1060_v14 = vshll.u32 %v922_v9, 16 }
  0x65   : > { %3040 = vmatpush3.bf16.msra.mxu0 %v3334_v22  ;;  %v1035_v56 = vor.u32 %v1034_v52, %v1031_v51  ;;  %v923_v10 = vld [vmem:[%s3808_s20 + $0x18] sm:$0xf]  ;;  %v1066_v15 = vshll.u32 %v1019_v11, 16  ;;  %v1080_v18 = vshll.u32 %v1020_v12, 16  ;;  %v3362_v20 = vld [vmem:[%s4166_s2 + $0x150] sm:$0xff]   ;;  %v1059_v22 = vrot.slane %v1057_v13, 4 }
  0x66   : > { %3080 = vmatpush3.bf16.msra.mxu1 %v3335_v23  ;;  %3041 = vmatprep.subr.bf16.mxu0 %v3336_v24  ;;  %v1049_v58 = vor.u32 %v1048_v54, %v1045_v53  ;;  %v1071_v16 = vshrl.u32 %v923_v10, 16  ;;  %v1074_v17 = vshll.u32 %v923_v10, 16  ;;  %v2768_v19 = vcombine.low %v922_v9, %v923_v10  ;;  %v3363_v21 = vld [vmem:[%s4166_s2 + $0x1d0] sm:$0xff]   ;;  %v3368_v37 = vld [vmem:[%s4166_s2 + $0x118] sm:$0xff]   ;;  %v3373_v54 = vld [vmem:[%s4166_s2 + $0x160] sm:$0xff]  }
  0x67   : > { %3081 = vmatprep.subr.bf16.mxu1 %v3337_v25  ;;  %v1036_v61 = vrot.slane %v1035_v56, 4  ;;  %v1062_v23 = vrot.slane %v1060_v14, 5  ;;  %v3369_v39 = vld [vmem:[%s4166_s2 + $0x198] sm:$0xff]   ;;  %v924_v43 = vld [vmem:[%s3808_s20 + $0x20] sm:$0xf]  ;;  %v3374_v56 = vld [vmem:[%s4166_s2 + $0x1e0] sm:$0xff]  }
  0x68   : > { %v1050_v62 = vrot.slane %v1049_v58, 4  ;;  %v1073_v24 = vrot.slane %v1071_v16, 4  ;;  %v1076_v25 = vrot.slane %v1074_v17, 5  ;;  %v3370_v41 = vld [vmem:[%s3808_s20 + $0xa0] ss:$8 sps:$4 sm:$0xff]   ;;  %v1085_v47 = vshrl.u32 %v924_v43, 16 }
  0x69   : > { %3042 = vmatpush3.bf16.msra.mxu0 %v3338_v26  ;;  %v1041_v1 = vsel %vm3824_vm2, %v1036_v61, %v1040_v57  ;;  %v1063_v26 = vor.u32 %v1062_v23, %v1059_v22  ;;  %v925_v44 = vld [vmem:[%s3808_s20 + $0x28] sm:$0xf]  ;;  %v1021_v45 = vld [vmem:[%s3808_s20 + $0x24] sm:$0x1]  ;;  %v1022_v46 = vld [vmem:[%s3808_s20 + $0x2c] sm:$0x1] }
  0x6a   : > { %3082 = vmatpush3.bf16.msra.mxu1 %v3339_v27  ;;  %3043 = vmatprep.subr.bf16.mxu0 %v3340_v28  ;;  %v1055_v3 = vsel %vm3824_vm2, %v1050_v62, %v1054_v59  ;;  %v1068_v27 = vrot.slane %v1066_v15, 5  ;;  %v3364_v28 = vld [vmem:[%s4166_s2 + $0x110] sm:$0xff]   ;;  %v1088_v48 = vshll.u32 %v924_v43, 16  ;;  %v1102_v51 = vshll.u32 %v925_v44, 16  ;;  %v3380_v10 = vld [vmem:[%s4166_s2 + $0x1a8] sm:$0xff]  }
  0x6b   : > { %3083 = vmatprep.subr.bf16.mxu1 %v3341_v29  ;;  %v2783_v5 = vcombine.low %v1041_v1, %v1055_v3  ;;  %v1077_v29 = vor.u32 %v1076_v25, %v1073_v24  ;;  %v1108_v52 = vshll.u32 %v1022_v46, 16  ;;  %v2769_v53 = vcombine.low %v924_v43, %v925_v44  ;;  %v3381_v12 = vld [vmem:[%s3808_s20 + $0xb0] ss:$8 sps:$4 sm:$0xff]   ;;  %v1023_v16 = vld [vmem:[%s3808_s20 + $0x34] sm:$0x1]  ;;  %v3384_v25 = vld [vmem:[%s4166_s2 + $0x170] sm:$0xff]  }
  0x6c   : > { %v1087_v57 = vrot.slane %v1085_v47, 4  ;;  %v1090_v58 = vrot.slane %v1088_v48, 5  ;;  %v3382_v13 = vld [vmem:[%s3808_s20 + $0x70] ss:$8 sps:$4 sm:$0xff]   ;;  %v1024_v17 = vld [vmem:[%s3808_s20 + $0x3c] sm:$0x1] }
  0x6d   : > { %3044 = vmatpush3.bf16.msra.mxu0 %v3342_v30  ;;  %v1082_v30 = vrot.slane %v1080_v18, 5  ;;  %v1110_v1 = vrot.slane %v1108_v52, 5  ;;  %v926_v14 = vld [vmem:[%s3808_s20 + $0x30] sm:$0xf]  ;;  %v927_v15 = vld [vmem:[%s3808_s20 + $0x38] sm:$0xf] }
  0x6e   : > { %3084 = vmatpush3.bf16.msra.mxu1 %v3343_v31  ;;  %3045 = vmatprep.subr.bf16.mxu0 %v3344_v32  ;;  %v3365_v31 = vld [vmem:[%s4166_s2 + $0x190] sm:$0xff]   ;;  %v1064_v32 = vrot.slane %v1063_v26, 4  ;;  %v1091_v61 = vor.u32 %v1090_v58, %v1087_v57  ;;  %v1113_v18 = vshrl.u32 %v926_v14, 16  ;;  %v1130_v22 = vshll.u32 %v927_v15, 16  ;;  %v2865_v48 = vld [vmem:[%s3808_s20 + $0x88] sm:$0xf] }
  0x6f   : > { %3085 = vmatprep.subr.bf16.mxu1 %v3345_v33  ;;  %v3366_v33 = vld [vmem:[%s4166_s2 + $0x158] sm:$0xff]   ;;  %v1136_v23 = vshll.u32 %v1024_v17, 16  ;;  %v2770_v24 = vcombine.low %v926_v14, %v927_v15  ;;  %v3385_v26 = vld [vmem:[%s4166_s2 + $0x1f0] sm:$0xff]   ;;  %v828_v58 = vld [vmem:[%s3808_s20 + $0x50] sm:$0xf] }
  0x70   : > { %v1069_v36 = vsel %vm3824_vm2, %v1064_v32, %v1068_v27  ;;  %v1092_v3 = vrot.slane %v1091_v61, 4  ;;  %v1115_v27 = vrot.slane %v1113_v18, 4  ;;  %v2864_v47 = vld [vmem:[%s3808_s20 + $0x84] sm:$0x1]  ;;  %883 = vst [vmem:[#allocation2 + $0x58] sm:$0xf] %v828_v58 }
  0x71   : > { %3046 = vmatpush3.bf16.msra.mxu0 %v3346_v34  ;;  %v1078_v34 = vrot.slane %v1077_v29, 4  ;;  %v1579_v52 = vshll.u32 %v2864_v47, 16 }
  0x72   : > { %3086 = vmatpush3.bf16.msra.mxu1 %v3347_v35  ;;  %3111 = vmatprep.subr.bf16.mxu0 %v3351_v49  ;;  %v3367_v35 = vld [vmem:[%s4166_s2 + $0x1d8] sm:$0xff]   ;;  %v1094_v49 = vshll.u32 %v1021_v45, 16  ;;  %v2863_v45 = vld [vmem:[%s3808_s20 + $0x80] sm:$0xf] }
  0x73   : > { %3151 = vmatprep.subr.bf16.mxu1 %v3352_v50  ;;  %v1083_v38 = vsel %vm3824_vm2, %v1078_v34, %v1082_v30  ;;  %v1099_v50 = vshrl.u32 %v925_v44, 16  ;;  %v1132_v30 = vrot.slane %v1130_v22, 5  ;;  %v3391_v44 = vld [vmem:[%s4166_s2 + $0x1b8] sm:$0xff]  }
  0x74   : > { %1351 = vmatmul.mubr.bf16.vlgmr.msra.gmra.mrb[0].mxu0 %v2783_v5  ;;  %v2784_v40 = vcombine.low %v1069_v36, %v1083_v38  ;;  %v1096_v62 = vrot.slane %v1094_v49, 5  ;;  %v3387_v36 = vld [vmem:[%s4166_s2 + $0x1b0] sm:$0xff]   ;;  %v3388_v38 = vld [vmem:[%s4166_s2 + $0x178] sm:$0xff]  }
  0x75   : > { %1512 = vmatmul.mubr.bf16.vlgmr.msra.gmra.mrb[0].mxu1 %v2767_v42  ;;  %3112 = vmatpush3.bf16.msra.mxu0 %v3353_v63  ;;  %v3371_v42 = vld [vmem:[%s3808_s20 + $0x60] ss:$8 sps:$4 sm:$0xff]   ;;  %v1101_v59 = vrot.slane %v1099_v50, 4  ;;  %v3375_v63 = vld [vmem:[%s4166_s2 + $0x120] sm:$0xff]   ;;  %v2866_v49 = vld [vmem:[%s3808_s20 + $0x8c] sm:$0x1] }
  0x76   : > { %3152 = vmatpush3.bf16.msra.mxu1 %v3354_v60  ;;  %1358 = vmatprep.mubr.bf16.mxu0 %v3359_v6  ;;  %v1104_v60 = vrot.slane %v1102_v51, 5  ;;  %v3378_v6 = vld [vmem:[%s4166_s2 + $0x1e8] sm:$0xff]   ;;  %v1570_v50 = vshrl.u32 %v2863_v45, 16  ;;  %v1573_v51 = vshll.u32 %v2863_v45, 16  ;;  %v1593_v57 = vshll.u32 %v2866_v49, 16 }
  0x77   : > { %3153 = vmatprep.subr.bf16.mxu1 %v3356_v0  ;;  %3113 = vmatprep.subr.bf16.mxu0 %v3355_v2  ;;  %v3376_v2 = vld [vmem:[%s4166_s2 + $0x1a0] sm:$0xff]   ;;  %v2873_v45 = vld [vmem:[%s3808_s20 + $0xa8] sm:$0xf] }
  0x78   : > { %1519 = vmatprep.mubr.bf16.mxu1 %v3360_v8  ;;  %v1105_v0 = vor.u32 %v1104_v60, %v1101_v59  ;;  %v3379_v8 = vld [vmem:[%s4166_s2 + $0x128] sm:$0xff]   ;;  %v1572_v59 = vrot.slane %v1570_v50, 4  ;;  %v1575_v60 = vrot.slane %v1573_v51, 5 }
  0x79   : > { %3114 = vmatpush3.bf16.msra.mxu0 %v3357_v7  ;;  %v1097_v7 = vsel %vm3824_vm2, %v1092_v3, %v1096_v62  ;;  %v1581_v62 = vrot.slane %v1579_v52, 5 }
  0x7a   : > { %3154 = vmatpush3.bf16.msra.mxu1 %v3358_v4  ;;  %3115 = vmatprep.subr.bf16.mxu0 %v3362_v20  ;;  %v3377_v4 = vld [vmem:[%s4166_s2 + $0x168] sm:$0xff]   ;;  %v1106_v5 = vrot.slane %v1105_v0, 4  ;;  %v1122_v20 = vshll.u32 %v1023_v16, 16  ;;  %v810_v0 = vld [vmem:[%s3808_s20 + $0x8] sm:$0xf] }
  0x7b   : > { %3155 = vmatprep.subr.bf16.mxu1 %v3363_v21  ;;  %v1127_v21 = vshrl.u32 %v927_v15, 16  ;;  %847 = vst [vmem:[#allocation2 + $0x8] sm:$0xf] %v810_v0 }
  0x7c   : > { %1359 = vmatmul.mubr.bf16.gmra.mrb[4].mxu0 %v2784_v40  ;;  %v1111_v9 = vsel %vm3824_vm2, %v1106_v5, %v1110_v1  ;;  %v1124_v32 = vrot.slane %v1122_v20, 5  ;;  %v3389_v40 = vld [vmem:[%s4166_s2 + $0x1f8] sm:$0xff]   ;;  %v1576_v1 = vor.u32 %v1575_v60, %v1572_v59  ;;  %v3395_v5 = vld [vmem:[%s4167_s3] sm:$0xff]  }
  0x7d   : > { %1520 = vmatmul.mubr.bf16.gmra.mrb[4].mxu1 %v2768_v19  ;;  %3116 = vmatpush3.bf16.msra.mxu0 %v3364_v28  ;;  %v2785_v11 = vcombine.low %v1097_v7, %v1111_v9  ;;  %v1116_v19 = vshll.u32 %v926_v14, 16  ;;  %v1129_v29 = vrot.slane %v1127_v21, 4  ;;  %v2867_v7 = vld [vmem:[%s3808_s20 + $0x90] sm:$0xf]  ;;  %v834_v60 = vld [vmem:[%s3808_s20 + $0x68] sm:$0xf] }
  0x7e   : > { %3156 = vmatpush3.bf16.msra.mxu1 %v3365_v31  ;;  %3117 = vmatprep.subr.bf16.mxu0 %v3366_v33  ;;  %v3386_v33 = vld [vmem:[%s4166_s2 + $0x130] sm:$0xff]   ;;  %v1601_v15 = vshll.u32 %v2867_v7, 16  ;;  %895 = vst [vmem:[#allocation2 + $0x70] sm:$0xf] %v834_v60  ;;  %v888_v60 = vld [vmem:[#allocation2 + $0x64] sm:$0x1] }
  0x7f   : > { %3157 = vmatprep.subr.bf16.mxu1 %v3367_v35  ;;  %1366 = vmatprep.mubr.bf16.mxu0 %v3370_v41  ;;  %v1118_v28 = vrot.slane %v1116_v19, 5  ;;  %v1133_v34 = vor.u32 %v1132_v30, %v1129_v29  ;;  %v1138_v35 = vrot.slane %v1136_v23, 5  ;;  %v3396_v23 = vld [vmem:[%s4167_s3 + $0x8] sm:$0xff]   ;;  %v832_v30 = vld [vmem:[%s3808_s20 + $0x60] sm:$0xf] }
  0x80   : > { %1527 = vmatprep.mubr.bf16.mxu1 %v3371_v42  ;;  %v3390_v42 = vld [vmem:[%s4166_s2 + $0x138] sm:$0xff]   ;;  %891 = vst [vmem:[#allocation2 + $0x68] sm:$0xf] %v832_v30  ;;  %v4016_v30 = vld [vmem:[%s4167_s3 + $0x30] sm:$0xff]  }
  0x81   : > { %3118 = vmatpush3.bf16.msra.mxu0 %v3368_v37  ;;  %v1119_v31 = vor.u32 %v1118_v28, %v1115_v27  ;;  %v830_v27 = vld [vmem:[%s3808_s20 + $0x58] sm:$0xf] }
  0x82   : > { %3158 = vmatpush3.bf16.msra.mxu1 %v3369_v39  ;;  %3119 = vmatprep.subr.bf16.mxu0 %v3373_v54  ;;  %v1134_v39 = vrot.slane %v1133_v34, 4  ;;  %v826_v54 = vld [vmem:[%s3808_s20 + $0x48] sm:$0xf]  ;;  %887 = vst [vmem:[#allocation2 + $0x60] sm:$0xf] %v830_v27 }
  0x83   : > { %3159 = vmatprep.subr.bf16.mxu1 %v3374_v56  ;;  %v1120_v37 = vrot.slane %v1119_v31, 4  ;;  %v1587_v56 = vshll.u32 %v2865_v48, 16  ;;  %879 = vst [vmem:[#allocation2 + $0x50] sm:$0xf] %v826_v54  ;;  %v1643_v54 = vshll.u32 %v2873_v45, 16 }
  0x84   : > { %1367 = vmatmul.mubr.bf16.gmra.mrb[8].mxu0 %v2785_v11  ;;  %v1139_v43 = vsel %vm3824_vm2, %v1134_v39, %v1138_v35  ;;  %v2869_v11 = vld [vmem:[%s3808_s20 + $0x98] sm:$0xf] }
  0x85   : > { %1528 = vmatmul.mubr.bf16.gmra.mrb[8].mxu1 %v2769_v53  ;;  %3120 = vmatpush3.bf16.msra.mxu0 %v3375_v63  ;;  %v1125_v41 = vsel %vm3824_vm2, %v1120_v37, %v1124_v32  ;;  %v1584_v53 = vshrl.u32 %v2865_v48, 16  ;;  %v1589_v63 = vrot.slane %v1587_v56, 5  ;;  %v1612_v17 = vshrl.u32 %v2869_v11, 16  ;;  %v816_v37 = vld [vmem:[%s3808_s20 + $0x20] sm:$0xf]  ;;  %v3401_v48 = vld [vmem:[%s4167_s3 + $0x18] sm:$0xff]  }
  0x86   : > { %3160 = vmatpush3.bf16.msra.mxu1 %v3376_v2  ;;  %3121 = vmatprep.subr.bf16.mxu0 %v3377_v4  ;;  %v2786_v46 = vcombine.low %v1125_v41, %v1139_v43  ;;  %v812_v2 = vld [vmem:[%s3808_s20 + $0x10] sm:$0xf]  ;;  %v1595_v4 = vrot.slane %v1593_v57, 5  ;;  %v1615_v21 = vshll.u32 %v2869_v11, 16  ;;  %859 = vst [vmem:[#allocation2 + $0x20] sm:$0xf] %v816_v37 }
  0x87   : > { %3161 = vmatprep.subr.bf16.mxu1 %v3378_v6  ;;  %1374 = vmatprep.mubr.bf16.mxu0 %v3381_v12  ;;  %v1586_v61 = vrot.slane %v1584_v53, 4  ;;  %851 = vst [vmem:[#allocation2 + $0x10] sm:$0xf] %v812_v2  ;;  %v1577_v6 = vrot.slane %v1576_v1, 4  ;;  %v2870_v12 = vld [vmem:[%s3808_s20 + $0x9c] sm:$0x1] }
  0x88   : > { %1535 = vmatprep.mubr.bf16.mxu1 %v3382_v13  ;;  %v1598_v13 = vshrl.u32 %v2867_v7, 16  ;;  %v1617_v28 = vrot.slane %v1615_v21, 5  ;;  %v1621_v29 = vshll.u32 %v2870_v12, 16  ;;  %v3398_v39 = vld [vmem:[%s3808_s20 + $0xd0] ss:$8 sps:$4 sm:$0xff]   ;;  %v1640_v53 = vshrl.u32 %v2873_v45, 16 }
  0x89   : > { %3122 = vmatpush3.bf16.msra.mxu0 %v3379_v8  ;;  %v1590_v3 = vor.u32 %v1589_v63, %v1586_v61  ;;  %v2868_v8 = vld [vmem:[%s3808_s20 + $0x94] sm:$0x1]  ;;  %v1582_v14 = vsel %vm3824_vm2, %v1577_v6, %v1581_v62  ;;  %v3397_v52 = vld [vmem:[#allocation2 + $0x60] ss:$8 sps:$4 sm:$0xff]   ;;  %v1645_v62 = vrot.slane %v1643_v54, 5 }
  0x8a   : > { %3162 = vmatpush3.bf16.msra.mxu1 %v3380_v10  ;;  %3123 = vmatprep.subr.bf16.mxu0 %v3384_v25  ;;  %v3393_v10 = vld [vmem:[%s3808_s20 + $0xc0] ss:$8 sps:$4 sm:$0xff]   ;;  %v1607_v16 = vshll.u32 %v2868_v8, 16  ;;  %v1600_v20 = vrot.slane %v1598_v13, 4  ;;  %v1623_v34 = vrot.slane %v1621_v29, 5  ;;  %v1642_v61 = vrot.slane %v1640_v53, 4 }
  0x8b   : > { %3163 = vmatprep.subr.bf16.mxu1 %v3385_v26  ;;  %v1591_v9 = vrot.slane %v1590_v3, 4  ;;  %v3392_v19 = vld [vmem:[#allocation2 + $0x50] ss:$8 sps:$4 sm:$0xff]   ;;  %v1614_v26 = vrot.slane %v1612_v17, 4  ;;  %v836_v63 = vld [vmem:[%s3808_s20 + $0x70] sm:$0xf] }
  0x8c   : > { %1375 = vmatmul.mubr.bf16.gmra.mrb[12].mxu0 %v2786_v46  ;;  %v1609_v25 = vrot.slane %v1607_v16, 5  ;;  %v2874_v46 = vld [vmem:[%s3808_s20 + $0xac] sm:$0x1]  ;;  %899 = vst [vmem:[#allocation2 + $0x78] sm:$0xf] %v836_v63  ;;  %v1646_v2 = vor.u32 %v1645_v62, %v1642_v61  ;;  %v3406_v17 = vld [vmem:[%s4167_s3 + $0x28] sm:$0xff]  }
  0x8d   : > { %1536 = vmatmul.mubr.bf16.gmra.mrb[12].mxu1 %v2770_v24  ;;  %3124 = vmatpush3.bf16.msra.mxu0 %v3386_v33  ;;  %v1596_v18 = vsel %vm3824_vm2, %v1591_v9, %v1595_v4  ;;  %v1603_v24 = vrot.slane %v1601_v15, 5  ;;  %v1618_v33 = vor.u32 %v1617_v28, %v1614_v26  ;;  %v1649_v59 = vshll.u32 %v2874_v46, 16  ;;  %v3405_v4 = vld [vmem:[%s4167_s3 + $0x20] sm:$0xff]   ;;  %v818_v6 = vld [vmem:[%s3808_s20 + $0x28] sm:$0xf] }
  0x8e   : > { %3164 = vmatpush3.bf16.msra.mxu1 %v3387_v36  ;;  %3125 = vmatprep.subr.bf16.mxu0 %v3388_v38  ;;  %v2883_v22 = vcombine.low %v1582_v14, %v1596_v18  ;;  %v3394_v31 = vld [vmem:[#allocation2 + $0x8] ss:$8 sps:$4 sm:$0xff]   ;;  %v820_v7 = vld [vmem:[%s3808_s20 + $0x30] sm:$0xf]  ;;  %v1647_v8 = vrot.slane %v1646_v2, 4  ;;  %v3411_v46 = vld [vmem:[%s4167_s3 + $0x38] sm:$0xff]  }
  0x8f   : > { %3165 = vmatprep.subr.bf16.mxu1 %v3389_v40  ;;  %2150 = vmatprep.mubr.bf16.mxu1 %v3392_v19  ;;  %v1604_v32 = vor.u32 %v1603_v24, %v1600_v20  ;;  %v814_v36 = vld [vmem:[%s3808_s20 + $0x18] sm:$0xf]  ;;  %v1619_v38 = vrot.slane %v1618_v33, 4  ;;  %v3400_v40 = vld [vmem:[%s4167_s3 + $0x10] sm:$0xff]   ;;  %v1651_v3 = vrot.slane %v1649_v59, 5 }
  0x90   : > { %1882 = vmatprep.mubr.bf16.mxu0 %v2883_v22  ;;  %855 = vst [vmem:[#allocation2 + $0x18] sm:$0xf] %v814_v36  ;;  %v3403_v9 = vld [vmem:[%s3808_s20 + $0xe0] ss:$8 sps:$4 sm:$0xff]   ;;  %863 = vst [vmem:[#allocation2 + $0x28] sm:$0xf] %v818_v6 }
  0x91   : > { %3126 = vmatpush3.bf16.msra.mxu0 %v3390_v42  ;;  %v1605_v35 = vrot.slane %v1604_v32, 4  ;;  %v2871_v42 = vld [vmem:[%s3808_s20 + $0xa0] sm:$0xf]  ;;  %v1624_v43 = vsel %vm3824_vm2, %v1619_v38, %v1623_v34  ;;  %867 = vst [vmem:[#allocation2 + $0x30] sm:$0xf] %v820_v7  ;;  %v1652_v12 = vsel %vm3824_vm2, %v1647_v8, %v1651_v3 }
  0x92   : > { %3166 = vmatpush3.bf16.msra.mxu1 %v3391_v44  ;;  %3203 = vmatprep.subr.bf16.mxu0 %v3395_v5  ;;  %v2872_v44 = vld [vmem:[%s3808_s20 + $0xa4] sm:$0x1]  ;;  %v1626_v49 = vshrl.u32 %v2871_v42, 16  ;;  %v1629_v50 = vshll.u32 %v2871_v42, 16  ;;  %v2875_v11 = vld [vmem:[%s3808_s20 + $0xb0] sm:$0xf] }
  0x93   : > { %3227 = vmatprep.subr.bf16.mxu1 %v3395_v5  ;;  %v1610_v41 = vsel %vm3824_vm2, %v1605_v35, %v1609_v25  ;;  %v1635_v51 = vshll.u32 %v2872_v44, 16  ;;  %v2876_v13 = vld [vmem:[%s3808_s20 + $0xb4] sm:$0x1]  ;;  %v2877_v14 = vld [vmem:[%s3808_s20 + $0xb8] sm:$0xf]  ;;  %v1654_v18 = vshrl.u32 %v2875_v11, 16 }
  0x94   : > { %1883 = vmatmul.mubr.bf16.vlgmr.msra.gmra.mrb[16].mxu0 %v3393_v10  ;;  %v2884_v47 = vcombine.low %v1610_v41, %v1624_v43  ;;  %v1628_v56 = vrot.slane %v1626_v49, 4  ;;  %v1631_v57 = vrot.slane %v1629_v50, 5  ;;  %v2878_v15 = vld [vmem:[%s3808_s20 + $0xbc] sm:$0x1]  ;;  %v1657_v19 = vshll.u32 %v2875_v11, 16 }
  0x95   : > { %2151 = vmatmul.mubr.bf16.vlgmr.msra.gmra.mrb[16].mxu1 %v3394_v31  ;;  %3204 = vmatpush3.bf16.msra.mxu0 %v3395_v5  ;;  %v1637_v58 = vrot.slane %v1635_v51, 5  ;;  %v1663_v20 = vshll.u32 %v2876_v13, 16  ;;  %v3402_v21 = vld [vmem:[#allocation2 + $0x70] ss:$8 sps:$4 sm:$0xff]   ;;  %v1668_v22 = vshrl.u32 %v2877_v14, 16  ;;  %v1656_v24 = vrot.slane %v1654_v18, 4 }
  0x96   : > { %3235 = vmatpush3.bf16.msra.mxu1 %v3395_v5  ;;  %3205 = vmatprep.subr.bf16.mxu0 %v3396_v23  ;;  %v1632_v1 = vor.u32 %v1631_v57, %v1628_v56  ;;  %v1659_v25 = vrot.slane %v1657_v19, 5  ;;  %v1677_v26 = vshll.u32 %v2878_v15, 16  ;;  %v809_v35 = vld [vmem:[%s3808_s20 + $0x4] sm:$0x1]  ;;  %v827_v37 = vld [vmem:[%s3808_s20 + $0x4c] sm:$0x1] }
  0x97   : > { %3228 = vmatprep.subr.bf16.mxu1 %v3396_v23  ;;  %1890 = vmatprep.mubr.bf16.mxu0 %v2884_v47  ;;  %v3399_v0 = vld [vmem:[#allocation2 + $0x18] ss:$8 sps:$4 sm:$0xff]   ;;  %v1665_v27 = vrot.slane %v1663_v20, 5  ;;  %v1670_v28 = vrot.slane %v1668_v22, 4  ;;  %v825_v36 = vld [vmem:[%s3808_s20 + $0x44] sm:$0x1] }
  0x98   : > { %2158 = vmatprep.mubr.bf16.mxu1 %v3397_v52  ;;  %v1633_v5 = vrot.slane %v1632_v1, 4  ;;  %v3404_v31 = vld [vmem:[#allocation2 + $0x28] ss:$8 sps:$4 sm:$0xff]   ;;  %v1660_v32 = vor.u32 %v1659_v25, %v1656_v24  ;;  %v1679_v34 = vrot.slane %v1677_v26, 5  ;;  %v833_v41 = vld [vmem:[%s3808_s20 + $0x64] sm:$0x1] }
  0x99   : > { %3206 = vmatpush3.bf16.msra.mxu0 %v3396_v23  ;;  %v835_v43 = vld [vmem:[%s3808_s20 + $0x6c] sm:$0x1]  ;;  %v837_v44 = vld [vmem:[%s3808_s20 + $0x74] sm:$0x1]  ;;  %v838_v45 = vld [vmem:[%s3808_s20 + $0x78] sm:$0xf] }
  0x9a   : > { %3236 = vmatpush3.bf16.msra.mxu1 %v3396_v23  ;;  %3207 = vmatprep.subr.bf16.mxu0 %v3400_v40  ;;  %v1638_v10 = vsel %vm3824_vm2, %v1633_v5, %v1637_v58  ;;  %v1671_v23 = vshll.u32 %v2877_v14, 16  ;;  %v1661_v38 = vrot.slane %v1660_v32, 4  ;;  %v844_v49 = vld [vmem:[#allocation2 + $0x4] sm:$0x1]  ;;  %903 = vst [vmem:[#allocation2 + $0x80] sm:$0xf] %v838_v45 }
  0x9b   : > { %3229 = vmatprep.subr.bf16.mxu1 %v3400_v40  ;;  %v2885_v16 = vcombine.low %v1638_v10, %v1652_v12  ;;  %v876_v52 = vld [vmem:[#allocation2 + $0x4c] sm:$0x1]  ;;  %v880_v53 = vld [vmem:[#allocation2 + $0x54] sm:$0x1]  ;;  %v845_v56 = vsel %vm4041_vm5, %v809_v35, %v844_v49  ;;  %v884_v59 = vld [vmem:[#allocation2 + $0x5c] sm:$0x1] }
  0x9c   : > { %1891 = vmatmul.mubr.bf16.gmra.mrb[20].mxu0 %v3398_v39  ;;  %v1673_v29 = vrot.slane %v1671_v23, 5  ;;  %v829_v39 = vld [vmem:[%s3808_s20 + $0x54] sm:$0x1]  ;;  %v1666_v47 = vsel %vm3824_vm2, %v1661_v38, %v1665_v27  ;;  %v877_v57 = vsel %vm4041_vm5, %v825_v36, %v876_v52  ;;  %v881_v58 = vsel %vm4041_vm5, %v827_v37, %v880_v53  ;;  %v892_v61 = vld [vmem:[#allocation2 + $0x6c] sm:$0x1] }
  0x9d   : > { %3208 = vmatpush3.bf16.msra.mxu0 %v3400_v40  ;;  %2159 = vmatmul.mubr.bf16.gmra.mrb[20].mxu1 %v3399_v0  ;;  %846 = vst [vmem:[#allocation2 + $0x4] sm:$0x1] %v845_v56  ;;  %878 = vst [vmem:[#allocation2 + $0x4c] sm:$0x1] %v877_v57  ;;  %v885_v62 = vsel %vm4041_vm5, %v829_v39, %v884_v59  ;;  %v893_v0 = vsel %vm4041_vm5, %v833_v41, %v892_v61  ;;  %v896_v1 = vld [vmem:[#allocation2 + $0x74] sm:$0x1] }
  0x9e   : > { %3237 = vmatpush3.bf16.msra.mxu1 %v3400_v40  ;;  %3209 = vmatprep.subr.bf16.mxu0 %v3401_v48  ;;  %v1674_v33 = vor.u32 %v1673_v29, %v1670_v28  ;;  %v831_v40 = vld [vmem:[%s3808_s20 + $0x5c] sm:$0x1]  ;;  %882 = vst [vmem:[#allocation2 + $0x54] sm:$0x1] %v881_v58  ;;  %v900_v2 = vld [vmem:[#allocation2 + $0x7c] sm:$0x1] }
  0x9f   : > { %3230 = vmatprep.subr.bf16.mxu1 %v3401_v48  ;;  %1898 = vmatprep.mubr.bf16.mxu0 %v2885_v16  ;;  %v889_v63 = vsel %vm4041_vm5, %v831_v40, %v888_v60  ;;  %v904_v3 = vld [vmem:[#allocation2 + $0x84] sm:$0x1]  ;;  %886 = vst [vmem:[#allocation2 + $0x5c] sm:$0x1] %v885_v62  ;;  %894 = vst [vmem:[#allocation2 + $0x6c] sm:$0x1] %v893_v0  ;;  %v901_v5 = vsel %vm4041_vm5, %v837_v44, %v900_v2 }
  0xa0   : > { %2166 = vmatprep.mubr.bf16.mxu1 %v3402_v21  ;;  %v1675_v42 = vrot.slane %v1674_v33, 4  ;;  %890 = vst [vmem:[#allocation2 + $0x64] sm:$0x1] %v889_v63  ;;  %v908_v7 = vld [vmem:[%s747_s9 + $0x4] sm:$0x1] }
  0xa1   : > { %3210 = vmatpush3.bf16.msra.mxu0 %v3401_v48  ;;  %v909_v8 = vld [vmem:[%s747_s9 + $0x8] sm:$0xf]  ;;  %902 = vst [vmem:[#allocation2 + $0x7c] sm:$0x1] %v901_v5  ;;  %v913_v10 = vld [vmem:[#allocation2 + $0x44] sm:$0x1] }
  0xa2   : > { %3238 = vmatpush3.bf16.msra.mxu1 %v3401_v48  ;;  %3211 = vmatprep.subr.bf16.mxu0 %v3405_v4  ;;  %v839_v48 = vld [vmem:[%s3808_s20 + $0x7c] sm:$0x1]  ;;  %v1680_v50 = vsel %vm3824_vm2, %v1675_v42, %v1679_v34  ;;  %916 = vst [vmem:[#allocation2 + $0x88] sm:$0xf] %v909_v8  ;;  %v914_v12 = vsel %vm4041_vm5, %v908_v7, %v913_v10  ;;  %v3408_v14 = vld [vmem:[%s3808_s20 + $0xf0] ss:$8 sps:$4 sm:$0xff]  }
  0xa3   : > { %3231 = vmatprep.subr.bf16.mxu1 %v3405_v4  ;;  %v2886_v54 = vcombine.low %v1666_v47, %v1680_v50  ;;  %v905_v6 = vsel %vm4041_vm5, %v839_v48, %v904_v3  ;;  %v917_v11 = vld [vmem:[#allocation2 + $0x8c] sm:$0x1]  ;;  %v822_v15 = vld [vmem:[%s3808_s20 + $0x38] sm:$0xf]  ;;  %915 = vst [vmem:[#allocation2 + $0x44] sm:$0x1] %v914_v12 }
  0xa4   : > { %1899 = vmatmul.mubr.bf16.gmra.mrb[24].mxu0 %v3403_v9  ;;  %v910_v9 = vld [vmem:[%s747_s9 + $0xc] sm:$0x1]  ;;  %906 = vst [vmem:[#allocation2 + $0x84] sm:$0x1] %v905_v6  ;;  %871 = vst [vmem:[#allocation2 + $0x38] sm:$0xf] %v822_v15 }
  0xa5   : > { %3212 = vmatpush3.bf16.msra.mxu0 %v3405_v4  ;;  %2167 = vmatmul.mubr.bf16.gmra.mrb[24].mxu1 %v3404_v31  ;;  %v918_v13 = vsel %vm4041_vm5, %v910_v9, %v917_v11  ;;  %v907_v16 = vld [vmem:[%s747_s9] sm:$0xf]  ;;  %v813_v18 = vld [vmem:[%s3808_s20 + $0x14] sm:$0x1]  ;;  %v848_v19 = vld [vmem:[#allocation2 + $0xc] sm:$0x1] }
  0xa6   : > { %3239 = vmatpush3.bf16.msra.mxu1 %v3405_v4  ;;  %3213 = vmatprep.subr.bf16.mxu0 %v3406_v17  ;;  %v897_v4 = vsel %vm4041_vm5, %v835_v43, %v896_v1  ;;  %919 = vst [vmem:[#allocation2 + $0x8c] sm:$0x1] %v918_v13  ;;  %912 = vst [vmem:[#allocation2 + $0x40] sm:$0xf] %v907_v16  ;;  %v852_v21 = vld [vmem:[#allocation2 + $0x14] sm:$0x1] }
  0xa7   : > { %3232 = vmatprep.subr.bf16.mxu1 %v3406_v17  ;;  %1906 = vmatprep.mubr.bf16.mxu0 %v2886_v54  ;;  %898 = vst [vmem:[#allocation2 + $0x74] sm:$0x1] %v897_v4  ;;  %v2191_v22 = vld [vmem:[#allocation2 + $0x8] sm:$0xf]  ;;  %v2193_v23 = vld [vmem:[#allocation2 + $0x10] sm:$0xf]  ;;  %v853_v24 = vsel %vm4041_vm5, %v813_v18, %v852_v21 }
  0xa8   : > { %v2208_v25 = vshrl.u32 %v2191_v22, 16  ;;  %v2211_v26 = vshll.u32 %v2191_v22, 16  ;;  %v2222_v27 = vshrl.u32 %v2193_v23, 16  ;;  %v819_v28 = vld [vmem:[%s3808_s20 + $0x2c] sm:$0x1] }
  0xa9   : > { %3214 = vmatpush3.bf16.msra.mxu0 %v3406_v17  ;;  %v3407_v29 = vld [vmem:[#allocation2 + $0x80] ss:$8 sps:$4 sm:$0xff]   ;;  %854 = vst [vmem:[#allocation2 + $0x14] sm:$0x1] %v853_v24  ;;  %v821_v34 = vld [vmem:[%s3808_s20 + $0x34] sm:$0x1] }
  0xaa   : > { %3215 = vmatprep.subr.bf16.mxu0 %v4016_v30  ;;  %3240 = vmatpush3.bf16.msra.mxu1 %v3406_v17  ;;  %v811_v17 = vld [vmem:[%s3808_s20 + $0xc] sm:$0x1]  ;;  %v2210_v31 = vrot.slane %v2208_v25, 4  ;;  %v2213_v32 = vrot.slane %v2211_v26, 5  ;;  %v2224_v33 = vrot.slane %v2222_v27, 4 }
  0xab   : > { %3233 = vmatprep.subr.bf16.mxu1 %v4016_v30  ;;  %v849_v20 = vsel %vm4041_vm5, %v811_v17, %v848_v19  ;;  %2174 = vmatprep.mubr.bf16.mxu1 %v3407_v29  ;;  %v864_v36 = vld [vmem:[#allocation2 + $0x2c] sm:$0x1]  ;;  %v868_v40 = vld [vmem:[#allocation2 + $0x34] sm:$0x1]  ;;  %v2199_v43 = vld [vmem:[#allocation2 + $0x28] sm:$0xf] }
  0xac   : > { %1907 = vmatmul.mubr.bf16.gmra.mrb[28].mxu0 %v3408_v14  ;;  %850 = vst [vmem:[#allocation2 + $0xc] sm:$0x1] %v849_v20  ;;  %v2214_v38 = vor.u32 %v2213_v32, %v2210_v31  ;;  %v865_v39 = vsel %vm4041_vm5, %v819_v28, %v864_v36  ;;  %v869_v42 = vsel %vm4041_vm5, %v821_v34, %v868_v40  ;;  %v2201_v44 = vld [vmem:[#allocation2 + $0x30] sm:$0xf]  ;;  %v815_v45 = vld [vmem:[%s3808_s20 + $0x1c] sm:$0x1] }
  0xad   : > { %3216 = vmatpush3.bf16.msra.mxu0 %v4016_v30  ;;  %v3409_v37 = vld [vmem:[#allocation2 + $0x38] ss:$8 sps:$4 sm:$0xff]   ;;  %866 = vst [vmem:[#allocation2 + $0x2c] sm:$0x1] %v865_v39  ;;  %870 = vst [vmem:[#allocation2 + $0x34] sm:$0x1] %v869_v42 }
  0xae   : > { %3217 = vmatprep.subr.bf16.mxu0 %v3411_v46  ;;  %3241 = vmatpush3.bf16.msra.mxu1 %v4016_v30  ;;  %v2225_v30 = vshll.u32 %v2193_v23, 16  ;;  %v2264_v47 = vshrl.u32 %v2199_v43, 16  ;;  %v2267_v48 = vshll.u32 %v2199_v43, 16  ;;  %v2278_v49 = vshrl.u32 %v2201_v44, 16  ;;  %v817_v50 = vld [vmem:[%s3808_s20 + $0x24] sm:$0x1] }
  0xaf   : > { %3234 = vmatprep.subr.bf16.mxu1 %v3411_v46  ;;  %2175 = vmatmul.mubr.bf16.gmra.mrb[28].mxu1 %v3409_v37  ;;  %v2281_v54 = vshll.u32 %v2201_v44, 16  ;;  %v856_v56 = vld [vmem:[#allocation2 + $0x1c] sm:$0x1]  ;;  %v860_v1 = vld [vmem:[#allocation2 + $0x24] sm:$0x1] }
  0xb0   : > { %v2227_v35 = vrot.slane %v2225_v30, 5  ;;  %v2194_v57 = vld [vmem:[#allocation2 + $0x14] sm:$0x1]  ;;  %v2266_v59 = vrot.slane %v2264_v47, 4  ;;  %v2269_v60 = vrot.slane %v2267_v48, 5  ;;  %v2280_v61 = vrot.slane %v2278_v49, 4 }
  0xb1   : > { %3218 = vmatpush3.bf16.msra.mxu0 %v3411_v46  ;;  %v2231_v62 = vshll.u32 %v2194_v57, 16  ;;  %v2283_v63 = vrot.slane %v2281_v54, 5  ;;  %v857_v0 = vsel %vm4041_vm5, %v815_v45, %v856_v56  ;;  %v2195_v2 = vld [vmem:[#allocation2 + $0x18] sm:$0xf]  ;;  %v861_v5 = vsel %vm4041_vm5, %v817_v50, %v860_v1  ;;  %v2197_v6 = vld [vmem:[#allocation2 + $0x20] sm:$0xf] }
  0xb2   : > { %3242 = vmatpush3.bf16.msra.mxu1 %v3411_v46  ;;  %v2228_v41 = vor.u32 %v2227_v35, %v2224_v33  ;;  %v2215_v46 = vrot.slane %v2214_v38, 4  ;;  %v2270_v4 = vor.u32 %v2269_v60, %v2266_v59  ;;  %858 = vst [vmem:[#allocation2 + $0x1c] sm:$0x1] %v857_v0  ;;  %v2236_v7 = vshrl.u32 %v2195_v2, 16  ;;  %v823_v8 = vld [vmem:[%s3808_s20 + $0x3c] sm:$0x1] }
  0xb3   : > { %v2192_v52 = vld [vmem:[#allocation2 + $0xc] sm:$0x1]  ;;  %v2233_v9 = vrot.slane %v2231_v62, 5  ;;  %v2284_v10 = vor.u32 %v2283_v63, %v2280_v61  ;;  %862 = vst [vmem:[#allocation2 + $0x24] sm:$0x1] %v861_v5  ;;  %v2239_v11 = vshll.u32 %v2195_v2, 16 }
  0xb4   : > { %v2229_v53 = vrot.slane %v2228_v41, 4  ;;  %v2217_v58 = vshll.u32 %v2192_v52, 16  ;;  %v2250_v12 = vshrl.u32 %v2197_v6, 16  ;;  %v872_v13 = vld [vmem:[#allocation2 + $0x3c] sm:$0x1]  ;;  %v2271_v16 = vrot.slane %v2270_v4, 4 }
  0xb5   : > { %v2200_v15 = vld [vmem:[#allocation2 + $0x2c] sm:$0x1]  ;;  %v2238_v17 = vrot.slane %v2236_v7, 4  ;;  %v2253_v18 = vshll.u32 %v2197_v6, 16  ;;  %v2202_v20 = vld [vmem:[#allocation2 + $0x34] sm:$0x1]  ;;  %v873_v31 = vsel %vm4041_vm5, %v823_v8, %v872_v13 }
  0xb6   : > { %v2219_v3 = vrot.slane %v2217_v58, 5  ;;  %v2234_v19 = vsel %vm3824_vm2, %v2229_v53, %v2233_v9  ;;  %v2273_v21 = vshll.u32 %v2200_v15, 16  ;;  %v2285_v22 = vrot.slane %v2284_v10, 4  ;;  %v2203_v28 = vld [vmem:[#allocation2 + $0x38] sm:$0xf]  ;;  %s792_s20 = scalar_select %p791_p12, %s3460_s23, 1 }
  0xb7   : > { %v2241_v23 = vrot.slane %v2239_v11, 5  ;;  %v2287_v25 = vshll.u32 %v2202_v20, 16  ;;  %v2252_v26 = vrot.slane %v2250_v12, 4  ;;  %v2255_v27 = vrot.slane %v2253_v18, 5  ;;  %v2205_v32 = vld [vmem:[#allocation2 + $0x40] sm:$0xf] }
  0xb8   : > { %v2220_v14 = vsel %vm3824_vm2, %v2215_v46, %v2219_v3  ;;  %v2275_v29 = vrot.slane %v2273_v21, 5  ;;  %v2292_v33 = vshrl.u32 %v2203_v28, 16  ;;  %874 = vst [vmem:[#allocation2 + $0x3c] sm:$0x1] %v873_v31  ;;  %v2206_v36 = vld [vmem:[#allocation2 + $0x44] sm:$0x1] }
  0xb9   : > { %v2991_v24 = vcombine.low %v2220_v14, %v2234_v19  ;;  %v2242_v30 = vor.u32 %v2241_v23, %v2238_v17  ;;  %v2289_v34 = vrot.slane %v2287_v25, 5  ;;  %v2256_v35 = vor.u32 %v2255_v27, %v2252_v26  ;;  %v2196_v40 = vld [vmem:[#allocation2 + $0x1c] sm:$0x1]  ;;  %s3005_s10 = sshll.u32 %s792_s20, 5 }
  0xba   : > { %v2295_v37 = vshll.u32 %v2203_v28, 16  ;;  %v2306_v38 = vshrl.u32 %v2205_v32, 16  ;;  %v2276_v39 = vsel %vm3824_vm2, %v2271_v16, %v2275_v29  ;;  %v2294_v42 = vrot.slane %v2292_v33, 4  ;;  %v2198_v44 = vld [vmem:[#allocation2 + $0x24] sm:$0x1]  ;;  %s798_s13 = scalar_lea.vmem %s4169_s5, %s3005_s10 }
  0xbb   : > { %3219 = vmatprep.mubr.bf16.mxu0 %v2991_v24  ;;  %v2243_v41 = vrot.slane %v2242_v30, 4  ;;  %v2309_v43 = vshll.u32 %v2205_v32, 16  ;;  %v2290_v51 = vsel %vm3824_vm2, %v2285_v22, %v2289_v34  ;;  %v2245_v45 = vshll.u32 %v2196_v40, 16 }
  0xbc   : > { %v2257_v46 = vrot.slane %v2256_v35, 4  ;;  %v2297_v47 = vrot.slane %v2295_v37, 5  ;;  %v2993_v48 = vcombine.low %v2276_v39, %v2290_v51  ;;  %v2259_v49 = vshll.u32 %v2198_v44, 16 }
  0xbd   : > { %v2308_v50 = vrot.slane %v2306_v38, 4  ;;  %v2311_v52 = vrot.slane %v2309_v43, 5  ;;  %v2247_v53 = vrot.slane %v2245_v45, 5  ;;  %v2315_v56 = vshll.u32 %v2206_v36, 16 }
  0xbe   : > { %v2298_v54 = vor.u32 %v2297_v47, %v2294_v42  ;;  %3223 = vmatprep.mubr.bf16.mxu1 %v2993_v48  ;;  %v2261_v57 = vrot.slane %v2259_v49, 5 }
  0xbf   : > { %v2312_v58 = vor.u32 %v2311_v52, %v2308_v50  ;;  %v2248_v59 = vsel %vm3824_vm2, %v2243_v41, %v2247_v53  ;;  %v2317_v60 = vrot.slane %v2315_v56, 5  ;;  %v2204_v62 = vld [vmem:[#allocation2 + $0x3c] sm:$0x1] }
  0xc0   : > { %v2262_v61 = vsel %vm3824_vm2, %v2257_v46, %v2261_v57  ;;  %v2299_v1 = vrot.slane %v2298_v54, 4  ;;  %v2301_v2 = vshll.u32 %v2204_v62, 16 }
  0xc1   : > { %v2313_v63 = vrot.slane %v2312_v58, 4  ;;  %v2992_v0 = vcombine.low %v2248_v59, %v2262_v61 }
  0xc2   : > { %v2303_v3 = vrot.slane %v2301_v2, 5 }
  0xc3   : > { %3220 = vmatmul.mubr.bf16.vlgmr.msra.gmra.mrb[32].mxu0 %v2992_v0  ;;  %v2318_v4 = vsel %vm3824_vm2, %v2313_v63, %v2317_v60 }
  0xc4   : > { %v2304_v5 = vsel %vm3824_vm2, %v2299_v1, %v2303_v3 }
  0xc5   : > { %v2994_v6 = vcombine.low %v2304_v5, %v2318_v4 }
  0xc7   : > { %3224 = vmatmul.mubr.bf16.vlgmr.msra.gmra.mrb[32].mxu1 %v2994_v6 }
 0x147   : > { %v3047_v13 = vpop.f32.mrb[0].mxu0 }
 0x148   : > { %v3087_v7 = vpop.f32.mrb[0].mxu1  ;;  %v3048_v14 = vpop.f32.mrb[1].mxu0 }
 0x149   : > { %v3088_v8 = vpop.f32.mrb[1].mxu1  ;;  %v3049_v15 = vadd.f32 %v3048_v14, %v3047_v13  ;;  %v3050_v16 = vpop.f32.mrb[2].mxu0 }
 0x14a   : > { %v3089_v9 = vadd.f32 %v3088_v8, %v3087_v7  ;;  %v3090_v10 = vpop.f32.mrb[2].mxu1  ;;  %v3051_v17 = vpop.f32.mrb[3].mxu0 }
 0x14b   : > { %v3091_v11 = vpop.f32.mrb[3].mxu1  ;;  %v3052_v19 = vadd.f32 %v3051_v17, %v3050_v16 }
 0x14c   : > { %v3092_v12 = vadd.f32 %v3091_v11, %v3090_v10  ;;  %v1514_v18 = vadd.f32 %v3089_v9, %v3049_v15 }
 0x14e   : > { %v1517_v22 = vadd.f32 %v3092_v12, %v3052_v19 }
 0x14f   : > { %v3053_v26 = vpop.f32.mrb[4].mxu0 }
 0x150   : > { %v3093_v20 = vpop.f32.mrb[4].mxu1  ;;  %v3054_v27 = vpop.f32.mrb[5].mxu0 }
 0x151   : > { %v3094_v21 = vpop.f32.mrb[5].mxu1  ;;  %v3055_v28 = vadd.f32 %v3054_v27, %v3053_v26  ;;  %v3056_v29 = vpop.f32.mrb[6].mxu0 }
 0x152   : > { %v3095_v55 = vadd.f32 %v3094_v21, %v3093_v20  ;;  %v3096_v23 = vpop.f32.mrb[6].mxu1  ;;  %v3057_v30 = vpop.f32.mrb[7].mxu0 }
 0x153   : > { %v3097_v24 = vpop.f32.mrb[7].mxu1  ;;  %v3058_v32 = vadd.f32 %v3057_v30, %v3056_v29 }
 0x154   : > { %v3098_v25 = vadd.f32 %v3097_v24, %v3096_v23  ;;  %v1522_v31 = vadd.f32 %v3095_v55, %v3055_v28 }
 0x156   : > { %v1525_v35 = vadd.f32 %v3098_v25, %v3058_v32 }
 0x157   : > { %v3059_v40 = vpop.f32.mrb[8].mxu0 }
 0x158   : > { %v3099_v33 = vpop.f32.mrb[8].mxu1  ;;  %v3060_v41 = vpop.f32.mrb[9].mxu0 }
 0x159   : > { %v3100_v34 = vpop.f32.mrb[9].mxu1  ;;  %v3061_v42 = vadd.f32 %v3060_v41, %v3059_v40  ;;  %v3062_v43 = vpop.f32.mrb[10].mxu0 }
 0x15a   : > { %v3101_v36 = vadd.f32 %v3100_v34, %v3099_v33  ;;  %v3102_v37 = vpop.f32.mrb[10].mxu1  ;;  %v3063_v51 = vpop.f32.mrb[11].mxu0 }
 0x15b   : > { %v3103_v38 = vpop.f32.mrb[11].mxu1  ;;  %v3064_v45 = vadd.f32 %v3063_v51, %v3062_v43 }
 0x15c   : > { %v3104_v39 = vadd.f32 %v3103_v38, %v3102_v37  ;;  %v1530_v44 = vadd.f32 %v3101_v36, %v3061_v42 }
 0x15e   : > { %v1533_v48 = vadd.f32 %v3104_v39, %v3064_v45 }
 0x15f   : > { %v3065_v54 = vpop.f32.mrb[12].mxu0 }
 0x160   : > { %v3105_v46 = vpop.f32.mrb[12].mxu1  ;;  %v3066_v56 = vpop.f32.mrb[13].mxu0 }
 0x161   : > { %v3106_v47 = vpop.f32.mrb[13].mxu1  ;;  %v3067_v57 = vadd.f32 %v3066_v56, %v3065_v54  ;;  %v3068_v58 = vpop.f32.mrb[14].mxu0 }
 0x162   : > { %v3107_v49 = vadd.f32 %v3106_v47, %v3105_v46  ;;  %v3108_v50 = vpop.f32.mrb[14].mxu1  ;;  %v3069_v59 = vpop.f32.mrb[15].mxu0 }
 0x163   : > { %v3109_v52 = vpop.f32.mrb[15].mxu1  ;;  %v3070_v61 = vadd.f32 %v3069_v59, %v3068_v58 }
 0x164   : > { %v3110_v53 = vadd.f32 %v3109_v52, %v3108_v50  ;;  %v1538_v60 = vadd.f32 %v3107_v49, %v3067_v57 }
 0x166   : > { %v1541_v62 = vadd.f32 %v3110_v53, %v3070_v61 }
 0x167   : > { %v3127_v63 = vpop.f32.mrb[16].mxu0 }
 0x168   : > { %v3128_v0 = vpop.f32.mrb[17].mxu0  ;;  %v3167_v1 = vpop.f32.mrb[16].mxu1 }
 0x169   : > { %v3129_v2 = vadd.f32 %v3128_v0, %v3127_v63  ;;  %v3130_v3 = vpop.f32.mrb[18].mxu0  ;;  %v3168_v4 = vpop.f32.mrb[17].mxu1 }
 0x16a   : > { %v3131_v5 = vpop.f32.mrb[19].mxu0  ;;  %v3169_v6 = vadd.f32 %v3168_v4, %v3167_v1  ;;  %v3170_v7 = vpop.f32.mrb[18].mxu1 }
 0x16b   : > { %v1915_v8 = vadd.f32 %v3129_v2, %v1514_v18  ;;  %v3132_v9 = vadd.f32 %v3131_v5, %v3130_v3  ;;  %v3171_v10 = vpop.f32.mrb[19].mxu1 }
 0x16c   : > { %v3172_v11 = vadd.f32 %v3171_v10, %v3170_v7 }
 0x16d   : > { %v1916_v12 = vadd.f32 %v3132_v9, %v1517_v22  ;;  %v2183_v13 = vadd.f32 %v3169_v6, %v1915_v8 }
 0x16f   : > { %v3133_v14 = vpop.f32.mrb[20].mxu0  ;;  %v2184_v15 = vadd.f32 %v3172_v11, %v1916_v12 }
 0x170   : > { %v3134_v16 = vpop.f32.mrb[21].mxu0  ;;  %v3173_v20 = vpop.f32.mrb[20].mxu1 }
 0x171   : > { %v3135_v17 = vadd.f32 %v3134_v16, %v3133_v14  ;;  %v3136_v19 = vpop.f32.mrb[22].mxu0  ;;  %v3174_v24 = vpop.f32.mrb[21].mxu1 }
 0x172   : > { %v3137_v21 = vpop.f32.mrb[23].mxu0  ;;  %v3175_v25 = vadd.f32 %v3174_v24, %v3173_v20  ;;  %v3176_v26 = vpop.f32.mrb[22].mxu1 }
 0x173   : > { %v1917_v55 = vadd.f32 %v3135_v17, %v1522_v31  ;;  %v3138_v23 = vadd.f32 %v3137_v21, %v3136_v19  ;;  %v3177_v28 = vpop.f32.mrb[23].mxu1 }
 0x174   : > { %v3178_v18 = vadd.f32 %v3177_v28, %v3176_v26 }
 0x175   : > { %v1918_v27 = vadd.f32 %v3138_v23, %v1525_v35  ;;  %v2185_v29 = vadd.f32 %v3175_v25, %v1917_v55 }
 0x177   : > { %v2186_v30 = vadd.f32 %v3178_v18, %v1918_v27  ;;  %v3139_v32 = vpop.f32.mrb[24].mxu0 }
 0x178   : > { %v3140_v22 = vpop.f32.mrb[25].mxu0  ;;  %v3179_v36 = vpop.f32.mrb[24].mxu1 }
 0x179   : > { %v3141_v33 = vadd.f32 %v3140_v22, %v3139_v32  ;;  %v3142_v34 = vpop.f32.mrb[26].mxu0  ;;  %v3180_v40 = vpop.f32.mrb[25].mxu1 }
 0x17a   : > { %v3143_v37 = vpop.f32.mrb[27].mxu0  ;;  %v3181_v41 = vadd.f32 %v3180_v40, %v3179_v36  ;;  %v3182_v31 = vpop.f32.mrb[26].mxu1 }
 0x17b   : > { %v1919_v38 = vadd.f32 %v3141_v33, %v1530_v44  ;;  %v3144_v39 = vadd.f32 %v3143_v37, %v3142_v34  ;;  %v3183_v43 = vpop.f32.mrb[27].mxu1 }
 0x17c   : > { %v3184_v51 = vadd.f32 %v3183_v43, %v3182_v31 }
 0x17d   : > { %v1920_v42 = vadd.f32 %v3144_v39, %v1533_v48  ;;  %v2187_v45 = vadd.f32 %v3181_v41, %v1919_v38 }
 0x17f   : > { %v2188_v35 = vadd.f32 %v3184_v51, %v1920_v42  ;;  %v3145_v46 = vpop.f32.mrb[28].mxu0 }
 0x180   : > { %v3146_v47 = vpop.f32.mrb[29].mxu0 }
 0x181   : > { %v3147_v49 = vadd.f32 %v3146_v47, %v3145_v46  ;;  %v3148_v50 = vpop.f32.mrb[30].mxu0 }
 0x182   : > { %v3149_v52 = vpop.f32.mrb[31].mxu0  ;;  %v3185_v44 = vpop.f32.mrb[28].mxu1 }
 0x183   : > { %v1921_v53 = vadd.f32 %v3147_v49, %v1538_v60  ;;  %v3150_v54 = vadd.f32 %v3149_v52, %v3148_v50  ;;  %v3186_v57 = vpop.f32.mrb[29].mxu1 }
 0x184   : > { %v3187_v58 = vadd.f32 %v3186_v57, %v3185_v44  ;;  %v3188_v59 = vpop.f32.mrb[30].mxu1 }
 0x185   : > { %v1922_v56 = vadd.f32 %v3150_v54, %v1541_v62  ;;  %v3189_v61 = vpop.f32.mrb[31].mxu1 }
 0x186   : > { %v3190_v48 = vadd.f32 %v3189_v61, %v3188_v59  ;;  %v2189_v63 = vadd.f32 %v3187_v58, %v1921_v53 }
 0x188   : > { %v2190_v0 = vadd.f32 %v3190_v48, %v1922_v56 }
 0x196   : > { %v3221_v1 = vpop.f32.mrb[32].mxu0 }
 0x197   : > { %v2466_v2 = vadd.f32 %v3221_v1, %v2185_v29  ;;  %v2433_v3 = vpop.f32.mrb[33].mxu0 }
 0x198   : > { %v2464_v4 = vadd.f32 %v2433_v3, %v2183_v13  ;;  %v3222_v5 = vpop.f32.mrb[34].mxu0 }
 0x199   : > { %v2467_v6 = vadd.f32 %v3222_v5, %v2186_v30  ;;  %v2436_v60 = vpop.f32.mrb[35].mxu0  ;;  %v2503_v13 = vmul.f32 %v2466_v2, %v2466_v2 }
 0x19a   : > { %v2465_v62 = vadd.f32 %v2436_v60, %v2184_v15  ;;  %v3225_v7 = vpop.f32.mrb[32].mxu1  ;;  %v2501_v8 = vmul.f32 %v2464_v4, %v2464_v4 }
 0x19b   : > { %v3016_v9 = vpack.c.bf16 %v2467_v6, %v2466_v2  ;;  %v2470_v10 = vadd.f32 %v3225_v7, %v2189_v63  ;;  %v2449_v11 = vpop.f32.mrb[33].mxu1  ;;  %v2504_v25 = vmul.f32 %v2467_v6, %v2467_v6 }
 0x19c   : > { %v3011_v12 = vpack.c.bf16 %v2465_v62, %v2464_v4  ;;  %v2488_v14 = vadd.f32 %v2465_v62, %v2464_v4  ;;  %v2502_v16 = vmul.f32 %v2465_v62, %v2465_v62  ;;  %v2468_v17 = vadd.f32 %v2449_v11, %v2187_v45  ;;  %v3226_v19 = vpop.f32.mrb[34].mxu1 }
 0x19d   : > { %3028 = vst [vmem:[%s798_s13 + $0x8] sm:$0xff] %v3016_v9   ;;  %v2471_v20 = vadd.f32 %v3226_v19, %v2190_v0  ;;  %v2452_v23 = vpop.f32.mrb[35].mxu1  ;;  %v2507_v34 = vmul.f32 %v2470_v10, %v2470_v10 }
 0x19e   : > { %3012 = vst [vmem:[%s798_s13] sm:$0xff] %v3011_v12   ;;  %v2489_v21 = vadd.f32 %v2488_v14, %v2466_v2  ;;  %v2509_v55 = vadd.f32 %v2502_v16, %v2501_v8  ;;  %v2469_v24 = vadd.f32 %v2452_v23, %v2188_v35  ;;  %v2505_v18 = vmul.f32 %v2468_v17, %v2468_v17 }
 0x19f   : > { %v3026_v15 = vpack.c.bf16 %v2471_v20, %v2470_v10  ;;  %v2508_v38 = vmul.f32 %v2471_v20, %v2471_v20 }
 0x1a0   : > { %v2510_v26 = vadd.f32 %v2509_v55, %v2503_v13  ;;  %v2490_v27 = vadd.f32 %v2489_v21, %v2467_v6  ;;  %v3021_v28 = vpack.c.bf16 %v2469_v24, %v2468_v17  ;;  %v2506_v22 = vmul.f32 %v2469_v24, %v2469_v24 }
 0x1a1   : > { %3030 = vst [vmem:[%s798_s13 + $0x18] sm:$0xff] %v3026_v15  }
 0x1a2   : > { %v2491_v29 = vadd.f32 %v2490_v27, %v2468_v17  ;;  %v2511_v30 = vadd.f32 %v2510_v26, %v2504_v25  ;;  %3029 = vst [vmem:[%s798_s13 + $0x10] sm:$0xff] %v3021_v28  }
 0x1a4   : > { %v2492_v32 = vadd.f32 %v2491_v29, %v2469_v24  ;;  %v2512_v33 = vadd.f32 %v2511_v30, %v2505_v18 }
 0x1a6   : > { %v2493_v36 = vadd.f32 %v2492_v32, %v2470_v10  ;;  %v2513_v37 = vadd.f32 %v2512_v33, %v2506_v22 }
 0x1a8   : > { %v2494_v39 = vadd.f32 %v2493_v36, %v2471_v20  ;;  %v2514_v40 = vadd.f32 %v2513_v37, %v2507_v34 }
 0x1aa   : > { %v2495_v41 = vrot.slane %v2494_v39, 4  ;;  %v2515_v31 = vadd.f32 %v2514_v40, %v2508_v38 }
 0x1ac   : > { %v2496_v42 = vadd.f32 %v2495_v41, %v2494_v39  ;;  %v2516_v43 = vrot.slane %v2515_v31, 4 }
 0x1ae   : > { %v2497_v51 = vrot.slane %v2496_v42, 2  ;;  %v2517_v45 = vadd.f32 %v2516_v43, %v2515_v31 }
 0x1b0   : > { %v2498_v35 = vadd.f32 %v2497_v51, %v2496_v42  ;;  %v2518_v46 = vrot.slane %v2517_v45, 2 }
 0x1b2   : > { %v2499_v47 = vrot.slane %v2498_v35, 1  ;;  %v2519_v49 = vadd.f32 %v2518_v46, %v2517_v45  ;;  %2525 = sbr.rel (!%p801_p10) target bundleno = 442 (0x1ba), region = 147 }
 0x1b4   : > { %v2520_v50 = vrot.slane %v2519_v49, 1  ;;  %v2500_v52 = vadd.f32 %v2499_v47, %v2498_v35 }
 0x1b6   : > { %v2521_v53 = vadd.f32 %v2520_v50, %v2519_v49 }
 0x1b8   : > { %v2523_v54 = vsel %vm841_vm3, %v2500_v52, %v2521_v53 }
 0x1b9   : > { %2526 = vst [vmem:[%s4170_s6] sm:$0x3] %v2523_v54 }
 0x1ba PF: > { %2529 = sbr.rel (%p801_p10) target bundleno = 452 (0x1c4), region = 151 }
 0x1c0   : > { %v2530_v56 = vld [vmem:[%s4170_s6] sm:$0x3] (!%p801_p10) }
 0x1c1   : > { %v2531_v44 = vadd.f32 %v2530_v56, %v2523_v54 }
 0x1c3   : > { %2532 = vst [vmem:[%s4170_s6] sm:$0x3] %v2531_v44 }
 0x1c4 PF: > { %2534 = sbr.rel (!%p805_p11) target bundleno = 485 (0x1e5), region = 155  ;;  %v2541_v1 = vld [vmem:[%s4168_s4] sm:$0x1] (%p805_p11)  ;;  %v2545_v4 = vld [vmem:[%s4168_s4 + $0x1] sm:$0x1] (%p805_p11) }
 0x1ca   : > { %v2535_v57 = vld [vmem:[%s4170_s6] sm:$0x1] (%p805_p11)  ;;  %v2537_v58 = vld [vmem:[%s4170_s6 + $0x1] sm:$0x1] (%p805_p11) }
 0x1cb   : > { %v2536_v59 = vmul.f32 0.0078125, %v2535_v57  ;;  %v2538_v61 = vmul.f32 0.0078125, %v2537_v58 }
 0x1cd   : > { %v2539_v48 = vmul.f32 %v2536_v59, %v2536_v59 }
 0x1cf   : > { %v2540_v63 = vsub.f32 %v2538_v61, %v2539_v48 }
 0x1d1   : > { %v2542_v0 = vadd.f32 1e-05, %v2540_v63 }
 0x1d3   : > { %3412 = vrsqrt.f32 %v2542_v0 }
 0x1dd   : > { %v3413_v2 = vpop.eup %3412 }
 0x1de   : > { %v2544_v3 = vmul.f32 %v3413_v2, %v2541_v1 }
 0x1e0   : > { %v2546_v5 = vmul.f32 %v2544_v3, %v2536_v59  ;;  %2549 = vst [vmem:[%s4170_s6] sm:$0x1] %v2544_v3 }
 0x1e2   : > { %v2547_v6 = vsub.f32 %v2545_v4, %v2546_v5 }
 0x1e4   : > { %2548 = vst [vmem:[%s4170_s6 + $0x1] sm:$0x1] %v2547_v6 }
 0x1e5 PF: > { %s17_s25 = sadd.s32 1, %s3468_s25   ;;  %s4176_s21 = smov %s3456_s22 }
 0x1e6   : > { %p14_p13 = scmp.ge.s32.totalorder %s17_s25, 4   ;;  %s4177_s22 = smov %s3548_s30 }
 0x1e7   : > { %s4178_s23 = smov %s3464_s24  ;;  %s4179_s24 = smov %s4181_s26 }
 0x1e8   :  { %16 = sbr.rel (!%p14_p13) target bundleno = 3 (0x3), region = 251 }

// kernel: res_block_forward.4
= control target key start
LH: loop header
LB: loop body
LE: loop exit
PB: predicated region body
PF: predicated region fallthrough
CT: control target
= control target key end

     0   :  { %s3935_s25 = smov 0   ;;  %s3937_s26 = smov 0   ;;  %s4683_s0 = inlined_call_operand.vmem [shape: bf16[2,8,8,128], index: 0, kind: input, shape index: {}, may-alias: {0,1,2}]   ;;  %s4684_s1 = inlined_call_operand.vmem [shape: bf16[2,8,8,128], index: 1, kind: input, shape index: {}, may-alias: {0,1,2}]   ;;  %s4685_s2 = inlined_call_operand.vmem [shape: bf16[2,8,8,128], index: 2, kind: input, shape index: {}, may-alias: {0,1,2}]   ;;  %s4686_s3 = inlined_call_operand.vmem [shape: f32[2,128], index: 3, kind: input, shape index: {}]   ;;  %s4687_s4 = inlined_call_operand.vmem [shape: bf16[4,256,128], index: 4, kind: input, shape index: {}]   ;;  %s4688_s5 = inlined_call_operand.vmem [shape: bf16[128,128], index: 5, kind: input, shape index: {}]   ;;  %s4689_s6 = inlined_call_operand.vmem [shape: bf16[128,128], index: 6, kind: input, shape index: {}]   ;;  %s4690_s7 = inlined_call_operand.vmem [shape: bf16[2,8,8,128], index: 7, kind: input, shape index: {}]   ;;  %s4691_s8 = inlined_call_operand.vmem [shape: f32[2,128], index: 8, kind: input, shape index: {}]   ;;  %s4692_s9 = inlined_call_operand.vmem [shape: f32[2,128], index: 9, kind: input, shape index: {}]   ;;  %s4693_s10 = inlined_call_operand.vmem [shape: bf16[2,8,8,128], index: 10, kind: output, shape index: {0}]   ;;  %s4694_s11 = inlined_call_operand.vmem [shape: bf16[2,8,8,128], index: 11, kind: output, shape index: {1}]   ;;  %s4695_s12 = inlined_call_operand.vmem [shape: f32[2,128], index: 12, kind: output, shape index: {2}]   ;;  %s4696_s13 = inlined_call_operand.vmem [shape: f32[2,128], index: 13, kind: output, shape index: {3}]  }
   0x1   :  { %4699 = sst [smem:[#allocation6_spill]] %s4683_s0  ;;  %s3939_s27 = smov 0  }
   0x2 LB: > { %4700 = sst [smem:[#allocation3_spill]] %s3858_s26  ;;  %s36_s28 = sadd.s32 1, %s3858_s26  ;;  %s3862_s27 = sphi %s3939_s27, %s24_s27   ;;  %s3858_s26 = sphi %s3937_s26, %s4714_s26   ;;  %s3854_s25 = sphi %s3935_s25, %s4713_s25  }
   0x3   : > { %4701 = sst [smem:[#allocation4_spill]] %s3862_s27  ;;  %p3127_p0 = scmp.ge.s32.totalorder %s3862_s27, 1 }
   0x4   : > { %p38_p1 = scmp.ge.s32.totalorder %s36_s28, 2  ;;  %p486_p2 = scmp.lt.s32.totalorder %s3862_s27, 3 }
   0x6   : > { %s4716_s28 = smov (%p38_p1, %s36_s28), 0  ;;  %p487_p3 = pnand %p3127_p0, %p486_p2 }
   0x7   : > { %4702 = sst [smem:[#allocation5_spill]] %s4716_s28  ;;  %p581_p4 = scmp.lt.s32.totalorder (!%p487_p3), %s3854_s25, 1 }
   0x8   : > { %490 = sbr.rel (%p487_p3) target bundleno = 472 (0x1d8), region = 60  ;;  %p653_p5 = scmp.eq.s32.totalorder (!%p487_p3), %s3854_s25, 0 }
   0x9   : > { %p657_p6 = scmp.eq.s32.totalorder (!%p487_p3), %s3854_s25, 1  ;;  %s4703_s0 = sld [smem:[#allocation6_spill]] (!%p487_p3) }
   0xf   : > { %s582_s29 = scalar_select %p581_p4, %s3854_s25, 1 }
  0x10   : > { %661 = sbr.rel (!%p653_p5) target bundleno = 27 (0x1b), region = 64  ;;  %v3864_v0 = vmov (%p653_p5), 0  }
  0x11   : > { %s3959_s30 = sshll.u32 %s582_s29, 5  ;;  %662 = vst [vmem:[#allocation2] sm:$0xf] (%p653_p5), %v3864_v0  ;;  %663 = vst [vmem:[#allocation2 + $0x4] sm:$0x1] (%p653_p5), %v3864_v0 }
  0x12   : > { %s3965_s16 = scalar_lea.vmem %s4703_s0, %s3959_s30  ;;  %s601_s19 = scalar_lea.vmem %s4684_s1, %s3959_s30  ;;  %664 = vst [vmem:[#allocation2 + $0x8] sm:$0xf] (%p653_p5), %v3864_v0  ;;  %665 = vst [vmem:[#allocation2 + $0xc] sm:$0x1] (%p653_p5), %v3864_v0 }
  0x13   : > { %s3399_s20 = sadd.s32 28, %s3959_s30  ;;  %s3976_s23 = scalar_lea.vmem %s4690_s7, %s3959_s30  ;;  %666 = vst [vmem:[#allocation2 + $0x10] sm:$0xf] (%p653_p5), %v3864_v0  ;;  %667 = vst [vmem:[#allocation2 + $0x14] sm:$0x1] (%p653_p5), %v3864_v0 }
  0x14   : > { %s3981_s14 = scalar_lea.vmem %s4685_s2, %s3399_s20  ;;  %s3987_s0 = scalar_lea.vmem %s4693_s10, %s3959_s30  ;;  %668 = vst [vmem:[#allocation2 + $0x18] sm:$0xf] (%p653_p5), %v3864_v0  ;;  %669 = vst [vmem:[#allocation2 + $0x1c] sm:$0x1] (%p653_p5), %v3864_v0 }
  0x15   : > { %s3993_s17 = scalar_lea.vmem %s4694_s11, %s3959_s30  ;;  %670 = vst [vmem:[#allocation2 + $0x20] sm:$0xf] (%p653_p5), %v3864_v0  ;;  %671 = vst [vmem:[#allocation2 + $0x24] sm:$0x1] (%p653_p5), %v3864_v0 }
  0x16   : > { %672 = vst [vmem:[#allocation2 + $0x28] sm:$0xf] (%p653_p5), %v3864_v0  ;;  %673 = vst [vmem:[#allocation2 + $0x2c] sm:$0x1] (%p653_p5), %v3864_v0 }
  0x17   : > { %674 = vst [vmem:[#allocation2 + $0x30] sm:$0xf] %v3864_v0  ;;  %675 = vst [vmem:[#allocation2 + $0x34] sm:$0x1] %v3864_v0 }
  0x18   : > { %676 = vst [vmem:[#allocation2 + $0x38] sm:$0xf] %v3864_v0  ;;  %677 = vst [vmem:[#allocation2 + $0x3c] sm:$0x1] %v3864_v0 }
  0x19   : > { %678 = vst [vmem:[#allocation2 + $0x40] sm:$0xf] %v3864_v0  ;;  %679 = vst [vmem:[#allocation2 + $0x44] sm:$0x1] %v3864_v0 }
  0x1a   : > { %680 = vst [vmem:[#allocation2 + $0x48] sm:$0xf] %v3864_v0  ;;  %681 = vst [vmem:[#allocation2 + $0x4c] sm:$0x1] %v3864_v0 }
  0x1b PF: > { %v3738_v1 = vld [vmem:[%s4687_s4 + $0xc0] sm:$0xff]   ;;  %v3742_v5 = vld [vmem:[%s4687_s4 + $0xc8] sm:$0xff]   ;;  %v3746_v9 = vld [vmem:[%s4687_s4 + $0xd0] sm:$0xff]   ;;  %vm841_vm0 = vcmask 1043456   ;;  %vm842_vm1 = vsmask.f32 7938 }
  0x1c   : > { %v3739_v2 = vld [vmem:[%s4687_s4 + $0x80] sm:$0xff]   ;;  %3481 = vmatprep.subr.bf16.mxu0 %v3738_v1  ;;  %v3743_v6 = vld [vmem:[%s4687_s4 + $0x88] sm:$0xff]   ;;  %v3747_v10 = vld [vmem:[%s4687_s4 + $0x90] sm:$0xff]   ;;  %vm847_vm2 = vcmask 1040384   ;;  %vm848_vm3 = vsmask.f32 256 }
  0x1d   : > { %v3740_v3 = vld [vmem:[%s4687_s4 + $0x40] sm:$0xff]   ;;  %3482 = vmatpush3.bf16.msra.mxu0 %v3739_v2  ;;  %v3744_v7 = vld [vmem:[%s4687_s4 + $0x48] sm:$0xff]   ;;  %v3748_v11 = vld [vmem:[%s4687_s4 + $0x50] sm:$0xff]   ;;  %vm1175_vm6 = vcmask 1042432   ;;  %vm1176_vm7 = vcmask 1046532  }
  0x1e   : > { %v3741_v4 = vld [vmem:[%s4687_s4] sm:$0xff]   ;;  %3521 = vmatprep.subr.bf16.mxu1 %v3740_v3  ;;  %3483 = vmatprep.subr.bf16.mxu0 %v3742_v5  ;;  %v3745_v8 = vld [vmem:[%s4687_s4 + $0x8] sm:$0xff]   ;;  %v3749_v12 = vld [vmem:[%s4687_s4 + $0x10] sm:$0xff]   ;;  %vm964_vm8 = vsmask.f32 3328 }
  0x1f   : > { %3522 = vmatpush3.bf16.msra.mxu1 %v3741_v4  ;;  %v3750_v13 = vld [vmem:[%s4687_s4 + $0xd8] sm:$0xff]   ;;  %v3754_v17 = vld [vmem:[%s4687_s4 + $0xe0] sm:$0xff]   ;;  %v3758_v21 = vld [vmem:[%s4687_s4 + $0xe8] sm:$0xff]   ;;  %vm965_vm9 = vsmask.f32 7440 }
  0x20   : > { %3523 = vmatprep.subr.bf16.mxu1 %v3744_v7  ;;  %v3751_v14 = vld [vmem:[%s4687_s4 + $0x98] sm:$0xff]   ;;  %v3755_v18 = vld [vmem:[%s4687_s4 + $0xa0] sm:$0xff]   ;;  %v3759_v22 = vld [vmem:[%s4687_s4 + $0xa8] sm:$0xff]  }
  0x21   : > { %3484 = vmatpush3.bf16.msra.mxu0 %v3743_v6  ;;  %v3752_v15 = vld [vmem:[%s4687_s4 + $0x58] sm:$0xff]   ;;  %v3756_v19 = vld [vmem:[%s4687_s4 + $0x60] sm:$0xff]   ;;  %v3760_v23 = vld [vmem:[%s4687_s4 + $0x68] sm:$0xff]  }
  0x22   : > { %3485 = vmatprep.subr.bf16.mxu0 %v3746_v9  ;;  %v3753_v16 = vld [vmem:[%s4687_s4 + $0x18] sm:$0xff]   ;;  %v3757_v20 = vld [vmem:[%s4687_s4 + $0x20] sm:$0xff]   ;;  %v3761_v24 = vld [vmem:[%s4687_s4 + $0x28] sm:$0xff]  }
  0x23   : > { %3524 = vmatpush3.bf16.msra.mxu1 %v3745_v8  ;;  %v3762_v25 = vld [vmem:[%s4687_s4 + $0xf0] sm:$0xff]   ;;  %v3766_v29 = vld [vmem:[%s4687_s4 + $0xf8] sm:$0xff]   ;;  %v3416_v32 = vld [vmem:[%s3965_s16] sm:$0xff]  }
  0x24   : > { %3525 = vmatprep.subr.bf16.mxu1 %v3748_v11  ;;  %v3763_v26 = vld [vmem:[%s4687_s4 + $0xb0] sm:$0xff]   ;;  %v3767_v30 = vld [vmem:[%s4687_s4 + $0xb8] sm:$0xff]   ;;  %v3417_v33 = vunpack.c.l.bf16 %v3416_v32  ;;  %v3418_v34 = vunpack.c.h.bf16 %v3416_v32  ;;  %v4094_v35 = vld [vmem:[%s4686_s3] ss:$0 sm:$0xff] }
  0x25   : > { %3486 = vmatpush3.bf16.msra.mxu0 %v3747_v10  ;;  %v3764_v27 = vld [vmem:[%s4687_s4 + $0x70] sm:$0xff]   ;;  %v3768_v31 = vld [vmem:[%s4687_s4 + $0x78] sm:$0xff]   ;;  %v4104_v39 = vld [vmem:[%s4686_s3 + $0x1] ss:$0 sm:$0xff] }
  0x26   : > { %3487 = vmatprep.subr.bf16.mxu0 %v3750_v13  ;;  %v3765_v28 = vld [vmem:[%s4687_s4 + $0x30] sm:$0xff]   ;;  %v708_v36 = vmul.f32 %v3417_v33, %v4094_v35  ;;  %v709_v37 = vmul.f32 %v3418_v34, %v4094_v35  ;;  %v3770_v38 = vld [vmem:[%s4687_s4 + $0x38] sm:$0xff]   ;;  %v895_v40 = vld [vmem:[%s601_s19] sm:$0xf] }
  0x27   : > { %3526 = vmatpush3.bf16.msra.mxu1 %v3749_v12  ;;  %v896_v43 = vunpack.c.l.bf16 %v895_v40  ;;  %v3771_v44 = vld [vmem:[%s4687_s4 + $0x140] sm:$0xff]   ;;  %v844_v53 = vld [vmem:[#allocation2 + $0x8] sm:$0xf]  ;;  %v853_v54 = vld [vmem:[#allocation2 + $0x10] sm:$0xf] }
  0x28   : > { %3527 = vmatprep.subr.bf16.mxu1 %v3752_v15  ;;  %v720_v41 = vadd.f32 %v4104_v39, %v708_v36  ;;  %v721_v42 = vadd.f32 %v4104_v39, %v709_v37  ;;  %v3773_v48 = vld [vmem:[%s4687_s4 + $0x1c0] sm:$0xff]   ;;  %vm4123_vm4 = vmand %vm841_vm0, %vm842_vm1  ;;  %v850_v59 = vld [vmem:[#allocation2 + $0xc] sm:$0x1] }
  0x29   : > { %3488 = vmatpush3.bf16.msra.mxu0 %v3751_v14  ;;  %v897_v47 = vmul.f32 %v4094_v35, %v896_v43  ;;  %vm4128_vm5 = vmand %vm847_vm2, %vm848_vm3  ;;  %v3472_v2 = vld [vmem:[%s3965_s16 + $0x8] sm:$0xff]   ;;  %v856_v9 = vld [vmem:[#allocation2 + $0x14] sm:$0x1] }
  0x2a   : > { %3489 = vmatprep.subr.bf16.mxu0 %v3754_v17  ;;  %v3405_v45 = vpack.c.bf16 %v720_v41, %v720_v41  ;;  %v3406_v46 = vpack.c.bf16 %v721_v42, %v721_v42  ;;  %v3421_v4 = vunpack.c.l.bf16 %v3472_v2  ;;  %v3422_v5 = vunpack.c.h.bf16 %v3472_v2  ;;  %v915_v14 = vld [vmem:[#allocation2] sm:$0xf]  ;;  %v859_v42 = vld [vmem:[#allocation2 + $0x18] sm:$0xf]  ;;  %vm4155_vm10 = vmor %vm1175_vm6, %vm1176_vm7 }
  0x2b   : > { %3528 = vmatpush3.bf16.msra.mxu1 %v3753_v16  ;;  %v898_v55 = vadd.f32 %v4104_v39, %v897_v47  ;;  %vm4187_vm11 = vmor %vm964_vm8, %vm965_vm9  ;;  %v3831_v43 = vld [vmem:[%s3976_s23 + $0x8] sm:$0xff]  }
  0x2c   : > { %3529 = vmatprep.subr.bf16.mxu1 %v3756_v19  ;;  %v761_v49 = vshrl.u32 %v3405_v45, 16  ;;  %v764_v50 = vshll.u32 %v3405_v45, 16  ;;  %v769_v51 = vshrl.u32 %v3406_v46, 16  ;;  %v772_v52 = vshll.u32 %v3406_v46, 16  ;;  %v918_v19 = vld [vmem:[#allocation2 + $0x4] sm:$0x1] }
  0x2d   : > { %3490 = vmatpush3.bf16.msra.mxu0 %v3755_v18  ;;  %v900_v61 = vmul.f32 0.0, %v898_v55  ;;  %v710_v12 = vmul.f32 %v3421_v4, %v4094_v35  ;;  %v711_v13 = vmul.f32 %v3422_v5, %v4094_v35  ;;  %v862_v46 = vld [vmem:[#allocation2 + $0x1c] sm:$0x1] }
  0x2e   : > { %3491 = vmatprep.subr.bf16.mxu0 %v3758_v21  ;;  %v763_v56 = vrot.slane %v761_v49, 7  ;;  %v771_v57 = vrot.slane %v769_v51, 7  ;;  %v865_v51 = vld [vmem:[#allocation2 + $0x20] sm:$0xf] }
  0x2f   : > { %3530 = vmatpush3.bf16.msra.mxu1 %v3757_v20  ;;  %v3413_v3 = vpack.c.bf16 %v900_v61, %v900_v61  ;;  %v722_v17 = vadd.f32 %v4104_v39, %v710_v12  ;;  %v723_v18 = vadd.f32 %v4104_v39, %v711_v13 }
  0x30   : > { %3531 = vmatprep.subr.bf16.mxu1 %v3760_v23  ;;  %v766_v62 = vor.u32 %v764_v50, %v763_v56  ;;  %v767_v63 = vrot.slane %v763_v56, 4  ;;  %v774_v0 = vor.u32 %v772_v52, %v771_v57  ;;  %v775_v1 = vrot.slane %v771_v57, 4  ;;  %v3473_v57 = vld [vmem:[%s3965_s16 + $0x10] sm:$0xff]  }
  0x31   : > { %3492 = vmatpush3.bf16.msra.mxu0 %v3759_v22  ;;  %v906_v10 = vshrl.u32 %v3413_v3, 16  ;;  %v909_v11 = vshll.u32 %v3413_v3, 16  ;;  %v3407_v22 = vpack.c.bf16 %v722_v17, %v722_v17  ;;  %v3408_v23 = vpack.c.bf16 %v723_v18, %v723_v18  ;;  %v868_v17 = vld [vmem:[#allocation2 + $0x24] sm:$0x1] }
  0x32   : > { %3493 = vmatprep.subr.bf16.mxu0 %v3762_v25  ;;  %v845_v6 = vsel %vm4123_vm4, %v766_v62, %v844_v53  ;;  %v854_v7 = vsel %vm4123_vm4, %v774_v0, %v853_v54  ;;  %v851_v8 = vsel %vm4128_vm5, %v767_v63, %v850_v59  ;;  %v857_v15 = vsel %vm4128_vm5, %v775_v1, %v856_v9 }
  0x33   : > { %3532 = vmatpush3.bf16.msra.mxu1 %v3761_v24  ;;  %846 = vst [vmem:[#allocation2 + $0x8] sm:$0xf] %v845_v6  ;;  %855 = vst [vmem:[#allocation2 + $0x10] sm:$0xf] %v854_v7  ;;  %v908_v16 = vrot.slane %v906_v10, 7  ;;  %v785_v40 = vshrl.u32 %v3408_v23, 16  ;;  %v3425_v12 = vunpack.c.l.bf16 %v3473_v57 }
  0x34   : > { %3533 = vmatprep.subr.bf16.mxu1 %v3764_v27  ;;  %852 = vst [vmem:[#allocation2 + $0xc] sm:$0x1] %v851_v8  ;;  %858 = vst [vmem:[#allocation2 + $0x14] sm:$0x1] %v857_v15  ;;  %v780_v27 = vshll.u32 %v3407_v22, 16  ;;  %v788_v41 = vshll.u32 %v3408_v23, 16 }
  0x35   : > { %3494 = vmatpush3.bf16.msra.mxu0 %v3763_v26  ;;  %v911_v20 = vor.u32 %v909_v11, %v908_v16  ;;  %v912_v21 = vrot.slane %v908_v16, 4  ;;  %v777_v26 = vshrl.u32 %v3407_v22, 16  ;;  %v787_v50 = vrot.slane %v785_v40, 7  ;;  %v3772_v8 = vld [vmem:[%s4687_s4 + $0x100] sm:$0xff]  }
  0x36   : > { %3495 = vmatprep.subr.bf16.mxu0 %v3766_v29 }
  0x37   : > { %3534 = vmatpush3.bf16.msra.mxu1 %v3765_v28  ;;  %v916_v24 = vsel %vm4123_vm4, %v911_v20, %v915_v14  ;;  %v919_v25 = vsel %vm4128_vm5, %v912_v21, %v918_v19  ;;  %v790_v0 = vor.u32 %v788_v41, %v787_v50  ;;  %v791_v11 = vrot.slane %v787_v50, 4  ;;  %v3776_v20 = vld [vmem:[%s4687_s4 + $0x148] sm:$0xff]  }
  0x38   : > { %3535 = vmatprep.subr.bf16.mxu1 %v3768_v31  ;;  %917 = vst [vmem:[#allocation2] sm:$0xf] %v916_v24  ;;  %920 = vst [vmem:[#allocation2 + $0x4] sm:$0x1] %v919_v25  ;;  %v3777_v25 = vld [vmem:[%s4687_s4 + $0x108] sm:$0xff]  }
  0x39   : > { %3496 = vmatpush3.bf16.msra.mxu0 %v3767_v30  ;;  %v866_v16 = vsel %vm4123_vm4, %v790_v0, %v865_v51 }
  0x3a   : > { %3561 = vmatprep.subr.bf16.mxu0 %v3771_v44  ;;  %v3769_v28 = vld [vmem:[#allocation2 + $0x8] ss:$8 sps:$4 sm:$0xff]   ;;  %867 = vst [vmem:[#allocation2 + $0x20] sm:$0xf] %v866_v16 }
  0x3b   : > { %3536 = vmatpush3.bf16.msra.mxu1 %v3770_v38  ;;  %v957_v29 = vld [vmem:[#allocation2 + $0xc] sm:$0x1]  ;;  %v1152_v30 = vld [vmem:[#allocation2 + $0x8] sm:$0xe]  ;;  %1419 = vmatprep.mubr.bf16.mxu0 %v3769_v28  ;;  %v779_v38 = vrot.slane %v777_v26, 7  ;;  %v3781_v28 = vld [vmem:[%s4687_s4 + $0x150] sm:$0xff]  }
  0x3c   : > { %3601 = vmatprep.subr.bf16.mxu1 %v3773_v48  ;;  %v4149_v31 = vld [vmem:[#allocation2 + $0x8] sm:$0xf]  ;;  %v3163_v32 = vrot.slane %v1152_v30, 9  ;;  %v1184_v33 = vrot.slane %v957_v29, 5  ;;  %v991_v37 = vshll.u32 %v957_v29, 16  ;;  %v3426_v29 = vunpack.c.h.bf16 %v3473_v57 }
  0x3d   : > { %v982_v34 = vshrl.u32 %v4149_v31, 16  ;;  %v985_v36 = vshll.u32 %v4149_v31, 16  ;;  %v4159_v47 = vld [vmem:[#allocation2 + $0x10] sm:$0xf]  ;;  %v782_v48 = vor.u32 %v780_v27, %v779_v38  ;;  %v783_v49 = vrot.slane %v779_v38, 4 }
  0x3e   : > { %v4161_v53 = vrot.slane %v991_v37, 5  ;;  %v4163_v54 = vld [vmem:[#allocation2 + $0x14] sm:$0x1]  ;;  %v996_v55 = vshrl.u32 %v4159_v47, 16  ;;  %v999_v56 = vshll.u32 %v4159_v47, 16  ;;  %v1185_v62 = vsel %vm4155_vm10, %v3163_v32, %v1184_v33 }
  0x3f   : > { %v984_v44 = vrot.slane %v982_v34, 4  ;;  %v987_v45 = vrot.slane %v985_v36, 5  ;;  %v956_v59 = vld [vmem:[#allocation2 + $0x4] sm:$0x1]  ;;  %v1151_v61 = vld [vmem:[#allocation2] sm:$0xe]  ;;  %v860_v1 = vsel %vm4123_vm4, %v782_v48, %v859_v42  ;;  %v863_v2 = vsel %vm4128_vm5, %v783_v49, %v862_v46 }
  0x40   : > { %v4170_v63 = vld [vmem:[#allocation2] sm:$0xf]  ;;  %v3162_v3 = vrot.slane %v1151_v61, 9  ;;  %v1180_v4 = vrot.slane %v956_v59, 5  ;;  %861 = vst [vmem:[#allocation2 + $0x18] sm:$0xf] %v860_v1  ;;  %v712_v30 = vmul.f32 %v3425_v12, %v4094_v35  ;;  %v869_v32 = vsel %vm4128_vm5, %v791_v11, %v868_v17 }
  0x41   : > { %v988_v52 = vor.u32 %v987_v45, %v984_v44  ;;  %v968_v5 = vshrl.u32 %v4170_v63, 16  ;;  %v971_v6 = vshll.u32 %v4170_v63, 16  ;;  %864 = vst [vmem:[#allocation2 + $0x1c] sm:$0x1] %v863_v2  ;;  %v1153_v7 = vld [vmem:[#allocation2 + $0x10] sm:$0xe]  ;;  %v3154_v37 = vcombine.low %v4170_v63, %v4149_v31 }
  0x42   : > { %v977_v9 = vshll.u32 %v956_v59, 16  ;;  %v1181_v13 = vsel %vm4155_vm10, %v3162_v3, %v1180_v4  ;;  %v3164_v21 = vrot.slane %v1153_v7, 9  ;;  %v1188_v22 = vrot.slane %v4163_v54, 5  ;;  %870 = vst [vmem:[#allocation2 + $0x24] sm:$0x1] %v869_v32  ;;  %v3775_v46 = vld [vmem:[%s4687_s4 + $0x180] sm:$0xff]  }
  0x43   : > { %v989_v10 = vrot.slane %v988_v52, 4  ;;  %v970_v14 = vrot.slane %v968_v5, 4  ;;  %v973_v15 = vrot.slane %v971_v6, 5  ;;  %v3170_v18 = vcombine.low %v1181_v13, %v1185_v62  ;;  %v3778_v52 = vld [vmem:[%s4687_s4 + $0x1c8] sm:$0xff]   ;;  %v3782_v59 = vld [vmem:[%s4687_s4 + $0x110] sm:$0xff]   ;;  %v3786_v4 = vld [vmem:[%s4687_s4 + $0x158] sm:$0xff]  }
  0x44   : > { %v979_v24 = vrot.slane %v977_v9, 5  ;;  %v998_v26 = vrot.slane %v996_v55, 4  ;;  %v1001_v27 = vrot.slane %v999_v56, 5  ;;  %v1005_v36 = vshll.u32 %v4163_v54, 16  ;;  %v3780_v63 = vld [vmem:[%s4687_s4 + $0x188] sm:$0xff]   ;;  %v3783_v6 = vld [vmem:[%s4687_s4 + $0x1d0] sm:$0xff]  }
  0x45   : > { %v974_v23 = vor.u32 %v973_v15, %v970_v14  ;;  %1420 = vmatmul.mubr.bf16.vlgmr.msra.gmra.mrb[0].mxu0 %v3170_v18  ;;  %v994_v34 = vsel %vm4187_vm11, %v989_v10, %v4161_v53  ;;  %v1189_v41 = vsel %vm4155_vm10, %v3164_v21, %v1188_v22  ;;  %v713_v44 = vmul.f32 %v3426_v29, %v4094_v35  ;;  %v4238_v5 = vld [vmem:[#allocation2 + $0x20] sm:$0xf]  ;;  %v3787_v7 = vld [vmem:[%s4687_s4 + $0x118] sm:$0xff]   ;;  %v871_v22 = vld [vmem:[#allocation2 + $0x28] sm:$0xf] }
  0x46   : > { %3562 = vmatpush3.bf16.msra.mxu0 %v3772_v8  ;;  %v1002_v42 = vor.u32 %v1001_v27, %v998_v26  ;;  %v724_v31 = vadd.f32 %v4104_v39, %v712_v30  ;;  %v1007_v61 = vrot.slane %v1005_v36, 5  ;;  %v1024_v12 = vshrl.u32 %v4238_v5, 16  ;;  %v3474_v14 = vld [vmem:[%s3965_s16 + $0x18] sm:$0xff]   ;;  %v3785_v26 = vld [vmem:[%s4687_s4 + $0x190] sm:$0xff]  }
  0x47   : > { %v975_v33 = vrot.slane %v974_v23, 4  ;;  %3563 = vmatprep.subr.bf16.mxu0 %v3776_v20  ;;  %v1154_v40 = vld [vmem:[#allocation2 + $0x18] sm:$0xe]  ;;  %v725_v62 = vadd.f32 %v4104_v39, %v713_v44  ;;  %v1027_v13 = vshll.u32 %v4238_v5, 16  ;;  %v877_v23 = vld [vmem:[#allocation2 + $0x30] sm:$0xf]  ;;  %v3429_v30 = vunpack.c.l.bf16 %v3474_v14 }
  0x48   : > { %v959_v38 = vld [vmem:[#allocation2 + $0x1c] sm:$0x1]  ;;  %v3165_v48 = vrot.slane %v1154_v40, 9  ;;  %v4218_v50 = vld [vmem:[#allocation2 + $0x18] sm:$0xf]  ;;  %v1003_v1 = vrot.slane %v1002_v42, 4  ;;  %v3409_v8 = vpack.c.bf16 %v724_v31, %v724_v31 }
  0x49   : > { %v980_v45 = vsel %vm4187_vm11, %v975_v33, %v979_v24  ;;  %v1192_v49 = vrot.slane %v959_v38, 5  ;;  %v1010_v53 = vshrl.u32 %v4218_v50, 16  ;;  %v1013_v54 = vshll.u32 %v4218_v50, 16  ;;  %v3779_v56 = vld [vmem:[#allocation2 + $0x18] ss:$8 sps:$4 sm:$0xff]  }
  0x4a   : > { %v3158_v51 = vcombine.low %v980_v45, %v994_v34  ;;  %v1019_v55 = vshll.u32 %v959_v38, 16  ;;  %3564 = vmatpush3.bf16.msra.mxu0 %v3777_v25  ;;  %1427 = vmatprep.mubr.bf16.mxu0 %v3779_v56  ;;  %v3410_v9 = vpack.c.bf16 %v725_v62, %v725_v62  ;;  %v793_v15 = vshrl.u32 %v3409_v8, 16  ;;  %v3791_v24 = vld [vmem:[%s4687_s4 + $0x160] sm:$0xff]   ;;  %v874_v33 = vld [vmem:[#allocation2 + $0x2c] sm:$0x1]  ;;  %v3788_v45 = vld [vmem:[%s4687_s4 + $0x1d8] sm:$0xff]  }
  0x4b   : > { %v1193_v57 = vsel %vm4155_vm10, %v3165_v48, %v1192_v49  ;;  %3565 = vmatprep.subr.bf16.mxu0 %v3781_v28  ;;  %v1012_v2 = vrot.slane %v1010_v53, 4  ;;  %v1015_v3 = vrot.slane %v1013_v54, 5  ;;  %v796_v16 = vshll.u32 %v3409_v8, 16  ;;  %v4259_v29 = vld [vmem:[#allocation2 + $0x24] sm:$0x1]  ;;  %v3790_v53 = vld [vmem:[%s4687_s4 + $0x198] sm:$0xff]  }
  0x4c   : > { %1580 = vmatprep.mubr.bf16.mxu1 %v3158_v51  ;;  %v3171_v0 = vcombine.low %v1189_v41, %v1193_v57  ;;  %v1021_v11 = vrot.slane %v1019_v55, 5  ;;  %v801_v17 = vshrl.u32 %v3410_v9, 16  ;;  %v804_v18 = vshll.u32 %v3410_v9, 16  ;;  %v3792_v42 = vld [vmem:[%s4687_s4 + $0x120] sm:$0xff]   ;;  %v880_v44 = vld [vmem:[#allocation2 + $0x34] sm:$0x1] }
  0x4d   : > { %1581 = vmatmul.mubr.bf16.vlgmr.msra.gmra.mrb[0].mxu1 %v3154_v37  ;;  %v1016_v10 = vor.u32 %v1015_v3, %v1012_v2  ;;  %v1008_v20 = vsel %vm4187_vm11, %v1003_v1, %v1007_v61  ;;  %v3155_v25 = vcombine.low %v4159_v47, %v4218_v50  ;;  %v795_v27 = vrot.slane %v793_v15, 7  ;;  %v1155_v48 = vld [vmem:[#allocation2 + $0x20] sm:$0xe]  ;;  %v3796_v50 = vld [vmem:[%s4687_s4 + $0x168] sm:$0xff]   ;;  %v3806_v15 = vld [vmem:[%s4687_s4 + $0x178] sm:$0xff]  }
  0x4e   : > { %3602 = vmatpush3.bf16.msra.mxu1 %v3775_v46  ;;  %1428 = vmatmul.mubr.bf16.gmra.mrb[4].mxu0 %v3171_v0  ;;  %v803_v28 = vrot.slane %v801_v17, 7  ;;  %v1026_v34 = vrot.slane %v1024_v12, 4  ;;  %v1029_v36 = vrot.slane %v1027_v13, 5  ;;  %v3430_v37 = vunpack.c.h.bf16 %v3474_v14  ;;  %v3793_v57 = vld [vmem:[%s4687_s4 + $0x1e0] sm:$0xff]   ;;  %v3801_v0 = vld [vmem:[%s4687_s4 + $0x170] sm:$0xff]   ;;  %v3798_v9 = vld [vmem:[%s4687_s4 + $0x1e8] sm:$0xff]  }
  0x4f   : > { %3603 = vmatprep.subr.bf16.mxu1 %v3778_v52  ;;  %3566 = vmatpush3.bf16.msra.mxu0 %v3782_v59  ;;  %v1017_v21 = vrot.slane %v1016_v10, 4  ;;  %v798_v47 = vor.u32 %v796_v16, %v795_v27  ;;  %v799_v40 = vrot.slane %v795_v27, 4  ;;  %v1033_v49 = vshll.u32 %v4259_v29, 16  ;;  %v3795_v3 = vld [vmem:[%s4687_s4 + $0x1a0] sm:$0xff]   ;;  %v3802_v10 = vld [vmem:[%s4687_s4 + $0x130] sm:$0xff]  }
  0x50   : > { %3567 = vmatprep.subr.bf16.mxu0 %v3786_v4  ;;  %v806_v41 = vor.u32 %v804_v18, %v803_v28  ;;  %v807_v46 = vrot.slane %v803_v28, 4  ;;  %v714_v31 = vmul.f32 %v3429_v30, %v4094_v35  ;;  %v715_v55 = vmul.f32 %v3430_v37, %v4094_v35  ;;  %v3797_v35 = vld [vmem:[%s4687_s4 + $0x128] sm:$0xff]   ;;  %v883_v14 = vld [vmem:[#allocation2 + $0x38] sm:$0xf] }
  0x51   : > { %v1022_v32 = vsel %vm4187_vm11, %v1017_v21, %v1021_v11  ;;  %v872_v51 = vsel %vm4123_vm4, %v798_v47, %v871_v22  ;;  %v875_v54 = vsel %vm4128_vm5, %v799_v40, %v874_v33  ;;  %v1030_v56 = vor.u32 %v1029_v36, %v1026_v34  ;;  %v4314_v16 = vld [vmem:[#allocation2 + $0xc] sm:$0x1]  ;;  %v3803_v33 = vld [vmem:[%s4687_s4 + $0x1f0] sm:$0xff]   ;;  %v3807_v34 = vld [vmem:[%s4687_s4 + $0x138] sm:$0xff]  }
  0x52   : > { %3604 = vmatpush3.bf16.msra.mxu1 %v3780_v63  ;;  %v3159_v38 = vcombine.low %v1008_v20, %v1022_v32  ;;  %v878_v52 = vsel %vm4123_vm4, %v806_v41, %v877_v23  ;;  %873 = vst [vmem:[#allocation2 + $0x28] sm:$0xf] %v872_v51  ;;  %876 = vst [vmem:[#allocation2 + $0x2c] sm:$0x1] %v875_v54  ;;  %v726_v59 = vadd.f32 %v4104_v39, %v714_v31  ;;  %v3800_v18 = vld [vmem:[%s4687_s4 + $0x1a8] sm:$0xff]  }
  0x53   : > { %3605 = vmatprep.subr.bf16.mxu1 %v3783_v6  ;;  %3568 = vmatpush3.bf16.msra.mxu0 %v3787_v7  ;;  %879 = vst [vmem:[#allocation2 + $0x30] sm:$0xf] %v878_v52  ;;  %v881_v61 = vsel %vm4128_vm5, %v807_v46, %v880_v44  ;;  %v727_v62 = vadd.f32 %v4104_v39, %v715_v55  ;;  %v3166_v1 = vrot.slane %v1155_v48, 9  ;;  %v1196_v2 = vrot.slane %v4259_v29, 5  ;;  %v889_v32 = vld [vmem:[#allocation2 + $0x40] sm:$0xf] }
  0x54   : > { %3569 = vmatprep.subr.bf16.mxu0 %v3791_v24  ;;  %1588 = vmatprep.mubr.bf16.mxu1 %v3159_v38  ;;  %882 = vst [vmem:[#allocation2 + $0x34] sm:$0x1] %v881_v61  ;;  %v3411_v63 = vpack.c.bf16 %v726_v59, %v726_v59  ;;  %v4301_v6 = vrot.slane %v1030_v56, 4  ;;  %v4303_v7 = vrot.slane %v1033_v49, 5  ;;  %v4339_v40 = vld [vmem:[#allocation2 + $0x14] sm:$0x1] }
  0x55   : > { %1589 = vmatmul.mubr.bf16.gmra.mrb[4].mxu1 %v3155_v25  ;;  %v3412_v4 = vpack.c.bf16 %v727_v62, %v727_v62  ;;  %v1197_v22 = vsel %vm4155_vm10, %v3166_v1, %v1196_v2  ;;  %v1639_v41 = vshll.u32 %v4314_v16, 16  ;;  %v1741_v31 = vld [vmem:[#allocation2 + $0x8] sm:$0xe]  ;;  %v3808_v55 = vld [vmem:[%s4687_s4 + $0x1f8] sm:$0xff]   ;;  %v4368_v2 = vld [vmem:[%s4688_s5] sm:$0xff]  }
  0x56   : > { %3606 = vmatpush3.bf16.msra.mxu1 %v3785_v26  ;;  %v809_v39 = vshrl.u32 %v3411_v63, 16  ;;  %v812_v8 = vshll.u32 %v3411_v63, 16  ;;  %v1036_v24 = vsel %vm4187_vm11, %v4301_v6, %v4303_v7  ;;  %v886_v26 = vld [vmem:[#allocation2 + $0x3c] sm:$0x1]  ;;  %v1613_v62 = vld [vmem:[#allocation2 + $0x8] sm:$0xf] }
  0x57   : > { %3570 = vmatpush3.bf16.msra.mxu0 %v3792_v42  ;;  %3607 = vmatprep.subr.bf16.mxu1 %v3788_v45  ;;  %v817_v12 = vshrl.u32 %v3412_v4, 16  ;;  %v820_v13 = vshll.u32 %v3412_v4, 16 }
  0x58   : > { %3571 = vmatprep.subr.bf16.mxu0 %v3796_v50  ;;  %v811_v11 = vrot.slane %v809_v39, 7  ;;  %v3805_v50 = vld [vmem:[%s4687_s4 + $0x1b0] sm:$0xff]   ;;  %v4370_v39 = vrot.slane %v1639_v41, 5  ;;  %v1633_v41 = vshll.u32 %v1613_v62, 16 }
  0x59   : > { %v961_v20 = vld [vmem:[#allocation2 + $0x2c] sm:$0x1]  ;;  %v1156_v21 = vld [vmem:[#allocation2 + $0x28] sm:$0xe]  ;;  %v4335_v38 = vrot.slane %v817_v12, 7  ;;  %v3242_v12 = vrot.slane %v1741_v31, 9 }
  0x5a   : > { %3608 = vmatpush3.bf16.msra.mxu1 %v3790_v53  ;;  %v3789_v17 = vld [vmem:[#allocation2 + $0x28] ss:$8 sps:$4 sm:$0xff]   ;;  %v814_v25 = vor.u32 %v812_v8, %v811_v11  ;;  %v3167_v27 = vrot.slane %v1156_v21, 9  ;;  %v1200_v28 = vrot.slane %v961_v20, 5  ;;  %v1047_v36 = vshll.u32 %v961_v20, 16  ;;  %v4387_v20 = vld [vmem:[%s4689_s6] sm:$0xff]  }
  0x5b   : > { %3572 = vmatpush3.bf16.msra.mxu0 %v3797_v35  ;;  %3609 = vmatprep.subr.bf16.mxu1 %v3793_v57  ;;  %v4321_v23 = vld [vmem:[#allocation2 + $0x28] sm:$0xf]  ;;  %v815_v37 = vrot.slane %v811_v11, 4  ;;  %v4337_v47 = vld [vmem:[#allocation2 + $0x30] sm:$0xe]  ;;  %v822_v54 = vor.u32 %v820_v13, %v4335_v38  ;;  %v823_v57 = vrot.slane %v4335_v38, 4 }
  0x5c   : > { %3573 = vmatprep.subr.bf16.mxu0 %v3801_v0  ;;  %1435 = vmatprep.mubr.bf16.mxu0 %v3789_v17  ;;  %v1038_v29 = vshrl.u32 %v4321_v23, 16  ;;  %v1041_v30 = vshll.u32 %v4321_v23, 16  ;;  %v1201_v42 = vsel %vm4155_vm10, %v3167_v27, %v1200_v28  ;;  %v884_v46 = vsel %vm4123_vm4, %v814_v25, %v883_v14  ;;  %v962_v48 = vld [vmem:[#allocation2 + $0x34] sm:$0x1]  ;;  %v4346_v49 = vld [vmem:[#allocation2 + $0x30] sm:$0xf] }
  0x5d   : > { %v3172_v51 = vcombine.low %v1197_v22, %v1201_v42  ;;  %v1049_v52 = vrot.slane %v1047_v36, 5  ;;  %v3156_v53 = vcombine.low %v4238_v5, %v4321_v23  ;;  %885 = vst [vmem:[#allocation2 + $0x38] sm:$0xf] %v884_v46  ;;  %v887_v59 = vsel %vm4128_vm5, %v815_v37, %v886_v26  ;;  %v1742_v35 = vld [vmem:[#allocation2 + $0x10] sm:$0xe] }
  0x5e   : > { %3610 = vmatpush3.bf16.msra.mxu1 %v3795_v3  ;;  %v1040_v44 = vrot.slane %v1038_v29, 4  ;;  %v1043_v45 = vrot.slane %v1041_v30, 5  ;;  %v3168_v61 = vrot.slane %v4337_v47, 9  ;;  %v890_v5 = vsel %vm4123_vm4, %v822_v54, %v889_v32  ;;  %888 = vst [vmem:[#allocation2 + $0x3c] sm:$0x1] %v887_v59 }
  0x5f   : > { %3611 = vmatprep.subr.bf16.mxu1 %v3798_v9  ;;  %3574 = vmatpush3.bf16.msra.mxu0 %v3802_v10  ;;  %v1052_v63 = vshrl.u32 %v4346_v49, 16  ;;  %v1055_v0 = vshll.u32 %v4346_v49, 16  ;;  %v1061_v1 = vshll.u32 %v962_v48, 16  ;;  %891 = vst [vmem:[#allocation2 + $0x40] sm:$0xf] %v890_v5  ;;  %v1204_v4 = vrot.slane %v962_v48, 5 }
  0x60   : > { %3575 = vmatprep.subr.bf16.mxu0 %v3806_v15  ;;  %v1044_v56 = vor.u32 %v1043_v45, %v1040_v44  ;;  %1436 = vmatmul.mubr.bf16.gmra.mrb[8].mxu0 %v3172_v51  ;;  %v1653_v8 = vshll.u32 %v4339_v40, 16  ;;  %v1767_v15 = vrot.slane %v4314_v16, 5  ;;  %v3243_v17 = vrot.slane %v1742_v35, 9  ;;  %v1615_v23 = vld [vmem:[#allocation2 + $0x10] sm:$0xf] }
  0x61   : > { %v1054_v9 = vrot.slane %v1052_v63, 4  ;;  %v1057_v10 = vrot.slane %v1055_v0, 5  ;;  %v4373_v11 = vrot.slane %v1061_v1, 5  ;;  %v1771_v16 = vrot.slane %v4339_v40, 5  ;;  %v4395_v26 = vld [vmem:[#allocation2 + $0x10] sm:$0xf] }
  0x62   : > { %3612 = vmatpush3.bf16.msra.mxu1 %v3800_v18  ;;  %v1045_v3 = vrot.slane %v1044_v56, 4  ;;  %v4378_v14 = vrot.slane %v1653_v8, 5  ;;  %v3809_v18 = vld [vmem:[%s4687_s4 + $0x1b8] sm:$0xff]   ;;  %v1630_v25 = vshrl.u32 %v1613_v62, 16  ;;  %v1205_v29 = vsel %vm4155_vm10, %v3168_v61, %v1204_v4 }
  0x63   : > { %3613 = vmatprep.subr.bf16.mxu1 %v3803_v33  ;;  %3576 = vmatpush3.bf16.msra.mxu0 %v3807_v34  ;;  %v1058_v22 = vor.u32 %v1057_v10, %v1054_v9  ;;  %v4397_v27 = vld [vmem:[#allocation2 + $0x18] sm:$0xf]  ;;  %v1768_v6 = vsel %vm4155_vm10, %v3242_v12, %v1767_v15  ;;  %v1772_v47 = vsel %vm4155_vm10, %v3243_v17, %v1771_v16  ;;  %v4418_v54 = vld [vmem:[#allocation2 + $0x1c] sm:$0x1]  ;;  %v1647_v56 = vshll.u32 %v1615_v23, 16 }
  0x64   : > { %3665 = vmatprep.subr.bf16.mxu0 %v4368_v2  ;;  %v1050_v13 = vsel %vm4187_vm11, %v1045_v3, %v1049_v52  ;;  %v1158_v28 = vld [vmem:[#allocation2 + $0x38] sm:$0xe]  ;;  %v3306_v7 = vcombine.low %v4395_v26, %v4397_v27  ;;  %v1632_v40 = vrot.slane %v1630_v25, 4  ;;  %v3254_v48 = vcombine.low %v1768_v6, %v1772_v47  ;;  %v1618_v8 = vld [vmem:[#allocation2 + $0x1c] sm:$0x1] }
  0x65   : > { %v3160_v21 = vcombine.low %v1036_v24, %v1050_v13  ;;  %v4401_v30 = vld [vmem:[#allocation2 + $0x38] sm:$0xf]  ;;  %v3169_v24 = vrot.slane %v1158_v28, 9  ;;  %v1059_v32 = vrot.slane %v1058_v22, 4  ;;  %v963_v36 = vld [vmem:[#allocation2 + $0x3c] sm:$0x1] }
  0x66   : > { %3614 = vmatpush3.bf16.msra.mxu1 %v3805_v50  ;;  %v1066_v33 = vshrl.u32 %v4401_v30, 16  ;;  %v1069_v34 = vshll.u32 %v4401_v30, 16  ;;  %v3157_v37 = vcombine.low %v4346_v49, %v4401_v30  ;;  %v3799_v42 = vld [vmem:[#allocation2 + $0x38] ss:$8 sps:$4 sm:$0xff]   ;;  %v1208_v44 = vrot.slane %v963_v36, 5 }
  0x67   : > { %3615 = vmatprep.subr.bf16.mxu1 %v3808_v55  ;;  %1596 = vmatprep.mubr.bf16.mxu1 %v3160_v21  ;;  %v1064_v45 = vsel %vm4187_vm11, %v1059_v32, %v4373_v11  ;;  %v4416_v50 = vld [vmem:[#allocation2 + $0x14] sm:$0x1]  ;;  %v1075_v51 = vshll.u32 %v963_v36, 16  ;;  %v1635_v52 = vrot.slane %v1633_v41, 5  ;;  %v2049_v59 = vshrl.u32 %v4395_v26, 16 }
  0x68   : > { %1597 = vmatmul.mubr.bf16.gmra.mrb[8].mxu1 %v3156_v53  ;;  %v1068_v46 = vrot.slane %v1066_v33, 4  ;;  %v1071_v31 = vrot.slane %v1069_v34, 5  ;;  %v1644_v53 = vshrl.u32 %v1615_v23, 16  ;;  %1443 = vmatprep.mubr.bf16.mxu0 %v3799_v42  ;;  %v1209_v55 = vsel %vm4155_vm10, %v3169_v24, %v1208_v44  ;;  %v1620_v13 = vld [vmem:[#allocation2 + $0x24] sm:$0x1] }
  0x69   : > { %v2052_v61 = vshll.u32 %v4395_v26, 16  ;;  %v3173_v35 = vcombine.low %v1205_v29, %v1209_v55  ;;  %v1077_v5 = vrot.slane %v1075_v51, 5  ;;  %v1636_v63 = vor.u32 %v1635_v52, %v1632_v40  ;;  %v1743_v22 = vld [vmem:[#allocation2 + $0x18] sm:$0xe]  ;;  %v1744_v16 = vld [vmem:[#allocation2 + $0x20] sm:$0xe] }
  0x6a   : > { %3616 = vmatpush3.bf16.msra.mxu1 %v3809_v18  ;;  %v1072_v62 = vor.u32 %v1071_v31, %v1068_v46  ;;  %v1646_v0 = vrot.slane %v1644_v53, 4  ;;  %v1649_v1 = vrot.slane %v1647_v56, 5  ;;  %v2051_v3 = vrot.slane %v2049_v59, 4  ;;  %v1617_v6 = vld [vmem:[#allocation2 + $0x18] sm:$0xf] }
  0x6b   : > { %3689 = vmatprep.subr.bf16.mxu1 %v4387_v20  ;;  %v2054_v4 = vrot.slane %v2052_v61, 5  ;;  %1444 = vmatmul.mubr.bf16.gmra.mrb[12].mxu0 %v3173_v35  ;;  %v1637_v10 = vrot.slane %v1636_v63, 4  ;;  %v2058_v11 = vshll.u32 %v4416_v50, 16  ;;  %v2063_v12 = vshrl.u32 %v4397_v27, 16  ;;  %v1619_v24 = vld [vmem:[#allocation2 + $0x20] sm:$0xf] }
  0x6c   : > { %v1073_v9 = vrot.slane %v1072_v62, 4  ;;  %1990 = vmatprep.mubr.bf16.mxu0 %v3254_v48  ;;  %v1650_v15 = vor.u32 %v1649_v1, %v1646_v0  ;;  %v2066_v18 = vshll.u32 %v4397_v27, 16  ;;  %v2072_v21 = vshll.u32 %v4418_v54, 16  ;;  %v4442_v31 = vld [vmem:[#allocation2 + $0x20] sm:$0xf] }
  0x6d   : > { %v2055_v17 = vor.u32 %v2054_v4, %v2051_v3  ;;  %v1642_v25 = vsel %vm4187_vm11, %v1637_v10, %v4370_v39  ;;  %v2060_v28 = vrot.slane %v2058_v11, 5  ;;  %v2065_v29 = vrot.slane %v2063_v12, 4  ;;  %v4449_v55 = vld [vmem:[#allocation2 + $0x28] sm:$0xf]  ;;  %v4451_v56 = vld [vmem:[#allocation2 + $0x24] sm:$0x1] }
  0x6e   : > { %v1078_v23 = vsel %vm4187_vm11, %v1073_v9, %v1077_v5  ;;  %v1651_v33 = vrot.slane %v1650_v15, 4  ;;  %v2068_v36 = vrot.slane %v2066_v18, 5  ;;  %v2074_v47 = vrot.slane %v2072_v21, 5  ;;  %v4455_v63 = vld [vmem:[#allocation2 + $0x2c] sm:$0x1] }
  0x6f   : > { %v3161_v32 = vcombine.low %v1064_v45, %v1078_v23  ;;  %v2056_v34 = vrot.slane %v2055_v17, 4  ;;  %v3244_v40 = vrot.slane %v1743_v22, 9  ;;  %v1775_v41 = vrot.slane %v1618_v8, 5  ;;  %v3813_v45 = vld [vmem:[%s4688_s5 + $0x8] sm:$0xff]   ;;  %v1746_v27 = vld [vmem:[#allocation2 + $0x30] sm:$0xe] }
  0x70   : > { %v3245_v42 = vrot.slane %v1744_v16, 9  ;;  %v1656_v44 = vsel %vm4187_vm11, %v1651_v33, %v4378_v14  ;;  %v2069_v46 = vor.u32 %v2068_v36, %v2065_v29  ;;  %v1779_v48 = vrot.slane %v1620_v13, 5  ;;  %v3816_v36 = vld [vmem:[%s4689_s6 + $0x10] sm:$0xff]  }
  0x71   : > { %1604 = vmatprep.mubr.bf16.mxu1 %v3161_v32  ;;  %v2061_v39 = vsel %vm4187_vm11, %v2056_v34, %v2060_v28  ;;  %v3250_v51 = vcombine.low %v1642_v25, %v1656_v44  ;;  %v1776_v52 = vsel %vm4155_vm10, %v3244_v40, %v1775_v41  ;;  %v1658_v14 = vshrl.u32 %v1617_v6, 16  ;;  %v1745_v40 = vld [vmem:[#allocation2 + $0x28] sm:$0xe] }
  0x72   : > { %1605 = vmatmul.mubr.bf16.gmra.mrb[12].mxu1 %v3157_v37  ;;  %v1661_v53 = vshll.u32 %v1617_v6, 16  ;;  %v2070_v59 = vrot.slane %v2069_v46, 4  ;;  %v1780_v61 = vsel %vm4155_vm10, %v3245_v42, %v1779_v48  ;;  %v1667_v35 = vshll.u32 %v1618_v8, 16  ;;  %v3815_v8 = vld [vmem:[%s4688_s5 + $0x10] sm:$0xff]   ;;  %v3818_v6 = vld [vmem:[%s4688_s5 + $0x18] sm:$0xff]  }
  0x73   : > { %v1672_v62 = vshrl.u32 %v1619_v24, 16  ;;  %1991 = vmatmul.mubr.bf16.vlgmr.msra.gmra.mrb[16].mxu0 %v3250_v51  ;;  %v3255_v5 = vcombine.low %v1776_v52, %v1780_v61  ;;  %v1660_v49 = vrot.slane %v1658_v14, 4  ;;  %v1675_v37 = vshll.u32 %v1619_v24, 16  ;;  %v1622_v24 = vld [vmem:[#allocation2 + $0x2c] sm:$0x1] }
  0x74   : > { %v1663_v30 = vrot.slane %v1661_v53, 5  ;;  %3666 = vmatpush3.bf16.msra.mxu0 %v4368_v2  ;;  %v2075_v0 = vsel %vm4187_vm11, %v2070_v59, %v2074_v47  ;;  %v1669_v1 = vrot.slane %v1667_v35, 5  ;;  %v1681_v4 = vshll.u32 %v1620_v13, 16  ;;  %v3814_v13 = vld [vmem:[%s4689_s6 + $0x8] sm:$0xff]   ;;  %v4483_v47 = vld [vmem:[#allocation2 + $0x34] sm:$0x1] }
  0x75   : > { %v1674_v3 = vrot.slane %v1672_v62, 4  ;;  %v3310_v9 = vcombine.low %v2061_v39, %v2075_v0  ;;  %3667 = vmatprep.subr.bf16.mxu0 %v3813_v45  ;;  %1998 = vmatprep.mubr.bf16.mxu0 %v3255_v5  ;;  %v1677_v11 = vrot.slane %v1675_v37, 5  ;;  %v2077_v12 = vshrl.u32 %v4442_v31, 16  ;;  %v1623_v51 = vld [vmem:[#allocation2 + $0x30] sm:$0xf]  ;;  %v3820_v62 = vld [vmem:[%s4688_s5 + $0x20] sm:$0xff]  }
  0x76   : > { %v1664_v10 = vor.u32 %v1663_v30, %v1660_v49  ;;  %v1683_v15 = vrot.slane %v1681_v4, 5  ;;  %v2080_v2 = vshll.u32 %v4442_v31, 16  ;;  %v2086_v17 = vshll.u32 %v4451_v56, 16  ;;  %v4503_v0 = vld [vmem:[#allocation2 + $0x30] sm:$0xf] }
  0x77   : > { %v2091_v18 = vshrl.u32 %v4449_v55, 16  ;;  %2361 = vmatprep.mubr.bf16.mxu1 %v3310_v9  ;;  %v1678_v22 = vor.u32 %v1677_v11, %v1674_v3  ;;  %v2079_v16 = vrot.slane %v2077_v12, 4  ;;  %v2094_v23 = vshll.u32 %v4449_v55, 16 }
  0x78   : > { %v1665_v21 = vrot.slane %v1664_v10, 4  ;;  %3668 = vmatpush3.bf16.msra.mxu0 %v3813_v45  ;;  %v2082_v25 = vrot.slane %v2080_v2, 5  ;;  %v2100_v29 = vshll.u32 %v4455_v63, 16  ;;  %v2088_v42 = vrot.slane %v2086_v17, 5  ;;  %v4509_v10 = vld [vmem:[#allocation2 + $0x34] sm:$0x1] }
  0x79   : > { %v2093_v28 = vrot.slane %v2091_v18, 4  ;;  %v1679_v33 = vrot.slane %v1678_v22, 4  ;;  %3669 = vmatprep.subr.bf16.mxu0 %v3815_v8  ;;  %v2096_v34 = vrot.slane %v2094_v23, 5  ;;  %v3307_v26 = vcombine.low %v4442_v31, %v4449_v55  ;;  %v3819_v31 = vld [vmem:[%s4689_s6 + $0x18] sm:$0xff]  }
  0x7a   : > { %2362 = vmatmul.mubr.bf16.vlgmr.msra.gmra.mrb[16].mxu1 %v3306_v7  ;;  %v1670_v32 = vsel %vm4187_vm11, %v1665_v21, %v1669_v1  ;;  %v2083_v41 = vor.u32 %v2082_v25, %v2079_v16  ;;  %v2102_v44 = vrot.slane %v2100_v29, 5  ;;  %v1621_v7 = vld [vmem:[#allocation2 + $0x28] sm:$0xf]  ;;  %v3246_v45 = vrot.slane %v1745_v40, 9  ;;  %v4505_v1 = vld [vmem:[#allocation2 + $0x38] sm:$0xf] }
  0x7b   : > { %3690 = vmatpush3.bf16.msra.mxu1 %v4387_v20  ;;  %v1684_v39 = vsel %vm4187_vm11, %v1679_v33, %v1683_v15  ;;  %v2097_v46 = vor.u32 %v2096_v34, %v2093_v28  ;;  %v1783_v48 = vrot.slane %v1622_v24, 5  ;;  %v3247_v20 = vrot.slane %v1746_v27, 9  ;;  %v4511_v17 = vld [vmem:[#allocation2 + $0x3c] sm:$0x1]  ;;  %v3823_v16 = vld [vmem:[%s4688_s5 + $0x28] sm:$0xff]   ;;  %v3821_v33 = vld [vmem:[%s4689_s6 + $0x20] sm:$0xff]  }
  0x7c   : > { %3691 = vmatprep.subr.bf16.mxu1 %v3814_v13  ;;  %v3251_v52 = vcombine.low %v1670_v32, %v1684_v39  ;;  %3670 = vmatpush3.bf16.msra.mxu0 %v3815_v8  ;;  %v2084_v14 = vrot.slane %v2083_v41, 4  ;;  %v1787_v53 = vrot.slane %v4483_v47, 5  ;;  %v1686_v61 = vshrl.u32 %v1621_v7, 16  ;;  %v3825_v41 = vld [vmem:[%s4688_s5 + $0x30] sm:$0xff]   ;;  %v892_v27 = vld [vmem:[#allocation2 + $0x44] sm:$0x1] }
  0x7d   : > { %v2098_v59 = vrot.slane %v2097_v46, 4  ;;  %3671 = vmatprep.subr.bf16.mxu0 %v3818_v6  ;;  %v1784_v55 = vsel %vm4155_vm10, %v3246_v45, %v1783_v48  ;;  %v1689_v35 = vshll.u32 %v1621_v7, 16  ;;  %v1695_v30 = vshll.u32 %v1622_v24, 16  ;;  %v1626_v7 = vld [vmem:[#allocation2 + $0x3c] sm:$0x1] }
  0x7e   : > { %1999 = vmatmul.mubr.bf16.gmra.mrb[20].mxu0 %v3251_v52  ;;  %v2089_v5 = vsel %vm4187_vm11, %v2084_v14, %v2088_v42  ;;  %v1788_v49 = vsel %vm4155_vm10, %v3247_v20, %v1787_v53  ;;  %v1700_v37 = vshrl.u32 %v1623_v51, 16  ;;  %v1688_v8 = vrot.slane %v1686_v61, 4  ;;  %v3824_v53 = vld [vmem:[%s4689_s6 + $0x28] sm:$0xff]   ;;  %v1627_v61 = vld [vmem:[#allocation2 + $0x40] sm:$0xf] }
  0x7f   : > { %3692 = vmatpush3.bf16.msra.mxu1 %v3814_v13  ;;  %v2103_v3 = vsel %vm4187_vm11, %v2098_v59, %v2102_v44  ;;  %v3256_v4 = vcombine.low %v1784_v55, %v1788_v49  ;;  %v1691_v9 = vrot.slane %v1689_v35, 5  ;;  %v1697_v12 = vrot.slane %v1695_v30, 5 }
  0x80   : > { %3693 = vmatprep.subr.bf16.mxu1 %v3816_v36  ;;  %v3311_v11 = vcombine.low %v2089_v5, %v2103_v3  ;;  %3672 = vmatpush3.bf16.msra.mxu0 %v3818_v6  ;;  %v1702_v15 = vrot.slane %v1700_v37, 4  ;;  %v1703_v2 = vshll.u32 %v1623_v51, 16  ;;  %v1709_v13 = vshll.u32 %v4483_v47, 16  ;;  %v1747_v51 = vld [vmem:[#allocation2 + $0x38] sm:$0xe] }
  0x81   : > { %2006 = vmatprep.mubr.bf16.mxu0 %v3256_v4  ;;  %v1692_v18 = vor.u32 %v1691_v9, %v1688_v8  ;;  %3673 = vmatprep.subr.bf16.mxu0 %v3820_v62  ;;  %v2105_v21 = vshrl.u32 %v4503_v0, 16  ;;  %v2108_v22 = vshll.u32 %v4503_v0, 16  ;;  %v2114_v25 = vshll.u32 %v4509_v10, 16  ;;  %v3828_v5 = vld [vmem:[%s4688_s5 + $0x38] sm:$0xff]   ;;  %v921_v9 = vld [vmem:[%s3981_s14] sm:$0xf] }
  0x82   : > { %2369 = vmatprep.mubr.bf16.mxu1 %v3311_v11  ;;  %v1705_v23 = vrot.slane %v1703_v2, 5  ;;  %v2119_v28 = vshrl.u32 %v4505_v1, 16  ;;  %v2122_v29 = vshll.u32 %v4505_v1, 16  ;;  %v1711_v47 = vrot.slane %v1709_v13, 5 }
  0x83   : > { %3694 = vmatpush3.bf16.msra.mxu1 %v3816_v36  ;;  %v1693_v6 = vrot.slane %v1692_v18, 4  ;;  %v2107_v24 = vrot.slane %v2105_v21, 4  ;;  %v2110_v32 = vrot.slane %v2108_v22, 5  ;;  %v2116_v44 = vrot.slane %v2114_v25, 5  ;;  %v3826_v21 = vld [vmem:[%s4689_s6 + $0x30] sm:$0xff]  }
  0x84   : > { %2370 = vmatmul.mubr.bf16.gmra.mrb[20].mxu1 %v3307_v26  ;;  %3695 = vmatprep.subr.bf16.mxu1 %v3819_v31  ;;  %v1706_v34 = vor.u32 %v1705_v23, %v1702_v15  ;;  %v2121_v36 = vrot.slane %v2119_v28, 4  ;;  %v2124_v40 = vrot.slane %v2122_v29, 5  ;;  %v2128_v26 = vshll.u32 %v4511_v17, 16  ;;  %v3834_v23 = vld [vmem:[%s4686_s3] ss:$0 sm:$0xff] }
  0x85   : > { %3674 = vmatpush3.bf16.msra.mxu0 %v3820_v62  ;;  %v2111_v42 = vor.u32 %v2110_v32, %v2107_v24  ;;  %v1698_v39 = vsel %vm4187_vm11, %v1693_v6, %v1697_v12  ;;  %v893_v48 = vsel %vm4128_vm5, %v823_v57, %v892_v27  ;;  %v3308_v20 = vcombine.low %v4503_v0, %v4505_v1  ;;  %v1748_v57 = vld [vmem:[#allocation2 + $0x40] sm:$0xe] }
  0x86   : > { %3675 = vmatprep.subr.bf16.mxu0 %v3823_v16  ;;  %v1707_v46 = vrot.slane %v1706_v34, 4  ;;  %v2125_v45 = vor.u32 %v2124_v40, %v2121_v36  ;;  %v2130_v14 = vrot.slane %v2128_v26, 5  ;;  %894 = vst [vmem:[#allocation2 + $0x44] sm:$0x1] %v893_v48  ;;  %v1791_v59 = vrot.slane %v1626_v7, 5  ;;  %v3829_v40 = vld [vmem:[%s4689_s6 + $0x38] sm:$0xff]  }
  0x87   : > { %3696 = vmatpush3.bf16.msra.mxu1 %v3819_v31  ;;  %v2112_v52 = vrot.slane %v2111_v42, 4  ;;  %v1625_v31 = vld [vmem:[#allocation2 + $0x38] sm:$0xf]  ;;  %v3248_v37 = vrot.slane %v1747_v51, 9  ;;  %v1723_v0 = vshll.u32 %v1626_v7, 16  ;;  %v1728_v8 = vshrl.u32 %v1627_v61, 16 }
  0x88   : > { %3697 = vmatprep.subr.bf16.mxu1 %v3821_v33  ;;  %v1712_v38 = vsel %vm4187_vm11, %v1707_v46, %v1711_v47  ;;  %v2126_v55 = vrot.slane %v2125_v45, 4  ;;  %v1714_v35 = vshrl.u32 %v1625_v31, 16  ;;  %v1717_v62 = vshll.u32 %v1625_v31, 16  ;;  %v3835_v34 = vld [vmem:[%s4686_s3 + $0x1] ss:$0 sm:$0xff] }
  0x89   : > { %3676 = vmatpush3.bf16.msra.mxu0 %v3823_v16  ;;  %v3252_v49 = vcombine.low %v1698_v39, %v1712_v38  ;;  %v2117_v30 = vsel %vm4187_vm11, %v2112_v52, %v2116_v44  ;;  %v1731_v12 = vshll.u32 %v1627_v61, 16  ;;  %v922_v15 = vunpack.c.l.bf16 %v921_v9  ;;  %v2402_v48 = vld [vmem:[#allocation2 + $0x10] sm:$0xe]  ;;  %v2403_v51 = vld [vmem:[#allocation2 + $0x18] sm:$0xe] }
  0x8a   : > { %3677 = vmatprep.subr.bf16.mxu0 %v3825_v41  ;;  %v2131_v1 = vsel %vm4187_vm11, %v2126_v55, %v2130_v14  ;;  %v1716_v3 = vrot.slane %v1714_v35, 4  ;;  %v1719_v4 = vrot.slane %v1717_v62, 5  ;;  %v1725_v18 = vrot.slane %v1723_v0, 5  ;;  %v942_v35 = vld [vmem:[#allocation2 + $0x48] sm:$0xf] }
  0x8b   : > { %3698 = vmatpush3.bf16.msra.mxu1 %v3821_v33  ;;  %2007 = vmatmul.mubr.bf16.gmra.mrb[24].mxu0 %v3252_v49  ;;  %v3312_v11 = vcombine.low %v2117_v30, %v2131_v1  ;;  %v1730_v13 = vrot.slane %v1728_v8, 4  ;;  %v3249_v22 = vrot.slane %v1748_v57, 9  ;;  %v1733_v16 = vrot.slane %v1731_v12, 5  ;;  %v2406_v49 = vld [vmem:[#allocation2 + $0x30] sm:$0xe] }
  0x8c   : > { %3699 = vmatprep.subr.bf16.mxu1 %v3824_v53  ;;  %v1720_v2 = vor.u32 %v1719_v4, %v1716_v3  ;;  %v923_v25 = vmul.f32 %v3834_v23, %v922_v15  ;;  %v1792_v29 = vsel %vm4155_vm10, %v3248_v37, %v1791_v59  ;;  %v2432_v42 = vrot.slane %v4418_v54, 5  ;;  %v2407_v30 = vld [vmem:[#allocation2 + $0x38] sm:$0xe]  ;;  %v2038_v0 = vld [vmem:[#allocation2 + $0x40] sm:$0xf] }
  0x8d   : > { %3678 = vmatpush3.bf16.msra.mxu0 %v3825_v41  ;;  %2377 = vmatprep.mubr.bf16.mxu1 %v3312_v11  ;;  %v1628_v28 = vld [vmem:[#allocation2 + $0x44] sm:$0x1]  ;;  %v1734_v32 = vor.u32 %v1733_v16, %v1730_v13  ;;  %v2428_v41 = vrot.slane %v4416_v50, 5  ;;  %v2436_v39 = vrot.slane %v4451_v56, 5  ;;  %v2440_v46 = vrot.slane %v4455_v63, 5 }
  0x8e   : > { %3679 = vmatprep.subr.bf16.mxu0 %v3828_v5  ;;  %2378 = vmatmul.mubr.bf16.gmra.mrb[24].mxu1 %v3308_v20  ;;  %v1721_v6 = vrot.slane %v1720_v2, 4  ;;  %v1795_v24 = vrot.slane %v1628_v28, 5  ;;  %v1737_v33 = vshll.u32 %v1628_v28, 16  ;;  %v924_v47 = vadd.f32 %v3835_v34, %v923_v25  ;;  %v2404_v20 = vld [vmem:[#allocation2 + $0x20] sm:$0xe] }
  0x8f   : > { %3700 = vmatpush3.bf16.msra.mxu1 %v3824_v53  ;;  %v1735_v26 = vrot.slane %v1734_v32, 4  ;;  %v3362_v50 = vrot.slane %v2402_v48, 9  ;;  %v3363_v54 = vrot.slane %v2403_v51, 9  ;;  %v2405_v53 = vld [vmem:[#allocation2 + $0x28] sm:$0xe]  ;;  %v3364_v31 = vrot.slane %v2404_v20, 9 }
  0x90   : > { %v1726_v36 = vsel %vm4187_vm11, %v1721_v6, %v1725_v18  ;;  %3701 = vmatprep.subr.bf16.mxu1 %v3826_v21  ;;  %v1796_v44 = vsel %vm4155_vm10, %v3249_v22, %v1795_v24  ;;  %v1739_v27 = vrot.slane %v1737_v33, 5  ;;  %v926_v7 = vmul.f32 0.0, %v924_v47  ;;  %v945_v4 = vld [vmem:[#allocation2 + $0x4c] sm:$0x1]  ;;  %v2408_v25 = vld [vmem:[#allocation2 + $0x40] sm:$0xe] }
  0x91   : > { %3680 = vmatpush3.bf16.msra.mxu0 %v3828_v5  ;;  %v3257_v45 = vcombine.low %v1792_v29, %v1796_v44  ;;  %v3365_v38 = vrot.slane %v2405_v53, 9  ;;  %v2444_v56 = vrot.slane %v4509_v10, 5  ;;  %v2429_v57 = vsel %vm4155_vm10, %v3362_v50, %v2428_v41  ;;  %v2046_v28 = vld [vmem:[#allocation2 + $0x44] sm:$0x1]  ;;  %v3832_v53 = vld [vmem:[%s3976_s23 + $0x10] sm:$0xff]  }
  0x92   : > { %v1740_v52 = vsel %vm4187_vm11, %v1735_v26, %v1739_v27  ;;  %v3414_v14 = vpack.c.bf16 %v926_v7, %v926_v7  ;;  %v2433_v61 = vsel %vm4155_vm10, %v3363_v54, %v2432_v42  ;;  %v2437_v5 = vsel %vm4155_vm10, %v3364_v31, %v2436_v39  ;;  %v3830_v20 = vld [vmem:[%s3976_s23] sm:$0xff]  }
  0x93   : > { %3702 = vmatpush3.bf16.msra.mxu1 %v3826_v21  ;;  %2014 = vmatprep.mubr.bf16.mxu0 %v3257_v45  ;;  %v3253_v59 = vcombine.low %v1726_v36, %v1740_v52  ;;  %v3370_v62 = vcombine.low %v2429_v57, %v2433_v61  ;;  %v2441_v10 = vsel %vm4155_vm10, %v3365_v38, %v2440_v46  ;;  %v3366_v1 = vrot.slane %v2406_v49, 9 }
  0x94   : > { %3703 = vmatprep.subr.bf16.mxu1 %v3829_v40  ;;  %v932_v63 = vshrl.u32 %v3414_v14, 16  ;;  %v935_v55 = vshll.u32 %v3414_v14, 16  ;;  %v3367_v3 = vrot.slane %v2407_v30, 9  ;;  %v2448_v8 = vrot.slane %v4511_v17, 5 }
  0x95   : > { %2015 = vmatmul.mubr.bf16.gmra.mrb[28].mxu0 %v3253_v59  ;;  %v2445_v12 = vsel %vm4155_vm10, %v3366_v1, %v2444_v56  ;;  %v2133_v15 = vshrl.u32 %v2038_v0, 16  ;;  %v2136_v2 = vshll.u32 %v2038_v0, 16  ;;  %v3371_v18 = vcombine.low %v2437_v5, %v2441_v10  ;;  %v3833_v59 = vld [vmem:[%s3976_s23 + $0x18] sm:$0xff]  }
  0x96   : > { %v934_v37 = vrot.slane %v932_v63, 7  ;;  %3681 = vmatprep.mubr.bf16.mxu0 %v3370_v62  ;;  %v2449_v13 = vsel %vm4155_vm10, %v3367_v3, %v2448_v8  ;;  %v3368_v29 = vrot.slane %v2408_v25, 9  ;;  %v2452_v6 = vrot.slane %v2046_v28, 5 }
  0x97   : > { %3704 = vmatpush3.bf16.msra.mxu1 %v3829_v40  ;;  %v3372_v16 = vcombine.low %v2445_v12, %v2449_v13  ;;  %v2135_v17 = vrot.slane %v2133_v15, 4  ;;  %v2138_v23 = vrot.slane %v2136_v2, 5  ;;  %v2142_v32 = vshll.u32 %v2046_v28, 16 }
  0x98   : > { %v937_v9 = vor.u32 %v935_v55, %v934_v37  ;;  %v938_v11 = vrot.slane %v934_v37, 4  ;;  %v2453_v40 = vsel %vm4155_vm10, %v3368_v29, %v2452_v6 }
  0x99   : > { %v2139_v24 = vor.u32 %v2138_v23, %v2135_v17  ;;  %v2144_v26 = vrot.slane %v2142_v32, 5 }
  0x9a   : > { %v943_v21 = vsel %vm4123_vm4, %v937_v9, %v942_v35  ;;  %v946_v22 = vsel %vm4128_vm5, %v938_v11, %v945_v4 }
  0x9b   : > { %944 = vst [vmem:[#allocation2 + $0x48] sm:$0xf] %v943_v21  ;;  %947 = vst [vmem:[#allocation2 + $0x4c] sm:$0x1] %v946_v22  ;;  %v2140_v44 = vrot.slane %v2139_v24, 4 }
  0x9d   : > { %3682 = vmatmul.mubr.bf16.vlgmr.msra.gmra.mrb[32].mxu0 %v3371_v18  ;;  %v2145_v51 = vsel %vm4187_vm11, %v2140_v44, %v2144_v26 }
  0x9e   : > { %3685 = vmatprep.mubr.bf16.mxu0 %v3372_v16 }
  0xa2   : > { %v2039_v33 = vld [vmem:[#allocation2 + $0x48] sm:$0xf]  ;;  %v2047_v34 = vld [vmem:[#allocation2 + $0x4c] sm:$0x1] }
  0xa3   : > { %v2409_v58 = vld [vmem:[#allocation2 + $0x48] sm:$0xe]  ;;  %v2147_v47 = vshrl.u32 %v2039_v33, 16  ;;  %v2150_v36 = vshll.u32 %v2039_v33, 16  ;;  %v2156_v60 = vshll.u32 %v2047_v34, 16  ;;  %v2456_v42 = vrot.slane %v2047_v34, 5 }
  0xa4   : > { %v3369_v41 = vrot.slane %v2409_v58, 9  ;;  %v3309_v50 = vcombine.low %v2038_v0, %v2039_v33 }
  0xa5   : > { %v2149_v27 = vrot.slane %v2147_v47, 4  ;;  %v2152_v7 = vrot.slane %v2150_v36, 5  ;;  %v2158_v45 = vrot.slane %v2156_v60, 5 }
  0xa6   : > { %v2457_v39 = vsel %vm4155_vm10, %v3369_v41, %v2456_v42 }
  0xa7   : > { %v2153_v46 = vor.u32 %v2152_v7, %v2149_v27  ;;  %v3373_v48 = vcombine.low %v2453_v40, %v2457_v39 }
  0xa9   : > { %v2154_v52 = vrot.slane %v2153_v46, 4  ;;  %3686 = vmatmul.mubr.bf16.gmra.mrb[36].mxu0 %v3373_v48 }
  0xab   : > { %v2159_v14 = vsel %vm4187_vm11, %v2154_v52, %v2158_v45 }
  0xac   : > { %v3313_v54 = vcombine.low %v2145_v51, %v2159_v14 }
  0xae   : > { %2385 = vmatprep.mubr.bf16.mxu1 %v3313_v54 }
  0xaf   : > { %2386 = vmatmul.mubr.bf16.gmra.mrb[28].mxu1 %v3309_v50 }
  0xb0   : > { %3705 = vmatprep.mubr.bf16.mxu1 %v3830_v20 }
  0xb7   : > { %3706 = vmatmul.mubr.bf16.vlgmr.msra.gmra.mrb[32].mxu1 %v3831_v43 }
  0xb8   : > { %3709 = vmatprep.mubr.bf16.mxu1 %v3832_v53 }
  0xbf   : > { %3710 = vmatmul.mubr.bf16.gmra.mrb[36].mxu1 %v3833_v59 }
 0x118   : > { %v3497_v31 = vpop.f32.mrb[0].mxu0 }
 0x119   : > { %v3498_v38 = vpop.f32.mrb[1].mxu0 }
 0x11a   : > { %v3499_v56 = vadd.f32 %v3498_v38, %v3497_v31  ;;  %v3500_v63 = vpop.f32.mrb[2].mxu0 }
 0x11b   : > { %v3501_v55 = vpop.f32.mrb[3].mxu0 }
 0x11c   : > { %v3502_v57 = vadd.f32 %v3501_v55, %v3500_v63 }
 0x120   : > { %v3537_v19 = vpop.f32.mrb[0].mxu1 }
 0x121   : > { %v3538_v61 = vpop.f32.mrb[1].mxu1  ;;  %v3503_v35 = vpop.f32.mrb[4].mxu0 }
 0x122   : > { %v3539_v62 = vadd.f32 %v3538_v61, %v3537_v19  ;;  %v3540_v5 = vpop.f32.mrb[2].mxu1  ;;  %v3504_v49 = vpop.f32.mrb[5].mxu0 }
 0x123   : > { %v3541_v30 = vpop.f32.mrb[3].mxu1  ;;  %v3505_v37 = vadd.f32 %v3504_v49, %v3503_v35  ;;  %v3506_v0 = vpop.f32.mrb[6].mxu0 }
 0x124   : > { %v1583_v10 = vadd.f32 %v3539_v62, %v3499_v56  ;;  %v3542_v1 = vadd.f32 %v3541_v30, %v3540_v5  ;;  %v3507_v3 = vpop.f32.mrb[7].mxu0 }
 0x125   : > { %v3508_v4 = vadd.f32 %v3507_v3, %v3506_v0 }
 0x126   : > { %v1586_v8 = vadd.f32 %v3542_v1, %v3502_v57 }
 0x128   : > { %v3543_v9 = vpop.f32.mrb[4].mxu1 }
 0x129   : > { %v3544_v11 = vpop.f32.mrb[5].mxu1 }
 0x12a   : > { %v3545_v12 = vadd.f32 %v3544_v11, %v3543_v9  ;;  %v3546_v15 = vpop.f32.mrb[6].mxu1 }
 0x12b   : > { %v3547_v2 = vpop.f32.mrb[7].mxu1 }
 0x12c   : > { %v1591_v18 = vadd.f32 %v3545_v12, %v3505_v37  ;;  %v3548_v13 = vadd.f32 %v3547_v2, %v3546_v15 }
 0x12e   : > { %v1594_v21 = vadd.f32 %v3548_v13, %v3508_v4 }
 0x133   : > { %v3509_v22 = vpop.f32.mrb[8].mxu0 }
 0x134   : > { %v3510_v16 = vpop.f32.mrb[9].mxu0 }
 0x135   : > { %v3511_v17 = vadd.f32 %v3510_v16, %v3509_v22  ;;  %v3512_v23 = vpop.f32.mrb[10].mxu0 }
 0x136   : > { %v3513_v25 = vpop.f32.mrb[11].mxu0 }
 0x137   : > { %v3514_v28 = vadd.f32 %v3513_v25, %v3512_v23 }
 0x13b   : > { %v3549_v29 = vpop.f32.mrb[8].mxu1 }
 0x13c   : > { %v3550_v6 = vpop.f32.mrb[9].mxu1 }
 0x13d   : > { %v3551_v24 = vadd.f32 %v3550_v6, %v3549_v29  ;;  %v3552_v32 = vpop.f32.mrb[10].mxu1 }
 0x13e   : > { %v3553_v33 = vpop.f32.mrb[11].mxu1  ;;  %v3515_v36 = vpop.f32.mrb[12].mxu0 }
 0x13f   : > { %v1599_v34 = vadd.f32 %v3551_v24, %v3511_v17  ;;  %v3554_v58 = vadd.f32 %v3553_v33, %v3552_v32  ;;  %v3516_v60 = vpop.f32.mrb[13].mxu0 }
 0x140   : > { %v3517_v40 = vadd.f32 %v3516_v60, %v3515_v36  ;;  %v3518_v41 = vpop.f32.mrb[14].mxu0 }
 0x141   : > { %v1602_v47 = vadd.f32 %v3554_v58, %v3514_v28  ;;  %v3519_v42 = vpop.f32.mrb[15].mxu0 }
 0x142   : > { %v3520_v44 = vadd.f32 %v3519_v42, %v3518_v41 }
 0x145   : > { %v3555_v26 = vpop.f32.mrb[12].mxu1 }
 0x146   : > { %v3556_v27 = vpop.f32.mrb[13].mxu1  ;;  %v3577_v46 = vpop.f32.mrb[16].mxu0 }
 0x147   : > { %v3557_v7 = vadd.f32 %v3556_v27, %v3555_v26  ;;  %v3558_v39 = vpop.f32.mrb[14].mxu1  ;;  %v3578_v48 = vpop.f32.mrb[17].mxu0 }
 0x148   : > { %v3559_v45 = vpop.f32.mrb[15].mxu1  ;;  %v3579_v14 = vadd.f32 %v3578_v48, %v3577_v46  ;;  %v3580_v50 = vpop.f32.mrb[18].mxu0 }
 0x149   : > { %v1607_v51 = vadd.f32 %v3557_v7, %v3517_v40  ;;  %v3560_v52 = vadd.f32 %v3559_v45, %v3558_v39  ;;  %v3581_v54 = vpop.f32.mrb[19].mxu0 }
 0x14a   : > { %v2023_v43 = vadd.f32 %v3579_v14, %v1583_v10  ;;  %v3582_v53 = vadd.f32 %v3581_v54, %v3580_v50 }
 0x14b   : > { %v1610_v20 = vadd.f32 %v3560_v52, %v3520_v44 }
 0x14c   : > { %v2024_v59 = vadd.f32 %v3582_v53, %v1586_v8 }
 0x14d   : > { %v3617_v31 = vpop.f32.mrb[16].mxu1 }
 0x14e   : > { %v3618_v38 = vpop.f32.mrb[17].mxu1 }
 0x14f   : > { %v3619_v56 = vadd.f32 %v3618_v38, %v3617_v31  ;;  %v3620_v63 = vpop.f32.mrb[18].mxu1 }
 0x150   : > { %v3621_v55 = vpop.f32.mrb[19].mxu1 }
 0x151   : > { %v3622_v57 = vadd.f32 %v3621_v55, %v3620_v63  ;;  %v2394_v19 = vadd.f32 %v3619_v56, %v2023_v43  ;;  %v3583_v61 = vpop.f32.mrb[20].mxu0 }
 0x152   : > { %v3584_v35 = vpop.f32.mrb[21].mxu0 }
 0x153   : > { %v2395_v62 = vadd.f32 %v3622_v57, %v2024_v59  ;;  %v3585_v5 = vadd.f32 %v3584_v35, %v3583_v61  ;;  %v3586_v49 = vpop.f32.mrb[22].mxu0 }
 0x154   : > { %v3587_v30 = vpop.f32.mrb[23].mxu0 }
 0x155   : > { %v2025_v37 = vadd.f32 %v3585_v5, %v1591_v18  ;;  %v3588_v0 = vadd.f32 %v3587_v30, %v3586_v49 }
 0x157   : > { %v3623_v1 = vpop.f32.mrb[20].mxu1  ;;  %v2026_v3 = vadd.f32 %v3588_v0, %v1594_v21 }
 0x158   : > { %v3624_v10 = vpop.f32.mrb[21].mxu1 }
 0x159   : > { %v3625_v4 = vadd.f32 %v3624_v10, %v3623_v1  ;;  %v3626_v8 = vpop.f32.mrb[22].mxu1 }
 0x15a   : > { %v3627_v9 = vpop.f32.mrb[23].mxu1 }
 0x15b   : > { %v3628_v11 = vadd.f32 %v3627_v9, %v3626_v8  ;;  %v2396_v12 = vadd.f32 %v3625_v4, %v2025_v37 }
 0x15d   : > { %v2397_v15 = vadd.f32 %v3628_v11, %v2026_v3 }
 0x15e   : > { %v3589_v2 = vpop.f32.mrb[24].mxu0 }
 0x15f   : > { %v3590_v13 = vpop.f32.mrb[25].mxu0 }
 0x160   : > { %v3591_v22 = vadd.f32 %v3590_v13, %v3589_v2  ;;  %v3592_v16 = vpop.f32.mrb[26].mxu0 }
 0x161   : > { %v3593_v17 = vpop.f32.mrb[27].mxu0  ;;  %v3629_v23 = vpop.f32.mrb[24].mxu1 }
 0x162   : > { %v2027_v25 = vadd.f32 %v3591_v22, %v1599_v34  ;;  %v3594_v28 = vadd.f32 %v3593_v17, %v3592_v16  ;;  %v3630_v29 = vpop.f32.mrb[25].mxu1 }
 0x163   : > { %v3631_v18 = vadd.f32 %v3630_v29, %v3629_v23  ;;  %v3632_v6 = vpop.f32.mrb[26].mxu1 }
 0x164   : > { %v2028_v24 = vadd.f32 %v3594_v28, %v1602_v47  ;;  %v3633_v21 = vpop.f32.mrb[27].mxu1 }
 0x165   : > { %v3634_v32 = vadd.f32 %v3633_v21, %v3632_v6  ;;  %v2398_v33 = vadd.f32 %v3631_v18, %v2027_v25 }
 0x167   : > { %v2399_v58 = vadd.f32 %v3634_v32, %v2028_v24 }
 0x168   : > { %v3595_v36 = vpop.f32.mrb[28].mxu0 }
 0x169   : > { %v3596_v60 = vpop.f32.mrb[29].mxu0 }
 0x16a   : > { %v3597_v40 = vadd.f32 %v3596_v60, %v3595_v36  ;;  %v3598_v41 = vpop.f32.mrb[30].mxu0 }
 0x16b   : > { %v3599_v42 = vpop.f32.mrb[31].mxu0 }
 0x16c   : > { %v2029_v44 = vadd.f32 %v3597_v40, %v1607_v51  ;;  %v3600_v26 = vadd.f32 %v3599_v42, %v3598_v41 }
 0x16e   : > { %v2030_v27 = vadd.f32 %v3600_v26, %v1610_v20 }
 0x170   : > { %v3683_v34 = vpop.f32.mrb[32].mxu0 }
 0x171   : > { %v2605_v7 = vadd.f32 %v3683_v34, %v2396_v12  ;;  %v2572_v39 = vpop.f32.mrb[33].mxu0 }
 0x172   : > { %v2603_v46 = vadd.f32 %v2572_v39, %v2394_v19  ;;  %v3684_v45 = vpop.f32.mrb[34].mxu0 }
 0x173   : > { %v2606_v47 = vadd.f32 %v3684_v45, %v2397_v15  ;;  %v2575_v48 = vpop.f32.mrb[35].mxu0  ;;  %v2819_v59 = vmul.f32 %v2605_v7, %v2605_v7 }
 0x174   : > { %v2604_v52 = vadd.f32 %v2575_v48, %v2395_v62  ;;  %v2817_v50 = vmul.f32 %v2603_v46, %v2603_v46 }
 0x175   : > { %v3439_v14 = vpack.c.bf16 %v2606_v47, %v2605_v7  ;;  %v2820_v20 = vmul.f32 %v2606_v47, %v2606_v47 }
 0x176   : > { %v3434_v54 = vpack.c.bf16 %v2604_v52, %v2603_v46  ;;  %v2804_v43 = vadd.f32 %v2604_v52, %v2603_v46  ;;  %v2818_v53 = vmul.f32 %v2604_v52, %v2604_v52 }
 0x177   : > { %3475 = vst [vmem:[%s3987_s0 + $0x8] sm:$0xff] %v3439_v14  }
 0x178   : > { %3435 = vst [vmem:[%s3987_s0] sm:$0xff] %v3434_v54   ;;  %v2805_v51 = vadd.f32 %v2804_v43, %v2605_v7  ;;  %v2825_v31 = vadd.f32 %v2818_v53, %v2817_v50 }
 0x17a   : > { %v2826_v38 = vadd.f32 %v2825_v31, %v2819_v59  ;;  %v2806_v56 = vadd.f32 %v2805_v51, %v2606_v47 }
 0x17c   : > { %v3687_v63 = vpop.f32.mrb[36].mxu0  ;;  %v2827_v55 = vadd.f32 %v2826_v38, %v2820_v20 }
 0x17d   : > { %v2588_v57 = vpop.f32.mrb[37].mxu0 }
 0x17e   : > { %v2607_v19 = vadd.f32 %v2588_v57, %v2398_v33  ;;  %v3688_v61 = vpop.f32.mrb[38].mxu0 }
 0x17f   : > { %v2591_v35 = vpop.f32.mrb[39].mxu0 }
 0x180   : > { %v2807_v62 = vadd.f32 %v2806_v56, %v2607_v19  ;;  %v2821_v5 = vmul.f32 %v2607_v19, %v2607_v19  ;;  %v2608_v49 = vadd.f32 %v2591_v35, %v2399_v58 }
 0x182   : > { %v3635_v30 = vpop.f32.mrb[28].mxu1  ;;  %v2828_v37 = vadd.f32 %v2827_v55, %v2821_v5  ;;  %v3444_v0 = vpack.c.bf16 %v2608_v49, %v2607_v19  ;;  %v2808_v1 = vadd.f32 %v2807_v62, %v2608_v49  ;;  %v2822_v3 = vmul.f32 %v2608_v49, %v2608_v49 }
 0x183   : > { %v3636_v10 = vpop.f32.mrb[29].mxu1 }
 0x184   : > { %v3637_v4 = vadd.f32 %v3636_v10, %v3635_v30  ;;  %v3638_v8 = vpop.f32.mrb[30].mxu1  ;;  %3476 = vst [vmem:[%s3987_s0 + $0x10] sm:$0xff] %v3444_v0   ;;  %v2829_v9 = vadd.f32 %v2828_v37, %v2822_v3 }
 0x185   : > { %v3639_v11 = vpop.f32.mrb[31].mxu1 }
 0x186   : > { %v3640_v12 = vadd.f32 %v3639_v11, %v3638_v8  ;;  %v2400_v15 = vadd.f32 %v3637_v4, %v2029_v44 }
 0x188   : > { %v2609_v2 = vadd.f32 %v3687_v63, %v2400_v15  ;;  %v2401_v13 = vadd.f32 %v3640_v12, %v2030_v27 }
 0x18a   : > { %v3707_v22 = vpop.f32.mrb[32].mxu1  ;;  %v2610_v16 = vadd.f32 %v3688_v61, %v2401_v13  ;;  %v2809_v17 = vadd.f32 %v2808_v1, %v2609_v2  ;;  %v2823_v25 = vmul.f32 %v2609_v2, %v2609_v2 }
 0x18b   : > { %v2741_v23 = vpop.f32.mrb[33].mxu1  ;;  %v2855_v42 = vmul.f32 %v3707_v22, %v3707_v22 }
 0x18c   : > { %v3708_v28 = vpop.f32.mrb[34].mxu1  ;;  %v3449_v29 = vpack.c.bf16 %v2610_v16, %v2609_v2  ;;  %v2810_v18 = vadd.f32 %v2809_v17, %v2610_v16  ;;  %v2853_v6 = vmul.f32 %v2741_v23, %v2741_v23  ;;  %v2824_v32 = vmul.f32 %v2610_v16, %v2610_v16 }
 0x18d   : > { %v3459_v24 = vpack.c.bf16 %v3708_v28, %v3707_v22  ;;  %v2744_v21 = vpop.f32.mrb[35].mxu1  ;;  %v2830_v33 = vadd.f32 %v2829_v9, %v2823_v25  ;;  %v2856_v7 = vmul.f32 %v3708_v28, %v3708_v28 }
 0x18e   : > { %v3454_v58 = vpack.c.bf16 %v2744_v21, %v2741_v23  ;;  %v2840_v36 = vadd.f32 %v2744_v21, %v2741_v23  ;;  %v2854_v60 = vmul.f32 %v2744_v21, %v2744_v21  ;;  %3477 = vst [vmem:[%s3987_s0 + $0x18] sm:$0xff] %v3449_v29   ;;  %v2811_v40 = vrot.slane %v2810_v18, 4 }
 0x18f   : > { %3478 = vst [vmem:[%s3993_s17 + $0x8] sm:$0xff] %v3459_v24   ;;  %v2831_v41 = vadd.f32 %v2830_v33, %v2824_v32 }
 0x190   : > { %3455 = vst [vmem:[%s3993_s17] sm:$0xff] %v3454_v58   ;;  %v2841_v44 = vadd.f32 %v3707_v22, %v2840_v36  ;;  %v2861_v26 = vadd.f32 %v2854_v60, %v2853_v6  ;;  %v2812_v27 = vadd.f32 %v2811_v40, %v2810_v18 }
 0x191   : > { %v2832_v34 = vrot.slane %v2831_v41, 4 }
 0x192   : > { %v2862_v39 = vadd.f32 %v2861_v26, %v2855_v42  ;;  %v2813_v46 = vrot.slane %v2812_v27, 2  ;;  %v3711_v45 = vpop.f32.mrb[36].mxu1  ;;  %v2842_v47 = vadd.f32 %v3708_v28, %v2841_v44 }
 0x193   : > { %v2833_v48 = vadd.f32 %v2832_v34, %v2831_v41  ;;  %v2757_v52 = vpop.f32.mrb[37].mxu1  ;;  %v2859_v35 = vmul.f32 %v3711_v45, %v3711_v45 }
 0x194   : > { %v2814_v14 = vadd.f32 %v2813_v46, %v2812_v27  ;;  %v2843_v50 = vadd.f32 %v2842_v47, %v2757_v52  ;;  %v2857_v54 = vmul.f32 %v2757_v52, %v2757_v52  ;;  %v2863_v43 = vadd.f32 %v2862_v39, %v2856_v7  ;;  %v3712_v53 = vpop.f32.mrb[38].mxu1 }
 0x195   : > { %v2834_v59 = vrot.slane %v2833_v48, 2  ;;  %v3469_v51 = vpack.c.bf16 %v3712_v53, %v3711_v45  ;;  %v2760_v31 = vpop.f32.mrb[39].mxu1  ;;  %v2860_v37 = vmul.f32 %v3712_v53, %v3712_v53 }
 0x196   : > { %v2864_v20 = vadd.f32 %v2863_v43, %v2857_v54  ;;  %v3464_v38 = vpack.c.bf16 %v2760_v31, %v2757_v52  ;;  %v2844_v56 = vadd.f32 %v2843_v50, %v2760_v31  ;;  %v2815_v63 = vrot.slane %v2814_v14, 1 }
 0x197   : > { %v2835_v55 = vadd.f32 %v2834_v59, %v2833_v48  ;;  %3480 = vst [vmem:[%s3993_s17 + $0x18] sm:$0xff] %v3469_v51   ;;  %v2858_v57 = vmul.f32 %v2760_v31, %v2760_v31 }
 0x198   : > { %3479 = vst [vmem:[%s3993_s17 + $0x10] sm:$0xff] %v3464_v38   ;;  %v2845_v19 = vadd.f32 %v3711_v45, %v2844_v56  ;;  %v2816_v49 = vadd.f32 %v2815_v63, %v2814_v14 }
 0x199   : > { %v2836_v61 = vrot.slane %v2835_v55, 1  ;;  %v2865_v62 = vadd.f32 %v2864_v20, %v2858_v57 }
 0x19a   : > { %v2846_v5 = vadd.f32 %v3712_v53, %v2845_v19 }
 0x19b   : > { %v2837_v30 = vadd.f32 %v2836_v61, %v2835_v55  ;;  %v2866_v0 = vadd.f32 %v2865_v62, %v2859_v35 }
 0x19c   : > { %v2847_v1 = vrot.slane %v2846_v5, 4 }
 0x19d   : > { %v2839_v3 = vsel %vm847_vm2, %v2816_v49, %v2837_v30  ;;  %v2867_v10 = vadd.f32 %v2866_v0, %v2860_v37 }
 0x19e   : > { %v2848_v4 = vadd.f32 %v2847_v1, %v2846_v5  ;;  %2877 = vst [vmem:[%s4695_s12] sm:$0x3] (%p653_p5), %v2839_v3 }
 0x19f   : > { %v2868_v8 = vrot.slane %v2867_v10, 4 }
 0x1a0   : > { %v2849_v9 = vrot.slane %v2848_v4, 2 }
 0x1a1   : > { %v2869_v11 = vadd.f32 %v2868_v8, %v2867_v10 }
 0x1a2   : > { %v2850_v12 = vadd.f32 %v2849_v9, %v2848_v4 }
 0x1a3   : > { %v2870_v15 = vrot.slane %v2869_v11, 2 }
 0x1a4   : > { %v2851_v2 = vrot.slane %v2850_v12, 1 }
 0x1a5   : > { %v2871_v13 = vadd.f32 %v2870_v15, %v2869_v11  ;;  %2876 = sbr.rel (!%p653_p5) target bundleno = 429 (0x1ad), region = 68 }
 0x1a6   : > { %v2852_v16 = vadd.f32 %v2851_v2, %v2850_v12 }
 0x1a7   : > { %v2872_v22 = vrot.slane %v2871_v13, 1 }
 0x1a9   : > { %v2873_v17 = vadd.f32 %v2872_v22, %v2871_v13 }
 0x1ab   : > { %v2874_v23 = vsel %vm847_vm2, %v2852_v16, %v2873_v17 }
 0x1ac   : > { %2878 = vst [vmem:[%s4696_s13] sm:$0x3] %v2874_v23 }
 0x1ad PF: > { %2881 = sbr.rel (%p653_p5) target bundleno = 439 (0x1b7), region = 72  ;;  %v2882_v25 = vld [vmem:[%s4695_s12] sm:$0x3] (!%p653_p5) }
 0x1ae   : > { %v2883_v29 = vadd.f32 (!%p653_p5), %v2882_v25, %v2839_v3 }
 0x1b0   : > { %2884 = vst [vmem:[%s4695_s12] sm:$0x3] (!%p653_p5), %v2883_v29 }
 0x1b3   : > { %v2885_v28 = vld [vmem:[%s4696_s13] sm:$0x3] (!%p653_p5) }
 0x1b4   : > { %v2886_v18 = vadd.f32 %v2885_v28, %v2874_v23 }
 0x1b6   : > { %2887 = vst [vmem:[%s4696_s13] sm:$0x3] %v2886_v18 }
 0x1b7 PF: > { %2889 = sbr.rel (!%p657_p6) target bundleno = 472 (0x1d8), region = 76  ;;  %v2896_v34 = vld [vmem:[%s4691_s8] sm:$0x1] (%p657_p6)  ;;  %v2900_v47 = vld [vmem:[%s4691_s8 + $0x1] sm:$0x1] (%p657_p6) }
 0x1b8   : > { %v2911_v7 = vld [vmem:[%s4692_s9] sm:$0x1] (%p657_p6)  ;;  %v2915_v14 = vld [vmem:[%s4692_s9 + $0x1] sm:$0x1] (%p657_p6) }
 0x1ba   : > { %v2890_v6 = vld [vmem:[%s4695_s12] sm:$0x1] (%p657_p6)  ;;  %v2892_v24 = vld [vmem:[%s4695_s12 + $0x1] sm:$0x1] (%p657_p6) }
 0x1bb   : > { %v2891_v21 = vmul.f32 (%p657_p6), 0.0078125, %v2890_v6  ;;  %v2893_v32 = vmul.f32 (%p657_p6), 0.0078125, %v2892_v24 }
 0x1bd   : > { %v2905_v33 = vld [vmem:[%s4696_s13] sm:$0x1] (%p657_p6)  ;;  %v2907_v36 = vld [vmem:[%s4696_s13 + $0x1] sm:$0x1] (%p657_p6)  ;;  %v2894_v60 = vmul.f32 (%p657_p6), %v2891_v21, %v2891_v21 }
 0x1be   : > { %v2906_v58 = vmul.f32 0.0078125, %v2905_v33  ;;  %v2908_v40 = vmul.f32 0.0078125, %v2907_v36 }
 0x1bf   : > { %v2895_v42 = vsub.f32 %v2893_v32, %v2894_v60 }
 0x1c0   : > { %v2909_v41 = vmul.f32 %v2906_v58, %v2906_v58 }
 0x1c1   : > { %v2897_v26 = vadd.f32 1e-05, %v2895_v42 }
 0x1c2   : > { %v2910_v44 = vsub.f32 %v2908_v40, %v2909_v41 }
 0x1c3   : > { %3836 = vrsqrt.f32 %v2897_v26 }
 0x1c4   : > { %v2912_v27 = vadd.f32 1e-05, %v2910_v44 }
 0x1c6   : > { %3838 = vrsqrt.f32 %v2912_v27 }
 0x1cd   : > { %v3837_v39 = vpop.eup %3836 }
 0x1ce   : > { %v2899_v45 = vmul.f32 %v3837_v39, %v2896_v34 }
 0x1d0   : > { %v3839_v46 = vpop.eup %3838  ;;  %v2901_v52 = vmul.f32 %v2899_v45, %v2891_v21  ;;  %2904 = vst [vmem:[%s4695_s12] sm:$0x1] %v2899_v45 }
 0x1d1   : > { %v2914_v48 = vmul.f32 %v3839_v46, %v2911_v7 }
 0x1d2   : > { %v2902_v54 = vsub.f32 %v2900_v47, %v2901_v52 }
 0x1d3   : > { %v2916_v50 = vmul.f32 %v2914_v48, %v2906_v58  ;;  %2919 = vst [vmem:[%s4696_s13] sm:$0x1] %v2914_v48 }
 0x1d4   : > { %2903 = vst [vmem:[%s4695_s12 + $0x1] sm:$0x1] %v2902_v54 }
 0x1d5   : > { %v2917_v43 = vsub.f32 %v2915_v14, %v2916_v50 }
 0x1d7   : > { %2918 = vst [vmem:[%s4696_s13 + $0x1] sm:$0x1] %v2917_v43 }
 0x1d8 PF: > { %s4712_s23 = sld [smem:[#allocation4_spill]]  ;;  %s4713_s25 = sld [smem:[#allocation3_spill]] }
 0x1d9   : > { %s4714_s26 = sld [smem:[#allocation5_spill]] }
 0x1de   : > { %s24_s27 = sadd.s32 1, %s4712_s23  }
 0x1df   : > { %p21_p7 = scmp.ge.s32.totalorder %s24_s27, 4  }
 0x1e1   :  { %23 = sbr.rel (!%p21_p7) target bundleno = 2 (0x2), region = 149 }

</bundles_post_ra>
